<compile_context>
chip_gen: v7x
topology: tpu7x:2x2x1
jax: 0.10.0
libtpu: 0.0.40
codegen_flags: <defaults>
</compile_context>

<pallas_src>
import jax
import jax.numpy as jnp
from jax.experimental import pallas as pl
from jax.experimental.pallas import tpu as pltpu


def _sent_rnn_kernel(x2d_ref,               # (L*B, E)  bf16  VMEM (time-major)
                     w_i_ref,               # (E, Hp)   bf16  VMEM  [W_ir|W_iz|W_in] padded
                     w_h_ref,               # (H, Hp)   bf16  VMEM  [W_hr|W_hz|W_hn] padded
                     b_i_ref,               # (1, Hp)   f32   VMEM  [b_ir+b_hr|b_iz+b_hz|b_in]
                     b_h_ref,               # (1, Hp)   f32   VMEM  [0|0|b_hn]
                     label_ref,             # (B, 1)    f32   VMEM
                     fc_w_ref,              # (L,)      f32   SMEM
                     fc_b_ref,              # (1,)      f32   SMEM
                     loss_ref,              # (1, 1)    f32   out
                     prob_ref,              # (B, 1)    f32   out
                     gx_ref):               # (L*B, Hp) f32   VMEM scratch
    H = w_h_ref.shape[0]
    B = label_ref.shape[0]
    L = fc_w_ref.shape[0]
    H2, H3 = 2 * H, 3 * H

    # ---- hoisted input projection: ONE well-shaped MXU matmul for all steps ----
    gx_ref[...] = (
        jnp.dot(x2d_ref[...], w_i_ref[...], preferred_element_type=jnp.float32)
        + b_i_ref[...])

    w_h = w_h_ref[...]                       # (H, Hp) bf16, resident across the scan
    b_h = b_h_ref[...]                       # (1, Hp) f32

    h = jnp.zeros((B, H), jnp.float32)
    acc = jnp.zeros((B, H), jnp.float32)     # full-width accumulator (lane extract once at end)

    # ---- reverse-direction GRU scan, fully unrolled (L is small & static) ----
    for t in range(L - 1, -1, -1):
        gx_t = gx_ref[pl.ds(t * B, B), :]                        # (B, Hp) f32, static slice
        gh = jnp.dot(h.astype(jnp.bfloat16), w_h,
                     preferred_element_type=jnp.float32) + b_h   # one MXU push per step
        rz = jax.nn.sigmoid(gx_t[:, :H2] + gh[:, :H2])           # fused r|z activation
        r = rz[:, :H]
        z = rz[:, H:H2]
        n = jnp.tanh(gx_t[:, H2:H3] + r * gh[:, H2:H3])
        h = (1.0 - z) * n + z * h                                # PyTorch GRU cell
        acc = acc + h * fc_w_ref[t]                              # fold Linear(seq_len,1) into scan

    logits = acc[:, H - 1:H] + fc_b_ref[0]                       # gru_out[:, :, -1] @ fc_w + fc_b
    p = jax.nn.sigmoid(logits)
    prob_ref[...] = p

    lab = jnp.maximum(label_ref[...], 0.0)                       # label[label < 0] = 0
    log_p = jnp.maximum(jnp.log(p), -100.0)                      # torch BCE clamps logs at -100
    log_1mp = jnp.maximum(jnp.log(1.0 - p), -100.0)
    nll = -(lab * log_p + (1.0 - lab) * log_1mp)
    loss_ref[...] = jnp.mean(nll, keepdims=True)                 # reduction='mean'


def sent_rnn_forward(x_ids, label, params):
    """Returns (loss, probs) matching SentRNN.forward -> (loss, x)."""
    embed = params["embed"]                                      # (V, E)
    x_emb = embed[x_ids]                                         # (B, L, E)  gather (XLA glue)
    B, L, E = x_emb.shape
    # time-major, flattened to (L*B, E) so the kernel needs no reshapes
    x2d = jnp.transpose(x_emb, (1, 0, 2)).reshape(L * B, E).astype(jnp.bfloat16)

    w_ih = params["w_ih_rev"]                                    # (3H, E) torch layout
    w_hh = params["w_hh_rev"]                                    # (3H, H)
    b_ih = params["b_ih_rev"]                                    # (3H,)
    b_hh = params["b_hh_rev"]                                    # (3H,)
    H = w_hh.shape[1]
    H3 = 3 * H
    Hp = ((H3 + 127) // 128) * 128                               # pad gate axis to lane-dense 128

    # fused, gate-concatenated (in_dim, 3H) weights, zero-padded, bf16 for the MXU
    w_i = jnp.concatenate([w_ih[0:H].T, w_ih[H:2 * H].T, w_ih[2 * H:H3].T], axis=1)   # (E, 3H)
    w_h = jnp.concatenate([w_hh[0:H].T, w_hh[H:2 * H].T, w_hh[2 * H:H3].T], axis=1)   # (H, 3H)
    w_i = jnp.pad(w_i, ((0, 0), (0, Hp - H3))).astype(jnp.bfloat16)
    w_h = jnp.pad(w_h, ((0, 0), (0, Hp - H3))).astype(jnp.bfloat16)

    b_i = jnp.concatenate([b_ih[0:H] + b_hh[0:H],
                           b_ih[H:2 * H] + b_hh[H:2 * H],
                           b_ih[2 * H:H3]])
    b_hn_only = jnp.concatenate([jnp.zeros((2 * H,), jnp.float32), b_hh[2 * H:H3]])
    b_i = jnp.pad(b_i, (0, Hp - H3)).reshape(1, Hp).astype(jnp.float32)
    b_hn_only = jnp.pad(b_hn_only, (0, Hp - H3)).reshape(1, Hp).astype(jnp.float32)

    fc_w = params["fc_w"].reshape(L).astype(jnp.float32)         # Linear(seq_len, 1)
    fc_b = params["fc_b"].reshape(1).astype(jnp.float32)
    label2 = label.astype(jnp.float32).reshape(B, 1)

    vmem = pl.BlockSpec(memory_space=pltpu.MemorySpace.VMEM)
    smem = pl.BlockSpec(memory_space=pltpu.MemorySpace.SMEM)

    loss, probs = pl.pallas_call(
        _sent_rnn_kernel,
        out_shape=(jax.ShapeDtypeStruct((1, 1), jnp.float32),
                   jax.ShapeDtypeStruct((B, 1), jnp.float32)),
        in_specs=[vmem, vmem, vmem, vmem, vmem, vmem, smem, smem],
        out_specs=(vmem, vmem),
        scratch_shapes=[pltpu.VMEM((L * B, Hp), jnp.float32)],
    )(x2d, w_i, w_h, b_i, b_hn_only, label2, fc_w, fc_b)
    return loss[0, 0], probs


def ref_forward(x_ids, label, params):
    """Pure-JAX f32 reference of SentRNN.forward (reverse GRU direction)."""
    x_emb = params["embed"][x_ids].astype(jnp.float32)           # (B, L, E)
    B, L, _ = x_emb.shape
    w_ih, w_hh = params["w_ih_rev"], params["w_hh_rev"]
    b_ih, b_hh = params["b_ih_rev"], params["b_hh_rev"]
    H = w_hh.shape[1]
    h = jnp.zeros((B, H), jnp.float32)
    feats = [None] * L
    for t in range(L - 1, -1, -1):
        x_t = x_emb[:, t, :]
        gx = x_t @ w_ih.T + b_ih
        gh = h @ w_hh.T + b_hh
        r = jax.nn.sigmoid(gx[:, :H] + gh[:, :H])
        z = jax.nn.sigmoid(gx[:, H:2 * H] + gh[:, H:2 * H])
        n = jnp.tanh(gx[:, 2 * H:] + r * gh[:, 2 * H:])
        h = (1.0 - z) * n + z * h
        feats[t] = h[:, H - 1]
    feat = jnp.stack(feats, axis=1)                              # == gru_out[:, :, -1]
    logits = feat @ params["fc_w"].T + params["fc_b"]            # (B, 1)
    p = jax.nn.sigmoid(logits)
    lab = jnp.maximum(label.astype(jnp.float32), 0.0)
    log_p = jnp.maximum(jnp.log(p[:, 0]), -100.0)
    log_1mp = jnp.maximum(jnp.log(1.0 - p[:, 0]), -100.0)
    loss = jnp.mean(-(lab * log_p + (1.0 - lab) * log_1mp))
    return loss, p


def init_params(key, vocab, E, L, H):
    ks = jax.random.split(key, 7)
    s = 1.0 / jnp.sqrt(H)
    sl = 1.0 / jnp.sqrt(L)
    return dict(
        embed=jax.random.normal(ks[0], (vocab, E), jnp.float32),
        # reverse-direction GRU params (forward direction never reaches the loss)
        w_ih_rev=jax.random.uniform(ks[1], (3 * H, E), jnp.float32, -s, s),
        w_hh_rev=jax.random.uniform(ks[2], (3 * H, H), jnp.float32, -s, s),
        b_ih_rev=jax.random.uniform(ks[3], (3 * H,), jnp.float32, -s, s),
        b_hh_rev=jax.random.uniform(ks[4], (3 * H,), jnp.float32, -s, s),
        fc_w=jax.random.uniform(ks[5], (1, L), jnp.float32, -sl, sl),
        fc_b=jax.random.uniform(ks[6], (1,), jnp.float32, -sl, sl),
    )


if __name__ == "__main__":
    # batch is pinned to 32 by the module (self.hidden_state = zeros(2, 32, E));
    # GRU hidden size == embed_dim_out, so H == E.
    B, L, E, H, V = 32, 16, 32, 32, 8
    key = jax.random.PRNGKey(0)
    kp, kx, kl = jax.random.split(key, 3)
    params = init_params(kp, V, E, L, H)
    x_ids = jax.random.randint(kx, (B, L), 0, V, dtype=jnp.int32)
    # labels in {-1, 0, 1} to also exercise the label[label < 0] = 0 clamp
    label = jax.random.randint(kl, (B,), -1, 2, dtype=jnp.int32).astype(jnp.float32)

    loss, probs = sent_rnn_forward(x_ids, label, params)
    jax.block_until_ready((loss, probs))

    ref_loss, ref_probs = ref_forward(x_ids, label, params)
    # bf16 matmul inputs (f32 accumulation) -> relaxed tolerance vs f32 reference
    assert jnp.allclose(loss, ref_loss, atol=1e-2, rtol=1e-2), (loss, ref_loss)
    assert jnp.allclose(probs, ref_probs, atol=1e-2, rtol=1e-2)
    print("KERNEL_OK")
</pallas_src>

<mosaic_0001>
module attributes {stable_mosaic.version = 11 : i64} {
  func.func @_sent_rnn_kernel(%arg0: memref<512x32xbf16, #tpu.memory_space<vmem>>, %arg1: memref<32x128xbf16, #tpu.memory_space<vmem>>, %arg2: memref<32x128xbf16, #tpu.memory_space<vmem>>, %arg3: memref<1x128xf32, #tpu.memory_space<vmem>>, %arg4: memref<1x128xf32, #tpu.memory_space<vmem>>, %arg5: memref<32x1xf32, #tpu.memory_space<vmem>>, %arg6: memref<16xf32, #tpu.memory_space<smem>>, %arg7: memref<1xf32, #tpu.memory_space<smem>>, %arg8: memref<1x1xf32, #tpu.memory_space<vmem>>, %arg9: memref<32x1xf32, #tpu.memory_space<vmem>>, %arg10: memref<512x128xf32, #tpu.memory_space<vmem>>) attributes {dimension_semantics = [], scalar_prefetch = 0 : i64, scratch_operands = 1 : i64, tpu.core_type = #tpu.core_type<tc>} {
    %c0 = arith.constant 0 : index
    %c0_0 = arith.constant 0 : index
    %0 = vector.load %arg0[%c0, %c0_0] : memref<512x32xbf16, #tpu.memory_space<vmem>>, vector<512x32xbf16>
    %c0_1 = arith.constant 0 : index
    %c0_2 = arith.constant 0 : index
    %1 = vector.load %arg1[%c0_1, %c0_2] : memref<32x128xbf16, #tpu.memory_space<vmem>>, vector<32x128xbf16>
    %cst = arith.constant dense<0.000000e+00> : vector<512x128xf32>
    %2 = tpu.matmul %0, %1, %cst {dimension_numbers = #tpu.dot_dimension_numbers<[1], [0], [0], [1], [0, 0, 1, 1], [], []>} : vector<512x32xbf16>, vector<32x128xbf16>, vector<512x128xf32> -> vector<512x128xf32>
    %c0_3 = arith.constant 0 : index
    %c0_4 = arith.constant 0 : index
    %3 = vector.load %arg3[%c0_3, %c0_4] : memref<1x128xf32, #tpu.memory_space<vmem>>, vector<1x128xf32>
    %4 = vector.broadcast %3 : vector<1x128xf32> to vector<512x128xf32>
    %5 = arith.addf %2, %4 : vector<512x128xf32>
    %c0_5 = arith.constant 0 : index
    %c0_6 = arith.constant 0 : index
    %6 = vector.load %arg10[%c0_5, %c0_6] : memref<512x128xf32, #tpu.memory_space<vmem>>, vector<512x128xf32>
    tpu.vector_store %arg10[%c0_5, %c0_6], %5 {strides = array<i32>} : memref<512x128xf32, #tpu.memory_space<vmem>>, vector<512x128xf32>,
    %c0_7 = arith.constant 0 : index
    %c0_8 = arith.constant 0 : index
    %7 = vector.load %arg2[%c0_7, %c0_8] : memref<32x128xbf16, #tpu.memory_space<vmem>>, vector<32x128xbf16>
    %c0_9 = arith.constant 0 : index
    %c0_10 = arith.constant 0 : index
    %8 = vector.load %arg4[%c0_9, %c0_10] : memref<1x128xf32, #tpu.memory_space<vmem>>, vector<1x128xf32>
    %cst_11 = arith.constant 0.000000e+00 : f32
    %9 = vector.broadcast %cst_11 : f32 to vector<32x32xf32>
    %cst_12 = arith.constant 0.000000e+00 : f32
    %10 = vector.broadcast %cst_12 : f32 to vector<32x32xf32>
    %c480 = arith.constant 480 : index
    %c0_13 = arith.constant 0 : index
    %11 = vector.load %arg10[%c480, %c0_13] : memref<512x128xf32, #tpu.memory_space<vmem>>, vector<32x128xf32>
    %12 = arith.truncf %9 : vector<32x32xf32> to vector<32x32xbf16>
    %cst_14 = arith.constant dense<0.000000e+00> : vector<32x128xf32>
    %13 = tpu.matmul %12, %7, %cst_14 {dimension_numbers = #tpu.dot_dimension_numbers<[1], [0], [0], [1], [0, 0, 1, 1], [], []>} : vector<32x32xbf16>, vector<32x128xbf16>, vector<32x128xf32> -> vector<32x128xf32>
    %14 = vector.broadcast %8 : vector<1x128xf32> to vector<32x128xf32>
    %15 = arith.addf %13, %14 : vector<32x128xf32>
    %16 = vector.extract_strided_slice %11 {offsets = [0, 0], sizes = [32, 64], strides = [1, 1]} : vector<32x128xf32> to vector<32x64xf32>
    %17 = vector.extract_strided_slice %15 {offsets = [0, 0], sizes = [32, 64], strides = [1, 1]} : vector<32x128xf32> to vector<32x64xf32>
    %18 = arith.addf %16, %17 : vector<32x64xf32>
    %19 = arith.negf %18 : vector<32x64xf32>
    %20 = math.exp %19 : vector<32x64xf32>
    %cst_15 = arith.constant 1.000000e+00 : f32
    %21 = vector.broadcast %cst_15 : f32 to vector<32x64xf32>
    %22 = arith.addf %21, %20 : vector<32x64xf32>
    %23 = arith.divf %21, %22 : vector<32x64xf32>
    %24 = vector.extract_strided_slice %23 {offsets = [0, 0], sizes = [32, 32], strides = [1, 1]} : vector<32x64xf32> to vector<32x32xf32>
    %25 = vector.extract_strided_slice %23 {offsets = [0, 32], sizes = [32, 32], strides = [1, 1]} : vector<32x64xf32> to vector<32x32xf32>
    %26 = vector.extract_strided_slice %11 {offsets = [0, 64], sizes = [32, 32], strides = [1, 1]} : vector<32x128xf32> to vector<32x32xf32>
    %27 = vector.extract_strided_slice %15 {offsets = [0, 64], sizes = [32, 32], strides = [1, 1]} : vector<32x128xf32> to vector<32x32xf32>
    %28 = arith.mulf %24, %27 : vector<32x32xf32>
    %29 = arith.addf %26, %28 : vector<32x32xf32>
    %30 = math.tanh %29 : vector<32x32xf32>
    %cst_16 = arith.constant 1.000000e+00 : f32
    %31 = vector.broadcast %cst_16 : f32 to vector<32x32xf32>
    %32 = arith.subf %31, %25 : vector<32x32xf32>
    %33 = arith.mulf %32, %30 : vector<32x32xf32>
    %34 = arith.mulf %25, %9 : vector<32x32xf32>
    %35 = arith.addf %33, %34 : vector<32x32xf32>
    %c15 = arith.constant 15 : index
    %36 = memref.load %arg6[%c15] : memref<16xf32, #tpu.memory_space<smem>>
    %37 = vector.broadcast %36 : f32 to vector<32x32xf32>
    %38 = arith.mulf %35, %37 : vector<32x32xf32>
    %39 = arith.addf %10, %38 : vector<32x32xf32>
    %c448 = arith.constant 448 : index
    %c0_17 = arith.constant 0 : index
    %40 = vector.load %arg10[%c448, %c0_17] : memref<512x128xf32, #tpu.memory_space<vmem>>, vector<32x128xf32>
    %41 = arith.truncf %35 : vector<32x32xf32> to vector<32x32xbf16>
    %cst_18 = arith.constant dense<0.000000e+00> : vector<32x128xf32>
    %42 = tpu.matmul %41, %7, %cst_18 {dimension_numbers = #tpu.dot_dimension_numbers<[1], [0], [0], [1], [0, 0, 1, 1], [], []>} : vector<32x32xbf16>, vector<32x128xbf16>, vector<32x128xf32> -> vector<32x128xf32>
    %43 = vector.broadcast %8 : vector<1x128xf32> to vector<32x128xf32>
    %44 = arith.addf %42, %43 : vector<32x128xf32>
    %45 = vector.extract_strided_slice %40 {offsets = [0, 0], sizes = [32, 64], strides = [1, 1]} : vector<32x128xf32> to vector<32x64xf32>
    %46 = vector.extract_strided_slice %44 {offsets = [0, 0], sizes = [32, 64], strides = [1, 1]} : vector<32x128xf32> to vector<32x64xf32>
    %47 = arith.addf %45, %46 : vector<32x64xf32>
    %48 = arith.negf %47 : vector<32x64xf32>
    %49 = math.exp %48 : vector<32x64xf32>
    %cst_19 = arith.constant 1.000000e+00 : f32
    %50 = vector.broadcast %cst_19 : f32 to vector<32x64xf32>
    %51 = arith.addf %50, %49 : vector<32x64xf32>
    %52 = arith.divf %50, %51 : vector<32x64xf32>
    %53 = vector.extract_strided_slice %52 {offsets = [0, 0], sizes = [32, 32], strides = [1, 1]} : vector<32x64xf32> to vector<32x32xf32>
    %54 = vector.extract_strided_slice %52 {offsets = [0, 32], sizes = [32, 32], strides = [1, 1]} : vector<32x64xf32> to vector<32x32xf32>
    %55 = vector.extract_strided_slice %40 {offsets = [0, 64], sizes = [32, 32], strides = [1, 1]} : vector<32x128xf32> to vector<32x32xf32>
    %56 = vector.extract_strided_slice %44 {offsets = [0, 64], sizes = [32, 32], strides = [1, 1]} : vector<32x128xf32> to vector<32x32xf32>
    %57 = arith.mulf %53, %56 : vector<32x32xf32>
    %58 = arith.addf %55, %57 : vector<32x32xf32>
    %59 = math.tanh %58 : vector<32x32xf32>
    %cst_20 = arith.constant 1.000000e+00 : f32
    %60 = vector.broadcast %cst_20 : f32 to vector<32x32xf32>
    %61 = arith.subf %60, %54 : vector<32x32xf32>
    %62 = arith.mulf %61, %59 : vector<32x32xf32>
    %63 = arith.mulf %54, %35 : vector<32x32xf32>
    %64 = arith.addf %62, %63 : vector<32x32xf32>
    %c14 = arith.constant 14 : index
    %65 = memref.load %arg6[%c14] : memref<16xf32, #tpu.memory_space<smem>>
    %66 = vector.broadcast %65 : f32 to vector<32x32xf32>
    %67 = arith.mulf %64, %66 : vector<32x32xf32>
    %68 = arith.addf %39, %67 : vector<32x32xf32>
    %c416 = arith.constant 416 : index
    %c0_21 = arith.constant 0 : index
    %69 = vector.load %arg10[%c416, %c0_21] : memref<512x128xf32, #tpu.memory_space<vmem>>, vector<32x128xf32>
    %70 = arith.truncf %64 : vector<32x32xf32> to vector<32x32xbf16>
    %cst_22 = arith.constant dense<0.000000e+00> : vector<32x128xf32>
    %71 = tpu.matmul %70, %7, %cst_22 {dimension_numbers = #tpu.dot_dimension_numbers<[1], [0], [0], [1], [0, 0, 1, 1], [], []>} : vector<32x32xbf16>, vector<32x128xbf16>, vector<32x128xf32> -> vector<32x128xf32>
    %72 = vector.broadcast %8 : vector<1x128xf32> to vector<32x128xf32>
    %73 = arith.addf %71, %72 : vector<32x128xf32>
    %74 = vector.extract_strided_slice %69 {offsets = [0, 0], sizes = [32, 64], strides = [1, 1]} : vector<32x128xf32> to vector<32x64xf32>
    %75 = vector.extract_strided_slice %73 {offsets = [0, 0], sizes = [32, 64], strides = [1, 1]} : vector<32x128xf32> to vector<32x64xf32>
    %76 = arith.addf %74, %75 : vector<32x64xf32>
    %77 = arith.negf %76 : vector<32x64xf32>
    %78 = math.exp %77 : vector<32x64xf32>
    %cst_23 = arith.constant 1.000000e+00 : f32
    %79 = vector.broadcast %cst_23 : f32 to vector<32x64xf32>
    %80 = arith.addf %79, %78 : vector<32x64xf32>
    %81 = arith.divf %79, %80 : vector<32x64xf32>
    %82 = vector.extract_strided_slice %81 {offsets = [0, 0], sizes = [32, 32], strides = [1, 1]} : vector<32x64xf32> to vector<32x32xf32>
    %83 = vector.extract_strided_slice %81 {offsets = [0, 32], sizes = [32, 32], strides = [1, 1]} : vector<32x64xf32> to vector<32x32xf32>
    %84 = vector.extract_strided_slice %69 {offsets = [0, 64], sizes = [32, 32], strides = [1, 1]} : vector<32x128xf32> to vector<32x32xf32>
    %85 = vector.extract_strided_slice %73 {offsets = [0, 64], sizes = [32, 32], strides = [1, 1]} : vector<32x128xf32> to vector<32x32xf32>
    %86 = arith.mulf %82, %85 : vector<32x32xf32>
    %87 = arith.addf %84, %86 : vector<32x32xf32>
    %88 = math.tanh %87 : vector<32x32xf32>
    %cst_24 = arith.constant 1.000000e+00 : f32
    %89 = vector.broadcast %cst_24 : f32 to vector<32x32xf32>
    %90 = arith.subf %89, %83 : vector<32x32xf32>
    %91 = arith.mulf %90, %88 : vector<32x32xf32>
    %92 = arith.mulf %83, %64 : vector<32x32xf32>
    %93 = arith.addf %91, %92 : vector<32x32xf32>
    %c13 = arith.constant 13 : index
    %94 = memref.load %arg6[%c13] : memref<16xf32, #tpu.memory_space<smem>>
    %95 = vector.broadcast %94 : f32 to vector<32x32xf32>
    %96 = arith.mulf %93, %95 : vector<32x32xf32>
    %97 = arith.addf %68, %96 : vector<32x32xf32>
    %c384 = arith.constant 384 : index
    %c0_25 = arith.constant 0 : index
    %98 = vector.load %arg10[%c384, %c0_25] : memref<512x128xf32, #tpu.memory_space<vmem>>, vector<32x128xf32>
    %99 = arith.truncf %93 : vector<32x32xf32> to vector<32x32xbf16>
    %cst_26 = arith.constant dense<0.000000e+00> : vector<32x128xf32>
    %100 = tpu.matmul %99, %7, %cst_26 {dimension_numbers = #tpu.dot_dimension_numbers<[1], [0], [0], [1], [0, 0, 1, 1], [], []>} : vector<32x32xbf16>, vector<32x128xbf16>, vector<32x128xf32> -> vector<32x128xf32>
    %101 = vector.broadcast %8 : vector<1x128xf32> to vector<32x128xf32>
    %102 = arith.addf %100, %101 : vector<32x128xf32>
    %103 = vector.extract_strided_slice %98 {offsets = [0, 0], sizes = [32, 64], strides = [1, 1]} : vector<32x128xf32> to vector<32x64xf32>
    %104 = vector.extract_strided_slice %102 {offsets = [0, 0], sizes = [32, 64], strides = [1, 1]} : vector<32x128xf32> to vector<32x64xf32>
    %105 = arith.addf %103, %104 : vector<32x64xf32>
    %106 = arith.negf %105 : vector<32x64xf32>
    %107 = math.exp %106 : vector<32x64xf32>
    %cst_27 = arith.constant 1.000000e+00 : f32
    %108 = vector.broadcast %cst_27 : f32 to vector<32x64xf32>
    %109 = arith.addf %108, %107 : vector<32x64xf32>
    %110 = arith.divf %108, %109 : vector<32x64xf32>
    %111 = vector.extract_strided_slice %110 {offsets = [0, 0], sizes = [32, 32], strides = [1, 1]} : vector<32x64xf32> to vector<32x32xf32>
    %112 = vector.extract_strided_slice %110 {offsets = [0, 32], sizes = [32, 32], strides = [1, 1]} : vector<32x64xf32> to vector<32x32xf32>
    %113 = vector.extract_strided_slice %98 {offsets = [0, 64], sizes = [32, 32], strides = [1, 1]} : vector<32x128xf32> to vector<32x32xf32>
    %114 = vector.extract_strided_slice %102 {offsets = [0, 64], sizes = [32, 32], strides = [1, 1]} : vector<32x128xf32> to vector<32x32xf32>
    %115 = arith.mulf %111, %114 : vector<32x32xf32>
    %116 = arith.addf %113, %115 : vector<32x32xf32>
    %117 = math.tanh %116 : vector<32x32xf32>
    %cst_28 = arith.constant 1.000000e+00 : f32
    %118 = vector.broadcast %cst_28 : f32 to vector<32x32xf32>
    %119 = arith.subf %118, %112 : vector<32x32xf32>
    %120 = arith.mulf %119, %117 : vector<32x32xf32>
    %121 = arith.mulf %112, %93 : vector<32x32xf32>
    %122 = arith.addf %120, %121 : vector<32x32xf32>
    %c12 = arith.constant 12 : index
    %123 = memref.load %arg6[%c12] : memref<16xf32, #tpu.memory_space<smem>>
    %124 = vector.broadcast %123 : f32 to vector<32x32xf32>
    %125 = arith.mulf %122, %124 : vector<32x32xf32>
    %126 = arith.addf %97, %125 : vector<32x32xf32>
    %c352 = arith.constant 352 : index
    %c0_29 = arith.constant 0 : index
    %127 = vector.load %arg10[%c352, %c0_29] : memref<512x128xf32, #tpu.memory_space<vmem>>, vector<32x128xf32>
    %128 = arith.truncf %122 : vector<32x32xf32> to vector<32x32xbf16>
    %cst_30 = arith.constant dense<0.000000e+00> : vector<32x128xf32>
    %129 = tpu.matmul %128, %7, %cst_30 {dimension_numbers = #tpu.dot_dimension_numbers<[1], [0], [0], [1], [0, 0, 1, 1], [], []>} : vector<32x32xbf16>, vector<32x128xbf16>, vector<32x128xf32> -> vector<32x128xf32>
    %130 = vector.broadcast %8 : vector<1x128xf32> to vector<32x128xf32>
    %131 = arith.addf %129, %130 : vector<32x128xf32>
    %132 = vector.extract_strided_slice %127 {offsets = [0, 0], sizes = [32, 64], strides = [1, 1]} : vector<32x128xf32> to vector<32x64xf32>
    %133 = vector.extract_strided_slice %131 {offsets = [0, 0], sizes = [32, 64], strides = [1, 1]} : vector<32x128xf32> to vector<32x64xf32>
    %134 = arith.addf %132, %133 : vector<32x64xf32>
    %135 = arith.negf %134 : vector<32x64xf32>
    %136 = math.exp %135 : vector<32x64xf32>
    %cst_31 = arith.constant 1.000000e+00 : f32
    %137 = vector.broadcast %cst_31 : f32 to vector<32x64xf32>
    %138 = arith.addf %137, %136 : vector<32x64xf32>
    %139 = arith.divf %137, %138 : vector<32x64xf32>
    %140 = vector.extract_strided_slice %139 {offsets = [0, 0], sizes = [32, 32], strides = [1, 1]} : vector<32x64xf32> to vector<32x32xf32>
    %141 = vector.extract_strided_slice %139 {offsets = [0, 32], sizes = [32, 32], strides = [1, 1]} : vector<32x64xf32> to vector<32x32xf32>
    %142 = vector.extract_strided_slice %127 {offsets = [0, 64], sizes = [32, 32], strides = [1, 1]} : vector<32x128xf32> to vector<32x32xf32>
    %143 = vector.extract_strided_slice %131 {offsets = [0, 64], sizes = [32, 32], strides = [1, 1]} : vector<32x128xf32> to vector<32x32xf32>
    %144 = arith.mulf %140, %143 : vector<32x32xf32>
    %145 = arith.addf %142, %144 : vector<32x32xf32>
    %146 = math.tanh %145 : vector<32x32xf32>
    %cst_32 = arith.constant 1.000000e+00 : f32
    %147 = vector.broadcast %cst_32 : f32 to vector<32x32xf32>
    %148 = arith.subf %147, %141 : vector<32x32xf32>
    %149 = arith.mulf %148, %146 : vector<32x32xf32>
    %150 = arith.mulf %141, %122 : vector<32x32xf32>
    %151 = arith.addf %149, %150 : vector<32x32xf32>
    %c11 = arith.constant 11 : index
    %152 = memref.load %arg6[%c11] : memref<16xf32, #tpu.memory_space<smem>>
    %153 = vector.broadcast %152 : f32 to vector<32x32xf32>
    %154 = arith.mulf %151, %153 : vector<32x32xf32>
    %155 = arith.addf %126, %154 : vector<32x32xf32>
    %c320 = arith.constant 320 : index
    %c0_33 = arith.constant 0 : index
    %156 = vector.load %arg10[%c320, %c0_33] : memref<512x128xf32, #tpu.memory_space<vmem>>, vector<32x128xf32>
    %157 = arith.truncf %151 : vector<32x32xf32> to vector<32x32xbf16>
    %cst_34 = arith.constant dense<0.000000e+00> : vector<32x128xf32>
    %158 = tpu.matmul %157, %7, %cst_34 {dimension_numbers = #tpu.dot_dimension_numbers<[1], [0], [0], [1], [0, 0, 1, 1], [], []>} : vector<32x32xbf16>, vector<32x128xbf16>, vector<32x128xf32> -> vector<32x128xf32>
    %159 = vector.broadcast %8 : vector<1x128xf32> to vector<32x128xf32>
    %160 = arith.addf %158, %159 : vector<32x128xf32>
    %161 = vector.extract_strided_slice %156 {offsets = [0, 0], sizes = [32, 64], strides = [1, 1]} : vector<32x128xf32> to vector<32x64xf32>
    %162 = vector.extract_strided_slice %160 {offsets = [0, 0], sizes = [32, 64], strides = [1, 1]} : vector<32x128xf32> to vector<32x64xf32>
    %163 = arith.addf %161, %162 : vector<32x64xf32>
    %164 = arith.negf %163 : vector<32x64xf32>
    %165 = math.exp %164 : vector<32x64xf32>
    %cst_35 = arith.constant 1.000000e+00 : f32
    %166 = vector.broadcast %cst_35 : f32 to vector<32x64xf32>
    %167 = arith.addf %166, %165 : vector<32x64xf32>
    %168 = arith.divf %166, %167 : vector<32x64xf32>
    %169 = vector.extract_strided_slice %168 {offsets = [0, 0], sizes = [32, 32], strides = [1, 1]} : vector<32x64xf32> to vector<32x32xf32>
    %170 = vector.extract_strided_slice %168 {offsets = [0, 32], sizes = [32, 32], strides = [1, 1]} : vector<32x64xf32> to vector<32x32xf32>
    %171 = vector.extract_strided_slice %156 {offsets = [0, 64], sizes = [32, 32], strides = [1, 1]} : vector<32x128xf32> to vector<32x32xf32>
    %172 = vector.extract_strided_slice %160 {offsets = [0, 64], sizes = [32, 32], strides = [1, 1]} : vector<32x128xf32> to vector<32x32xf32>
    %173 = arith.mulf %169, %172 : vector<32x32xf32>
    %174 = arith.addf %171, %173 : vector<32x32xf32>
    %175 = math.tanh %174 : vector<32x32xf32>
    %cst_36 = arith.constant 1.000000e+00 : f32
    %176 = vector.broadcast %cst_36 : f32 to vector<32x32xf32>
    %177 = arith.subf %176, %170 : vector<32x32xf32>
    %178 = arith.mulf %177, %175 : vector<32x32xf32>
    %179 = arith.mulf %170, %151 : vector<32x32xf32>
    %180 = arith.addf %178, %179 : vector<32x32xf32>
    %c10 = arith.constant 10 : index
    %181 = memref.load %arg6[%c10] : memref<16xf32, #tpu.memory_space<smem>>
    %182 = vector.broadcast %181 : f32 to vector<32x32xf32>
    %183 = arith.mulf %180, %182 : vector<32x32xf32>
    %184 = arith.addf %155, %183 : vector<32x32xf32>
    %c288 = arith.constant 288 : index
    %c0_37 = arith.constant 0 : index
    %185 = vector.load %arg10[%c288, %c0_37] : memref<512x128xf32, #tpu.memory_space<vmem>>, vector<32x128xf32>
    %186 = arith.truncf %180 : vector<32x32xf32> to vector<32x32xbf16>
    %cst_38 = arith.constant dense<0.000000e+00> : vector<32x128xf32>
    %187 = tpu.matmul %186, %7, %cst_38 {dimension_numbers = #tpu.dot_dimension_numbers<[1], [0], [0], [1], [0, 0, 1, 1], [], []>} : vector<32x32xbf16>, vector<32x128xbf16>, vector<32x128xf32> -> vector<32x128xf32>
    %188 = vector.broadcast %8 : vector<1x128xf32> to vector<32x128xf32>
    %189 = arith.addf %187, %188 : vector<32x128xf32>
    %190 = vector.extract_strided_slice %185 {offsets = [0, 0], sizes = [32, 64], strides = [1, 1]} : vector<32x128xf32> to vector<32x64xf32>
    %191 = vector.extract_strided_slice %189 {offsets = [0, 0], sizes = [32, 64], strides = [1, 1]} : vector<32x128xf32> to vector<32x64xf32>
    %192 = arith.addf %190, %191 : vector<32x64xf32>
    %193 = arith.negf %192 : vector<32x64xf32>
    %194 = math.exp %193 : vector<32x64xf32>
    %cst_39 = arith.constant 1.000000e+00 : f32
    %195 = vector.broadcast %cst_39 : f32 to vector<32x64xf32>
    %196 = arith.addf %195, %194 : vector<32x64xf32>
    %197 = arith.divf %195, %196 : vector<32x64xf32>
    %198 = vector.extract_strided_slice %197 {offsets = [0, 0], sizes = [32, 32], strides = [1, 1]} : vector<32x64xf32> to vector<32x32xf32>
    %199 = vector.extract_strided_slice %197 {offsets = [0, 32], sizes = [32, 32], strides = [1, 1]} : vector<32x64xf32> to vector<32x32xf32>
    %200 = vector.extract_strided_slice %185 {offsets = [0, 64], sizes = [32, 32], strides = [1, 1]} : vector<32x128xf32> to vector<32x32xf32>
    %201 = vector.extract_strided_slice %189 {offsets = [0, 64], sizes = [32, 32], strides = [1, 1]} : vector<32x128xf32> to vector<32x32xf32>
    %202 = arith.mulf %198, %201 : vector<32x32xf32>
    %203 = arith.addf %200, %202 : vector<32x32xf32>
    %204 = math.tanh %203 : vector<32x32xf32>
    %cst_40 = arith.constant 1.000000e+00 : f32
    %205 = vector.broadcast %cst_40 : f32 to vector<32x32xf32>
    %206 = arith.subf %205, %199 : vector<32x32xf32>
    %207 = arith.mulf %206, %204 : vector<32x32xf32>
    %208 = arith.mulf %199, %180 : vector<32x32xf32>
    %209 = arith.addf %207, %208 : vector<32x32xf32>
    %c9 = arith.constant 9 : index
    %210 = memref.load %arg6[%c9] : memref<16xf32, #tpu.memory_space<smem>>
    %211 = vector.broadcast %210 : f32 to vector<32x32xf32>
    %212 = arith.mulf %209, %211 : vector<32x32xf32>
    %213 = arith.addf %184, %212 : vector<32x32xf32>
    %c256 = arith.constant 256 : index
    %c0_41 = arith.constant 0 : index
    %214 = vector.load %arg10[%c256, %c0_41] : memref<512x128xf32, #tpu.memory_space<vmem>>, vector<32x128xf32>
    %215 = arith.truncf %209 : vector<32x32xf32> to vector<32x32xbf16>
    %cst_42 = arith.constant dense<0.000000e+00> : vector<32x128xf32>
    %216 = tpu.matmul %215, %7, %cst_42 {dimension_numbers = #tpu.dot_dimension_numbers<[1], [0], [0], [1], [0, 0, 1, 1], [], []>} : vector<32x32xbf16>, vector<32x128xbf16>, vector<32x128xf32> -> vector<32x128xf32>
    %217 = vector.broadcast %8 : vector<1x128xf32> to vector<32x128xf32>
    %218 = arith.addf %216, %217 : vector<32x128xf32>
    %219 = vector.extract_strided_slice %214 {offsets = [0, 0], sizes = [32, 64], strides = [1, 1]} : vector<32x128xf32> to vector<32x64xf32>
    %220 = vector.extract_strided_slice %218 {offsets = [0, 0], sizes = [32, 64], strides = [1, 1]} : vector<32x128xf32> to vector<32x64xf32>
    %221 = arith.addf %219, %220 : vector<32x64xf32>
    %222 = arith.negf %221 : vector<32x64xf32>
    %223 = math.exp %222 : vector<32x64xf32>
    %cst_43 = arith.constant 1.000000e+00 : f32
    %224 = vector.broadcast %cst_43 : f32 to vector<32x64xf32>
    %225 = arith.addf %224, %223 : vector<32x64xf32>
    %226 = arith.divf %224, %225 : vector<32x64xf32>
    %227 = vector.extract_strided_slice %226 {offsets = [0, 0], sizes = [32, 32], strides = [1, 1]} : vector<32x64xf32> to vector<32x32xf32>
    %228 = vector.extract_strided_slice %226 {offsets = [0, 32], sizes = [32, 32], strides = [1, 1]} : vector<32x64xf32> to vector<32x32xf32>
    %229 = vector.extract_strided_slice %214 {offsets = [0, 64], sizes = [32, 32], strides = [1, 1]} : vector<32x128xf32> to vector<32x32xf32>
    %230 = vector.extract_strided_slice %218 {offsets = [0, 64], sizes = [32, 32], strides = [1, 1]} : vector<32x128xf32> to vector<32x32xf32>
    %231 = arith.mulf %227, %230 : vector<32x32xf32>
    %232 = arith.addf %229, %231 : vector<32x32xf32>
    %233 = math.tanh %232 : vector<32x32xf32>
    %cst_44 = arith.constant 1.000000e+00 : f32
    %234 = vector.broadcast %cst_44 : f32 to vector<32x32xf32>
    %235 = arith.subf %234, %228 : vector<32x32xf32>
    %236 = arith.mulf %235, %233 : vector<32x32xf32>
    %237 = arith.mulf %228, %209 : vector<32x32xf32>
    %238 = arith.addf %236, %237 : vector<32x32xf32>
    %c8 = arith.constant 8 : index
    %239 = memref.load %arg6[%c8] : memref<16xf32, #tpu.memory_space<smem>>
    %240 = vector.broadcast %239 : f32 to vector<32x32xf32>
    %241 = arith.mulf %238, %240 : vector<32x32xf32>
    %242 = arith.addf %213, %241 : vector<32x32xf32>
    %c224 = arith.constant 224 : index
    %c0_45 = arith.constant 0 : index
    %243 = vector.load %arg10[%c224, %c0_45] : memref<512x128xf32, #tpu.memory_space<vmem>>, vector<32x128xf32>
    %244 = arith.truncf %238 : vector<32x32xf32> to vector<32x32xbf16>
    %cst_46 = arith.constant dense<0.000000e+00> : vector<32x128xf32>
    %245 = tpu.matmul %244, %7, %cst_46 {dimension_numbers = #tpu.dot_dimension_numbers<[1], [0], [0], [1], [0, 0, 1, 1], [], []>} : vector<32x32xbf16>, vector<32x128xbf16>, vector<32x128xf32> -> vector<32x128xf32>
    %246 = vector.broadcast %8 : vector<1x128xf32> to vector<32x128xf32>
    %247 = arith.addf %245, %246 : vector<32x128xf32>
    %248 = vector.extract_strided_slice %243 {offsets = [0, 0], sizes = [32, 64], strides = [1, 1]} : vector<32x128xf32> to vector<32x64xf32>
    %249 = vector.extract_strided_slice %247 {offsets = [0, 0], sizes = [32, 64], strides = [1, 1]} : vector<32x128xf32> to vector<32x64xf32>
    %250 = arith.addf %248, %249 : vector<32x64xf32>
    %251 = arith.negf %250 : vector<32x64xf32>
    %252 = math.exp %251 : vector<32x64xf32>
    %cst_47 = arith.constant 1.000000e+00 : f32
    %253 = vector.broadcast %cst_47 : f32 to vector<32x64xf32>
    %254 = arith.addf %253, %252 : vector<32x64xf32>
    %255 = arith.divf %253, %254 : vector<32x64xf32>
    %256 = vector.extract_strided_slice %255 {offsets = [0, 0], sizes = [32, 32], strides = [1, 1]} : vector<32x64xf32> to vector<32x32xf32>
    %257 = vector.extract_strided_slice %255 {offsets = [0, 32], sizes = [32, 32], strides = [1, 1]} : vector<32x64xf32> to vector<32x32xf32>
    %258 = vector.extract_strided_slice %243 {offsets = [0, 64], sizes = [32, 32], strides = [1, 1]} : vector<32x128xf32> to vector<32x32xf32>
    %259 = vector.extract_strided_slice %247 {offsets = [0, 64], sizes = [32, 32], strides = [1, 1]} : vector<32x128xf32> to vector<32x32xf32>
    %260 = arith.mulf %256, %259 : vector<32x32xf32>
    %261 = arith.addf %258, %260 : vector<32x32xf32>
    %262 = math.tanh %261 : vector<32x32xf32>
    %cst_48 = arith.constant 1.000000e+00 : f32
    %263 = vector.broadcast %cst_48 : f32 to vector<32x32xf32>
    %264 = arith.subf %263, %257 : vector<32x32xf32>
    %265 = arith.mulf %264, %262 : vector<32x32xf32>
    %266 = arith.mulf %257, %238 : vector<32x32xf32>
    %267 = arith.addf %265, %266 : vector<32x32xf32>
    %c7 = arith.constant 7 : index
    %268 = memref.load %arg6[%c7] : memref<16xf32, #tpu.memory_space<smem>>
    %269 = vector.broadcast %268 : f32 to vector<32x32xf32>
    %270 = arith.mulf %267, %269 : vector<32x32xf32>
    %271 = arith.addf %242, %270 : vector<32x32xf32>
    %c192 = arith.constant 192 : index
    %c0_49 = arith.constant 0 : index
    %272 = vector.load %arg10[%c192, %c0_49] : memref<512x128xf32, #tpu.memory_space<vmem>>, vector<32x128xf32>
    %273 = arith.truncf %267 : vector<32x32xf32> to vector<32x32xbf16>
    %cst_50 = arith.constant dense<0.000000e+00> : vector<32x128xf32>
    %274 = tpu.matmul %273, %7, %cst_50 {dimension_numbers = #tpu.dot_dimension_numbers<[1], [0], [0], [1], [0, 0, 1, 1], [], []>} : vector<32x32xbf16>, vector<32x128xbf16>, vector<32x128xf32> -> vector<32x128xf32>
    %275 = vector.broadcast %8 : vector<1x128xf32> to vector<32x128xf32>
    %276 = arith.addf %274, %275 : vector<32x128xf32>
    %277 = vector.extract_strided_slice %272 {offsets = [0, 0], sizes = [32, 64], strides = [1, 1]} : vector<32x128xf32> to vector<32x64xf32>
    %278 = vector.extract_strided_slice %276 {offsets = [0, 0], sizes = [32, 64], strides = [1, 1]} : vector<32x128xf32> to vector<32x64xf32>
    %279 = arith.addf %277, %278 : vector<32x64xf32>
    %280 = arith.negf %279 : vector<32x64xf32>
    %281 = math.exp %280 : vector<32x64xf32>
    %cst_51 = arith.constant 1.000000e+00 : f32
    %282 = vector.broadcast %cst_51 : f32 to vector<32x64xf32>
    %283 = arith.addf %282, %281 : vector<32x64xf32>
    %284 = arith.divf %282, %283 : vector<32x64xf32>
    %285 = vector.extract_strided_slice %284 {offsets = [0, 0], sizes = [32, 32], strides = [1, 1]} : vector<32x64xf32> to vector<32x32xf32>
    %286 = vector.extract_strided_slice %284 {offsets = [0, 32], sizes = [32, 32], strides = [1, 1]} : vector<32x64xf32> to vector<32x32xf32>
    %287 = vector.extract_strided_slice %272 {offsets = [0, 64], sizes = [32, 32], strides = [1, 1]} : vector<32x128xf32> to vector<32x32xf32>
    %288 = vector.extract_strided_slice %276 {offsets = [0, 64], sizes = [32, 32], strides = [1, 1]} : vector<32x128xf32> to vector<32x32xf32>
    %289 = arith.mulf %285, %288 : vector<32x32xf32>
    %290 = arith.addf %287, %289 : vector<32x32xf32>
    %291 = math.tanh %290 : vector<32x32xf32>
    %cst_52 = arith.constant 1.000000e+00 : f32
    %292 = vector.broadcast %cst_52 : f32 to vector<32x32xf32>
    %293 = arith.subf %292, %286 : vector<32x32xf32>
    %294 = arith.mulf %293, %291 : vector<32x32xf32>
    %295 = arith.mulf %286, %267 : vector<32x32xf32>
    %296 = arith.addf %294, %295 : vector<32x32xf32>
    %c6 = arith.constant 6 : index
    %297 = memref.load %arg6[%c6] : memref<16xf32, #tpu.memory_space<smem>>
    %298 = vector.broadcast %297 : f32 to vector<32x32xf32>
    %299 = arith.mulf %296, %298 : vector<32x32xf32>
    %300 = arith.addf %271, %299 : vector<32x32xf32>
    %c160 = arith.constant 160 : index
    %c0_53 = arith.constant 0 : index
    %301 = vector.load %arg10[%c160, %c0_53] : memref<512x128xf32, #tpu.memory_space<vmem>>, vector<32x128xf32>
    %302 = arith.truncf %296 : vector<32x32xf32> to vector<32x32xbf16>
    %cst_54 = arith.constant dense<0.000000e+00> : vector<32x128xf32>
    %303 = tpu.matmul %302, %7, %cst_54 {dimension_numbers = #tpu.dot_dimension_numbers<[1], [0], [0], [1], [0, 0, 1, 1], [], []>} : vector<32x32xbf16>, vector<32x128xbf16>, vector<32x128xf32> -> vector<32x128xf32>
    %304 = vector.broadcast %8 : vector<1x128xf32> to vector<32x128xf32>
    %305 = arith.addf %303, %304 : vector<32x128xf32>
    %306 = vector.extract_strided_slice %301 {offsets = [0, 0], sizes = [32, 64], strides = [1, 1]} : vector<32x128xf32> to vector<32x64xf32>
    %307 = vector.extract_strided_slice %305 {offsets = [0, 0], sizes = [32, 64], strides = [1, 1]} : vector<32x128xf32> to vector<32x64xf32>
    %308 = arith.addf %306, %307 : vector<32x64xf32>
    %309 = arith.negf %308 : vector<32x64xf32>
    %310 = math.exp %309 : vector<32x64xf32>
    %cst_55 = arith.constant 1.000000e+00 : f32
    %311 = vector.broadcast %cst_55 : f32 to vector<32x64xf32>
    %312 = arith.addf %311, %310 : vector<32x64xf32>
    %313 = arith.divf %311, %312 : vector<32x64xf32>
    %314 = vector.extract_strided_slice %313 {offsets = [0, 0], sizes = [32, 32], strides = [1, 1]} : vector<32x64xf32> to vector<32x32xf32>
    %315 = vector.extract_strided_slice %313 {offsets = [0, 32], sizes = [32, 32], strides = [1, 1]} : vector<32x64xf32> to vector<32x32xf32>
    %316 = vector.extract_strided_slice %301 {offsets = [0, 64], sizes = [32, 32], strides = [1, 1]} : vector<32x128xf32> to vector<32x32xf32>
    %317 = vector.extract_strided_slice %305 {offsets = [0, 64], sizes = [32, 32], strides = [1, 1]} : vector<32x128xf32> to vector<32x32xf32>
    %318 = arith.mulf %314, %317 : vector<32x32xf32>
    %319 = arith.addf %316, %318 : vector<32x32xf32>
    %320 = math.tanh %319 : vector<32x32xf32>
    %cst_56 = arith.constant 1.000000e+00 : f32
    %321 = vector.broadcast %cst_56 : f32 to vector<32x32xf32>
    %322 = arith.subf %321, %315 : vector<32x32xf32>
    %323 = arith.mulf %322, %320 : vector<32x32xf32>
    %324 = arith.mulf %315, %296 : vector<32x32xf32>
    %325 = arith.addf %323, %324 : vector<32x32xf32>
    %c5 = arith.constant 5 : index
    %326 = memref.load %arg6[%c5] : memref<16xf32, #tpu.memory_space<smem>>
    %327 = vector.broadcast %326 : f32 to vector<32x32xf32>
    %328 = arith.mulf %325, %327 : vector<32x32xf32>
    %329 = arith.addf %300, %328 : vector<32x32xf32>
    %c128 = arith.constant 128 : index
    %c0_57 = arith.constant 0 : index
    %330 = vector.load %arg10[%c128, %c0_57] : memref<512x128xf32, #tpu.memory_space<vmem>>, vector<32x128xf32>
    %331 = arith.truncf %325 : vector<32x32xf32> to vector<32x32xbf16>
    %cst_58 = arith.constant dense<0.000000e+00> : vector<32x128xf32>
    %332 = tpu.matmul %331, %7, %cst_58 {dimension_numbers = #tpu.dot_dimension_numbers<[1], [0], [0], [1], [0, 0, 1, 1], [], []>} : vector<32x32xbf16>, vector<32x128xbf16>, vector<32x128xf32> -> vector<32x128xf32>
    %333 = vector.broadcast %8 : vector<1x128xf32> to vector<32x128xf32>
    %334 = arith.addf %332, %333 : vector<32x128xf32>
    %335 = vector.extract_strided_slice %330 {offsets = [0, 0], sizes = [32, 64], strides = [1, 1]} : vector<32x128xf32> to vector<32x64xf32>
    %336 = vector.extract_strided_slice %334 {offsets = [0, 0], sizes = [32, 64], strides = [1, 1]} : vector<32x128xf32> to vector<32x64xf32>
    %337 = arith.addf %335, %336 : vector<32x64xf32>
    %338 = arith.negf %337 : vector<32x64xf32>
    %339 = math.exp %338 : vector<32x64xf32>
    %cst_59 = arith.constant 1.000000e+00 : f32
    %340 = vector.broadcast %cst_59 : f32 to vector<32x64xf32>
    %341 = arith.addf %340, %339 : vector<32x64xf32>
    %342 = arith.divf %340, %341 : vector<32x64xf32>
    %343 = vector.extract_strided_slice %342 {offsets = [0, 0], sizes = [32, 32], strides = [1, 1]} : vector<32x64xf32> to vector<32x32xf32>
    %344 = vector.extract_strided_slice %342 {offsets = [0, 32], sizes = [32, 32], strides = [1, 1]} : vector<32x64xf32> to vector<32x32xf32>
    %345 = vector.extract_strided_slice %330 {offsets = [0, 64], sizes = [32, 32], strides = [1, 1]} : vector<32x128xf32> to vector<32x32xf32>
    %346 = vector.extract_strided_slice %334 {offsets = [0, 64], sizes = [32, 32], strides = [1, 1]} : vector<32x128xf32> to vector<32x32xf32>
    %347 = arith.mulf %343, %346 : vector<32x32xf32>
    %348 = arith.addf %345, %347 : vector<32x32xf32>
    %349 = math.tanh %348 : vector<32x32xf32>
    %cst_60 = arith.constant 1.000000e+00 : f32
    %350 = vector.broadcast %cst_60 : f32 to vector<32x32xf32>
    %351 = arith.subf %350, %344 : vector<32x32xf32>
    %352 = arith.mulf %351, %349 : vector<32x32xf32>
    %353 = arith.mulf %344, %325 : vector<32x32xf32>
    %354 = arith.addf %352, %353 : vector<32x32xf32>
    %c4 = arith.constant 4 : index
    %355 = memref.load %arg6[%c4] : memref<16xf32, #tpu.memory_space<smem>>
    %356 = vector.broadcast %355 : f32 to vector<32x32xf32>
    %357 = arith.mulf %354, %356 : vector<32x32xf32>
    %358 = arith.addf %329, %357 : vector<32x32xf32>
    %c96 = arith.constant 96 : index
    %c0_61 = arith.constant 0 : index
    %359 = vector.load %arg10[%c96, %c0_61] : memref<512x128xf32, #tpu.memory_space<vmem>>, vector<32x128xf32>
    %360 = arith.truncf %354 : vector<32x32xf32> to vector<32x32xbf16>
    %cst_62 = arith.constant dense<0.000000e+00> : vector<32x128xf32>
    %361 = tpu.matmul %360, %7, %cst_62 {dimension_numbers = #tpu.dot_dimension_numbers<[1], [0], [0], [1], [0, 0, 1, 1], [], []>} : vector<32x32xbf16>, vector<32x128xbf16>, vector<32x128xf32> -> vector<32x128xf32>
    %362 = vector.broadcast %8 : vector<1x128xf32> to vector<32x128xf32>
    %363 = arith.addf %361, %362 : vector<32x128xf32>
    %364 = vector.extract_strided_slice %359 {offsets = [0, 0], sizes = [32, 64], strides = [1, 1]} : vector<32x128xf32> to vector<32x64xf32>
    %365 = vector.extract_strided_slice %363 {offsets = [0, 0], sizes = [32, 64], strides = [1, 1]} : vector<32x128xf32> to vector<32x64xf32>
    %366 = arith.addf %364, %365 : vector<32x64xf32>
    %367 = arith.negf %366 : vector<32x64xf32>
    %368 = math.exp %367 : vector<32x64xf32>
    %cst_63 = arith.constant 1.000000e+00 : f32
    %369 = vector.broadcast %cst_63 : f32 to vector<32x64xf32>
    %370 = arith.addf %369, %368 : vector<32x64xf32>
    %371 = arith.divf %369, %370 : vector<32x64xf32>
    %372 = vector.extract_strided_slice %371 {offsets = [0, 0], sizes = [32, 32], strides = [1, 1]} : vector<32x64xf32> to vector<32x32xf32>
    %373 = vector.extract_strided_slice %371 {offsets = [0, 32], sizes = [32, 32], strides = [1, 1]} : vector<32x64xf32> to vector<32x32xf32>
    %374 = vector.extract_strided_slice %359 {offsets = [0, 64], sizes = [32, 32], strides = [1, 1]} : vector<32x128xf32> to vector<32x32xf32>
    %375 = vector.extract_strided_slice %363 {offsets = [0, 64], sizes = [32, 32], strides = [1, 1]} : vector<32x128xf32> to vector<32x32xf32>
    %376 = arith.mulf %372, %375 : vector<32x32xf32>
    %377 = arith.addf %374, %376 : vector<32x32xf32>
    %378 = math.tanh %377 : vector<32x32xf32>
    %cst_64 = arith.constant 1.000000e+00 : f32
    %379 = vector.broadcast %cst_64 : f32 to vector<32x32xf32>
    %380 = arith.subf %379, %373 : vector<32x32xf32>
    %381 = arith.mulf %380, %378 : vector<32x32xf32>
    %382 = arith.mulf %373, %354 : vector<32x32xf32>
    %383 = arith.addf %381, %382 : vector<32x32xf32>
    %c3 = arith.constant 3 : index
    %384 = memref.load %arg6[%c3] : memref<16xf32, #tpu.memory_space<smem>>
    %385 = vector.broadcast %384 : f32 to vector<32x32xf32>
    %386 = arith.mulf %383, %385 : vector<32x32xf32>
    %387 = arith.addf %358, %386 : vector<32x32xf32>
    %c64 = arith.constant 64 : index
    %c0_65 = arith.constant 0 : index
    %388 = vector.load %arg10[%c64, %c0_65] : memref<512x128xf32, #tpu.memory_space<vmem>>, vector<32x128xf32>
    %389 = arith.truncf %383 : vector<32x32xf32> to vector<32x32xbf16>
    %cst_66 = arith.constant dense<0.000000e+00> : vector<32x128xf32>
    %390 = tpu.matmul %389, %7, %cst_66 {dimension_numbers = #tpu.dot_dimension_numbers<[1], [0], [0], [1], [0, 0, 1, 1], [], []>} : vector<32x32xbf16>, vector<32x128xbf16>, vector<32x128xf32> -> vector<32x128xf32>
    %391 = vector.broadcast %8 : vector<1x128xf32> to vector<32x128xf32>
    %392 = arith.addf %390, %391 : vector<32x128xf32>
    %393 = vector.extract_strided_slice %388 {offsets = [0, 0], sizes = [32, 64], strides = [1, 1]} : vector<32x128xf32> to vector<32x64xf32>
    %394 = vector.extract_strided_slice %392 {offsets = [0, 0], sizes = [32, 64], strides = [1, 1]} : vector<32x128xf32> to vector<32x64xf32>
    %395 = arith.addf %393, %394 : vector<32x64xf32>
    %396 = arith.negf %395 : vector<32x64xf32>
    %397 = math.exp %396 : vector<32x64xf32>
    %cst_67 = arith.constant 1.000000e+00 : f32
    %398 = vector.broadcast %cst_67 : f32 to vector<32x64xf32>
    %399 = arith.addf %398, %397 : vector<32x64xf32>
    %400 = arith.divf %398, %399 : vector<32x64xf32>
    %401 = vector.extract_strided_slice %400 {offsets = [0, 0], sizes = [32, 32], strides = [1, 1]} : vector<32x64xf32> to vector<32x32xf32>
    %402 = vector.extract_strided_slice %400 {offsets = [0, 32], sizes = [32, 32], strides = [1, 1]} : vector<32x64xf32> to vector<32x32xf32>
    %403 = vector.extract_strided_slice %388 {offsets = [0, 64], sizes = [32, 32], strides = [1, 1]} : vector<32x128xf32> to vector<32x32xf32>
    %404 = vector.extract_strided_slice %392 {offsets = [0, 64], sizes = [32, 32], strides = [1, 1]} : vector<32x128xf32> to vector<32x32xf32>
    %405 = arith.mulf %401, %404 : vector<32x32xf32>
    %406 = arith.addf %403, %405 : vector<32x32xf32>
    %407 = math.tanh %406 : vector<32x32xf32>
    %cst_68 = arith.constant 1.000000e+00 : f32
    %408 = vector.broadcast %cst_68 : f32 to vector<32x32xf32>
    %409 = arith.subf %408, %402 : vector<32x32xf32>
    %410 = arith.mulf %409, %407 : vector<32x32xf32>
    %411 = arith.mulf %402, %383 : vector<32x32xf32>
    %412 = arith.addf %410, %411 : vector<32x32xf32>
    %c2 = arith.constant 2 : index
    %413 = memref.load %arg6[%c2] : memref<16xf32, #tpu.memory_space<smem>>
    %414 = vector.broadcast %413 : f32 to vector<32x32xf32>
    %415 = arith.mulf %412, %414 : vector<32x32xf32>
    %416 = arith.addf %387, %415 : vector<32x32xf32>
    %c32 = arith.constant 32 : index
    %c0_69 = arith.constant 0 : index
    %417 = vector.load %arg10[%c32, %c0_69] : memref<512x128xf32, #tpu.memory_space<vmem>>, vector<32x128xf32>
    %418 = arith.truncf %412 : vector<32x32xf32> to vector<32x32xbf16>
    %cst_70 = arith.constant dense<0.000000e+00> : vector<32x128xf32>
    %419 = tpu.matmul %418, %7, %cst_70 {dimension_numbers = #tpu.dot_dimension_numbers<[1], [0], [0], [1], [0, 0, 1, 1], [], []>} : vector<32x32xbf16>, vector<32x128xbf16>, vector<32x128xf32> -> vector<32x128xf32>
    %420 = vector.broadcast %8 : vector<1x128xf32> to vector<32x128xf32>
    %421 = arith.addf %419, %420 : vector<32x128xf32>
    %422 = vector.extract_strided_slice %417 {offsets = [0, 0], sizes = [32, 64], strides = [1, 1]} : vector<32x128xf32> to vector<32x64xf32>
    %423 = vector.extract_strided_slice %421 {offsets = [0, 0], sizes = [32, 64], strides = [1, 1]} : vector<32x128xf32> to vector<32x64xf32>
    %424 = arith.addf %422, %423 : vector<32x64xf32>
    %425 = arith.negf %424 : vector<32x64xf32>
    %426 = math.exp %425 : vector<32x64xf32>
    %cst_71 = arith.constant 1.000000e+00 : f32
    %427 = vector.broadcast %cst_71 : f32 to vector<32x64xf32>
    %428 = arith.addf %427, %426 : vector<32x64xf32>
    %429 = arith.divf %427, %428 : vector<32x64xf32>
    %430 = vector.extract_strided_slice %429 {offsets = [0, 0], sizes = [32, 32], strides = [1, 1]} : vector<32x64xf32> to vector<32x32xf32>
    %431 = vector.extract_strided_slice %429 {offsets = [0, 32], sizes = [32, 32], strides = [1, 1]} : vector<32x64xf32> to vector<32x32xf32>
    %432 = vector.extract_strided_slice %417 {offsets = [0, 64], sizes = [32, 32], strides = [1, 1]} : vector<32x128xf32> to vector<32x32xf32>
    %433 = vector.extract_strided_slice %421 {offsets = [0, 64], sizes = [32, 32], strides = [1, 1]} : vector<32x128xf32> to vector<32x32xf32>
    %434 = arith.mulf %430, %433 : vector<32x32xf32>
    %435 = arith.addf %432, %434 : vector<32x32xf32>
    %436 = math.tanh %435 : vector<32x32xf32>
    %cst_72 = arith.constant 1.000000e+00 : f32
    %437 = vector.broadcast %cst_72 : f32 to vector<32x32xf32>
    %438 = arith.subf %437, %431 : vector<32x32xf32>
    %439 = arith.mulf %438, %436 : vector<32x32xf32>
    %440 = arith.mulf %431, %412 : vector<32x32xf32>
    %441 = arith.addf %439, %440 : vector<32x32xf32>
    %c1 = arith.constant 1 : index
    %442 = memref.load %arg6[%c1] : memref<16xf32, #tpu.memory_space<smem>>
    %443 = vector.broadcast %442 : f32 to vector<32x32xf32>
    %444 = arith.mulf %441, %443 : vector<32x32xf32>
    %445 = arith.addf %416, %444 : vector<32x32xf32>
    %c0_73 = arith.constant 0 : index
    %c0_74 = arith.constant 0 : index
    %446 = vector.load %arg10[%c0_73, %c0_74] : memref<512x128xf32, #tpu.memory_space<vmem>>, vector<32x128xf32>
    %447 = arith.truncf %441 : vector<32x32xf32> to vector<32x32xbf16>
    %cst_75 = arith.constant dense<0.000000e+00> : vector<32x128xf32>
    %448 = tpu.matmul %447, %7, %cst_75 {dimension_numbers = #tpu.dot_dimension_numbers<[1], [0], [0], [1], [0, 0, 1, 1], [], []>} : vector<32x32xbf16>, vector<32x128xbf16>, vector<32x128xf32> -> vector<32x128xf32>
    %449 = vector.broadcast %8 : vector<1x128xf32> to vector<32x128xf32>
    %450 = arith.addf %448, %449 : vector<32x128xf32>
    %451 = vector.extract_strided_slice %446 {offsets = [0, 0], sizes = [32, 64], strides = [1, 1]} : vector<32x128xf32> to vector<32x64xf32>
    %452 = vector.extract_strided_slice %450 {offsets = [0, 0], sizes = [32, 64], strides = [1, 1]} : vector<32x128xf32> to vector<32x64xf32>
    %453 = arith.addf %451, %452 : vector<32x64xf32>
    %454 = arith.negf %453 : vector<32x64xf32>
    %455 = math.exp %454 : vector<32x64xf32>
    %cst_76 = arith.constant 1.000000e+00 : f32
    %456 = vector.broadcast %cst_76 : f32 to vector<32x64xf32>
    %457 = arith.addf %456, %455 : vector<32x64xf32>
    %458 = arith.divf %456, %457 : vector<32x64xf32>
    %459 = vector.extract_strided_slice %458 {offsets = [0, 0], sizes = [32, 32], strides = [1, 1]} : vector<32x64xf32> to vector<32x32xf32>
    %460 = vector.extract_strided_slice %458 {offsets = [0, 32], sizes = [32, 32], strides = [1, 1]} : vector<32x64xf32> to vector<32x32xf32>
    %461 = vector.extract_strided_slice %446 {offsets = [0, 64], sizes = [32, 32], strides = [1, 1]} : vector<32x128xf32> to vector<32x32xf32>
    %462 = vector.extract_strided_slice %450 {offsets = [0, 64], sizes = [32, 32], strides = [1, 1]} : vector<32x128xf32> to vector<32x32xf32>
    %463 = arith.mulf %459, %462 : vector<32x32xf32>
    %464 = arith.addf %461, %463 : vector<32x32xf32>
    %465 = math.tanh %464 : vector<32x32xf32>
    %cst_77 = arith.constant 1.000000e+00 : f32
    %466 = vector.broadcast %cst_77 : f32 to vector<32x32xf32>
    %467 = arith.subf %466, %460 : vector<32x32xf32>
    %468 = arith.mulf %467, %465 : vector<32x32xf32>
    %469 = arith.mulf %460, %441 : vector<32x32xf32>
    %470 = arith.addf %468, %469 : vector<32x32xf32>
    %c0_78 = arith.constant 0 : index
    %471 = memref.load %arg6[%c0_78] : memref<16xf32, #tpu.memory_space<smem>>
    %472 = vector.broadcast %471 : f32 to vector<32x32xf32>
    %473 = arith.mulf %470, %472 : vector<32x32xf32>
    %474 = arith.addf %445, %473 : vector<32x32xf32>
    %475 = vector.extract_strided_slice %474 {offsets = [0, 31], sizes = [32, 1], strides = [1, 1]} : vector<32x32xf32> to vector<32x1xf32>
    %c0_79 = arith.constant 0 : index
    %476 = memref.load %arg7[%c0_79] : memref<1xf32, #tpu.memory_space<smem>>
    %477 = vector.broadcast %476 : f32 to vector<32x1xf32>
    %478 = arith.addf %475, %477 : vector<32x1xf32>
    %479 = arith.negf %478 : vector<32x1xf32>
    %480 = math.exp %479 : vector<32x1xf32>
    %cst_80 = arith.constant 1.000000e+00 : f32
    %481 = vector.broadcast %cst_80 : f32 to vector<32x1xf32>
    %482 = arith.addf %481, %480 : vector<32x1xf32>
    %483 = arith.divf %481, %482 : vector<32x1xf32>
    %c0_81 = arith.constant 0 : index
    %c0_82 = arith.constant 0 : index
    %484 = vector.load %arg9[%c0_81, %c0_82] : memref<32x1xf32, #tpu.memory_space<vmem>>, vector<32x1xf32>
    tpu.vector_store %arg9[%c0_81, %c0_82], %483 {strides = array<i32>} : memref<32x1xf32, #tpu.memory_space<vmem>>, vector<32x1xf32>,
    %c0_83 = arith.constant 0 : index
    %c0_84 = arith.constant 0 : index
    %485 = vector.load %arg5[%c0_83, %c0_84] : memref<32x1xf32, #tpu.memory_space<vmem>>, vector<32x1xf32>
    %cst_85 = arith.constant 0.000000e+00 : f32
    %486 = vector.broadcast %cst_85 : f32 to vector<32x1xf32>
    %487 = arith.maximumf %485, %486 : vector<32x1xf32>
    %488 = math.log %483 : vector<32x1xf32>
    %cst_86 = arith.constant -1.000000e+02 : f32
    %489 = vector.broadcast %cst_86 : f32 to vector<32x1xf32>
    %490 = arith.maximumf %488, %489 : vector<32x1xf32>
    %cst_87 = arith.constant 1.000000e+00 : f32
    %491 = vector.broadcast %cst_87 : f32 to vector<32x1xf32>
    %492 = arith.subf %491, %483 : vector<32x1xf32>
    %493 = math.log %492 : vector<32x1xf32>
    %cst_88 = arith.constant -1.000000e+02 : f32
    %494 = vector.broadcast %cst_88 : f32 to vector<32x1xf32>
    %495 = arith.maximumf %493, %494 : vector<32x1xf32>
    %496 = arith.mulf %487, %490 : vector<32x1xf32>
    %cst_89 = arith.constant 1.000000e+00 : f32
    %497 = vector.broadcast %cst_89 : f32 to vector<32x1xf32>
    %498 = arith.subf %497, %487 : vector<32x1xf32>
    %499 = arith.mulf %498, %495 : vector<32x1xf32>
    %500 = arith.addf %496, %499 : vector<32x1xf32>
    %cst_90 = arith.constant 0.000000e+00 : f32
    %501 = vector.broadcast %cst_90 : f32 to vector<32x1xf32>
    %502 = arith.subf %501, %500 : vector<32x1xf32>
    %503 = vector.shape_cast %502 : vector<32x1xf32> to vector<1x32x1xf32>
    %cst_91 = arith.constant dense<0.000000e+00> : vector<1xf32>
    %504 = vector.multi_reduction <add>, %503, %cst_91 [1, 2] : vector<1x32x1xf32> to vector<1xf32>
    %505 = vector.shape_cast %504 : vector<1xf32> to vector<1x1x1xf32>
    %506 = vector.extract %505[0, 0, 0] : f32 from vector<1x1x1xf32>
    %507 = vector.broadcast %506 : f32 to vector<1x1xf32>
    %cst_92 = arith.constant 3.200000e+01 : f32
    %508 = vector.broadcast %cst_92 : f32 to vector<1x1xf32>
    %509 = arith.divf %507, %508 : vector<1x1xf32>
    %c0_93 = arith.constant 0 : index
    %c0_94 = arith.constant 0 : index
    %510 = vector.load %arg8[%c0_93, %c0_94] : memref<1x1xf32, #tpu.memory_space<vmem>>, vector<1x1xf32>
    tpu.vector_store %arg8[%c0_93, %c0_94], %509 {strides = array<i32>} : memref<1x1xf32, #tpu.memory_space<vmem>>, vector<1x1xf32>,
    return
  }
}

</mosaic_0001>

<bundles_post_ra>
// kernel: tpu_custom_call.1
= control target key start
LH: loop header
LB: loop body
LE: loop exit
PB: predicated region body
PF: predicated region fallthrough
CT: control target
= control target key end

     0   :  { %16 = vsyncpa [#allocation6], 0  ;;  %s6110_s0 = inlined_call_operand.vmem [shape: bf16[512,32], index: 0, kind: input, shape index: {}]   ;;  %s6111_s1 = inlined_call_operand.vmem [shape: bf16[32,128], index: 1, kind: input, shape index: {}]   ;;  %s6112_s2 = inlined_call_operand.vmem [shape: bf16[32,128], index: 2, kind: input, shape index: {}]   ;;  %s6113_s3 = inlined_call_operand.vmem [shape: f32[1,128], index: 3, kind: input, shape index: {}]   ;;  %s6114_s4 = inlined_call_operand.vmem [shape: f32[1,128], index: 4, kind: input, shape index: {}]   ;;  %s6115_s5 = inlined_call_operand.vmem [shape: f32[32,1], index: 5, kind: input, shape index: {}]   ;;  %s6116_s6 = inlined_call_operand.vmem [shape: f32[16], index: 6, kind: input, shape index: {}]   ;;  %s6117_s7 = inlined_call_operand.<no memory space> [shape: f32[1], index: 7, kind: input, shape index: {}]   ;;  %s6118_s8 = inlined_call_operand.hbm [shape: f32[1,1], index: 8, kind: output, shape index: {0}]   ;;  %s6119_s9 = inlined_call_operand.vmem [shape: f32[32,1], index: 9, kind: output, shape index: {1}]  }
   0x1   :  { %17 = vsyncpa [#allocation5], 0  ;;  %s36_s11 = sshll.u32 %s6116_s6, 4  ;;  %s37_s11 = int_to_ptr.vmem [resolvable:$true] %s36_s11 }
   0x2   :  { %s4780_s12 = scalar_lea.vmem %s37_s11, 16  ;;  %p4785_p1 = scmp.lt.s32.totalorder %s37_s11, %s37_s11 }
   0x3   :  { %p4781_p0 = scmp.ne.s32.totalorder %s37_s11, %s4780_s12  ;;  %p4786_p2 = scmp.lt.s32.totalorder %s4780_s12, %s4780_s12 }
   0x5   :  { %p4787_p3 = por %p4786_p2, %p4785_p1 }
   0x7   :  { %p4788_p4 = pnand %p4787_p3, %p4781_p0 }
   0x9   :  { %4791 = shalt.err (!%p4788_p4)
}
   0xa   :  { %s4818_s13 = smov [#allocation4]  }
   0xb   :  { %39 = dma.vmem_to_smem %s37_s11, 16, %s4818_s13, [#allocation6]  }
   0xc   :  { %4814 = dma.done.wait [#allocation6], 16  }
   0xd   :  { %4815 = vsyncadd [#allocation6], 4294967280 }
   0xe   :  { %45 = sfence }
   0xf   :  { %v4316_v0 = vld [vmem:[%s6111_s1] sm:$0xff]   ;;  %vm294_vm0 = vcmask 261120   ;;  %v4317_v1 = vld [vmem:[%s6111_s1 + $0x8] sm:$0xff]   ;;  %v4819_v3 = vmov 0   ;;  %v4320_v5 = vld [vmem:[%s6110_s0 + $0x10] sm:$0xff]   ;;  %s4821_s20 = smov 96  }
  0x10   :  { %4112 = vmatprep.subr.bf16.mxu0 %v4316_v0  ;;  %v4318_v2 = vld [vmem:[%s6110_s0] sm:$0xff]   ;;  %4184 = vmatprep.mubr.bf16.mxu1 %v4819_v3  ;;  %v4319_v4 = vld [vmem:[%s6110_s0 + $0x8] sm:$0xff]   ;;  %v4321_v8 = vld [vmem:[%s6110_s0 + $0x18] sm:$0xff]   ;;  %s3926_s22 = sld [smem:[#allocation4 + $0xc]]  ;;  %s3933_s1 = sld [smem:[#allocation4 + $0xb]]  ;;  %vm3698_vm1 = vcmask 7168  }
  0x11   :  { %4113 = vmatpush3.bf16.msra.mxu0 %v4316_v0  ;;  %4116 = vmatprep.mubr.msk.bf16.mxu0 %vm294_vm0, %v4318_v2  ;;  %v4896_v6 = vld [vmem:[%s6112_s2] sm:$0xff]   ;;  %v4901_v7 = vld [vmem:[%s6112_s2 + $0x8] sm:$0xff]   ;;  %v4326_v11 = vld [vmem:[%s6110_s0 + $0x30] sm:$0xff]   ;;  %s3940_s23 = sld [smem:[#allocation4 + $0xa]]  ;;  %s5977_s24 = sld [smem:[#allocation4 + $0x8]]  ;;  %vm3810_vm2 = vcmask 0  }
  0x12   :  { %4114 = vmatprep.subr.bf16.mxu0 %v4317_v1  ;;  %4180 = vmatprep.subr.bf16.mxu1 %v4896_v6  ;;  %v4322_v9 = vld [vmem:[%s6110_s0 + $0x20] sm:$0xff]   ;;  %v4323_v10 = vld [vmem:[%s6110_s0 + $0x28] sm:$0xff]   ;;  %v4327_v12 = vld [vmem:[%s6110_s0 + $0x38] sm:$0xff]   ;;  %s3961_s25 = sld [smem:[#allocation4 + $0x7]]  ;;  %s5987_s26 = sld [smem:[#allocation4 + $0x6]] }
  0x13   :  { %4181 = vmatpush3.bf16.msra.mxu1 %v4896_v6  ;;  %v4328_v13 = vld [vmem:[%s6110_s0 + $0x40] sm:$0xff]   ;;  %v4329_v14 = vld [vmem:[%s6110_s0 + $0x48] sm:$0xff]   ;;  %v4330_v15 = vld [vmem:[%s6110_s0 + $0x50] sm:$0xff]   ;;  %s5996_s27 = sld [smem:[#allocation4 + $0x5]]  ;;  %s6000_s28 = sld [smem:[#allocation4 + $0x4]] }
  0x14   :  { %4182 = vmatprep.subr.bf16.mxu1 %v4901_v7  ;;  %v4331_v16 = vld [vmem:[%s6110_s0 + $0x58] sm:$0xff]   ;;  %v4332_v17 = vld [vmem:[%s6110_s0 + $0x60] sm:$0xff]   ;;  %v4333_v18 = vld [vmem:[%s6110_s0 + $0x68] sm:$0xff]   ;;  %s6006_s29 = sld [smem:[#allocation4 + $0x3]]  ;;  %s6013_s30 = sld [smem:[#allocation4 + $0x2]] }
  0x15   :  { %4115 = vmatpush3.bf16.msra.mxu0 %v4317_v1  ;;  %v4334_v19 = vld [vmem:[%s6110_s0 + $0x70] sm:$0xff]   ;;  %v4335_v20 = vld [vmem:[%s6110_s0 + $0x78] sm:$0xff]   ;;  %v4336_v21 = vld [vmem:[%s6110_s0 + $0x80] sm:$0xff]   ;;  %s6021_s10 = sld [smem:[#allocation4 + $0x1]]  ;;  %s6035_s11 = sld [smem:[#allocation4]] }
  0x16   :  { %v4337_v22 = vld [vmem:[%s6110_s0 + $0x88] sm:$0xff]   ;;  %v4338_v23 = vld [vmem:[%s6110_s0 + $0x90] sm:$0xff]   ;;  %v4339_v24 = vld [vmem:[%s6110_s0 + $0x98] sm:$0xff]  }
  0x17   :  { %4183 = vmatpush3.bf16.msra.mxu1 %v4901_v7  ;;  %v4340_v25 = vld [vmem:[%s6110_s0 + $0xa0] sm:$0xff]   ;;  %v4341_v26 = vld [vmem:[%s6110_s0 + $0xa8] sm:$0xff]   ;;  %v4342_v27 = vld [vmem:[%s6110_s0 + $0xb0] sm:$0xff]  }
  0x18   :  { %4117 = vmatmul.mubr.msk.bf16.vlgmr.msra.gmra.mrb[0].mxu0 %vm294_vm0, %v4319_v4  ;;  %4188 = vmatprep.subr.bf16.mxu1 %v4896_v6  ;;  %v4343_v28 = vld [vmem:[%s6110_s0 + $0xb8] sm:$0xff]   ;;  %v4344_v29 = vld [vmem:[%s6110_s0 + $0xc0] sm:$0xff]   ;;  %v4345_v30 = vld [vmem:[%s6110_s0 + $0xc8] sm:$0xff]  }
  0x19   :  { %4120 = vmatprep.mubr.msk.bf16.mxu0 %vm294_vm0, %v4320_v5  ;;  %v4346_v31 = vld [vmem:[%s6110_s0 + $0xd0] sm:$0xff]   ;;  %v4347_v32 = vld [vmem:[%s6110_s0 + $0xd8] sm:$0xff]   ;;  %v4348_v33 = vld [vmem:[%s6110_s0 + $0xe0] sm:$0xff]  }
  0x1a   :  { %4185 = vmatmul.mubr.bf16.vlgmr.msra.gmra.mrb[0].mxu1 %v4819_v3  ;;  %v4349_v34 = vld [vmem:[%s6110_s0 + $0xe8] sm:$0xff]   ;;  %v4350_v35 = vld [vmem:[%s6110_s0 + $0xf0] sm:$0xff]   ;;  %v4351_v36 = vld [vmem:[%s6110_s0 + $0xf8] sm:$0xff]   ;;  %s4820_s0 = smov 64  }
  0x1b   :  { %4189 = vmatpush3.bf16.msra.mxu1 %v4896_v6  ;;  %v5041_v41 = vld [vmem:[%s6114_s4] ss:$0 sm:$0xff] }
  0x1c   :  { %4190 = vmatprep.subr.bf16.mxu1 %v4901_v7 }
  0x1f   :  { %4191 = vmatpush3.bf16.msra.mxu1 %v4901_v7 }
  0x20   :  { %4121 = vmatmul.mubr.msk.bf16.gmra.mrb[4].mxu0 %vm294_vm0, %v4321_v8  ;;  %4196 = vmatprep.subr.bf16.mxu1 %v4896_v6 }
  0x21   :  { %4124 = vmatprep.mubr.msk.bf16.mxu0 %vm294_vm0, %v4322_v9 }
  0x28   :  { %4125 = vmatmul.mubr.msk.bf16.gmra.mrb[8].mxu0 %vm294_vm0, %v4323_v10 }
  0x29   :  { %4128 = vmatprep.mubr.msk.bf16.mxu0 %vm294_vm0, %v4326_v11 }
  0x30   :  { %4129 = vmatmul.mubr.msk.bf16.gmra.mrb[12].mxu0 %vm294_vm0, %v4327_v12 }
  0x31   :  { %4132 = vmatprep.mubr.msk.bf16.mxu0 %vm294_vm0, %v4328_v13 }
  0x38   :  { %4133 = vmatmul.mubr.msk.bf16.gmra.mrb[16].mxu0 %vm294_vm0, %v4329_v14 }
  0x39   :  { %4136 = vmatprep.mubr.msk.bf16.mxu0 %vm294_vm0, %v4330_v15 }
  0x40   :  { %4137 = vmatmul.mubr.msk.bf16.gmra.mrb[20].mxu0 %vm294_vm0, %v4331_v16 }
  0x41   :  { %4140 = vmatprep.mubr.msk.bf16.mxu0 %vm294_vm0, %v4332_v17 }
  0x48   :  { %4141 = vmatmul.mubr.msk.bf16.gmra.mrb[24].mxu0 %vm294_vm0, %v4333_v18 }
  0x49   :  { %4144 = vmatprep.mubr.msk.bf16.mxu0 %vm294_vm0, %v4334_v19 }
  0x50   :  { %4145 = vmatmul.mubr.msk.bf16.gmra.mrb[28].mxu0 %vm294_vm0, %v4335_v20 }
  0x51   :  { %4148 = vmatprep.mubr.msk.bf16.mxu0 %vm294_vm0, %v4336_v21 }
  0x58   :  { %4149 = vmatmul.mubr.msk.bf16.gmra.mrb[32].mxu0 %vm294_vm0, %v4337_v22 }
  0x59   :  { %4152 = vmatprep.mubr.msk.bf16.mxu0 %vm294_vm0, %v4338_v23 }
  0x60   :  { %4153 = vmatmul.mubr.msk.bf16.gmra.mrb[36].mxu0 %vm294_vm0, %v4339_v24 }
  0x61   :  { %4156 = vmatprep.mubr.msk.bf16.mxu0 %vm294_vm0, %v4340_v25 }
  0x68   :  { %4157 = vmatmul.mubr.msk.bf16.gmra.mrb[40].mxu0 %vm294_vm0, %v4341_v26 }
  0x69   :  { %4160 = vmatprep.mubr.msk.bf16.mxu0 %vm294_vm0, %v4342_v27 }
  0x70   :  { %4161 = vmatmul.mubr.msk.bf16.gmra.mrb[44].mxu0 %vm294_vm0, %v4343_v28 }
  0x71   :  { %4164 = vmatprep.mubr.msk.bf16.mxu0 %vm294_vm0, %v4344_v29 }
  0x78   :  { %4165 = vmatmul.mubr.msk.bf16.gmra.mrb[48].mxu0 %vm294_vm0, %v4345_v30 }
  0x79   :  { %4168 = vmatprep.mubr.msk.bf16.mxu0 %vm294_vm0, %v4346_v31 }
  0x80   :  { %4169 = vmatmul.mubr.msk.bf16.gmra.mrb[52].mxu0 %vm294_vm0, %v4347_v32 }
  0x81   :  { %4172 = vmatprep.mubr.msk.bf16.mxu0 %vm294_vm0, %v4348_v33 }
  0x88   :  { %4173 = vmatmul.mubr.msk.bf16.gmra.mrb[56].mxu0 %vm294_vm0, %v4349_v34 }
  0x89   :  { %4176 = vmatprep.mubr.msk.bf16.mxu0 %vm294_vm0, %v4350_v35 }
  0x90   :  { %4177 = vmatmul.mubr.msk.bf16.gmra.mrb[60].mxu0 %vm294_vm0, %v4351_v36 }
  0xeb   :  { %v5030_v37 = vpop.f32.mrb[0].mxu0 }
  0xec   :  { %6143 = vst [vmem:[#allocation10_spill] sm:$0xff] %v5030_v37  ;;  %v5032_v38 = vpop.f32.mrb[1].mxu0 }
  0xed   :  { %6144 = vst [vmem:[#allocation11_spill] sm:$0xff] %v5032_v38  ;;  %v5034_v39 = vpop.f32.mrb[2].mxu0  ;;  %v4186_v43 = vpop.f32.mrb[0].mxu1  ;;  %v5178_v38 = vld [vmem:[%s6113_s3] ss:$0 sm:$0xff] }
  0xee   :  { %6145 = vst [vmem:[#allocation12_spill] sm:$0xff] %v5034_v39  ;;  %v5036_v40 = vpop.f32.mrb[3].mxu0  ;;  %v5048_v45 = vadd.f32 %v4186_v43, %v5041_v41  ;;  %v808_v46 = vpop.f32.mrb[1].mxu1 }
  0xef   :  { %6146 = vst [vmem:[#allocation13_spill] sm:$0xff] %v5036_v40  ;;  %v5053_v48 = vadd.f32 %v5041_v41, %v808_v46  ;;  %v4187_v49 = vpop.f32.mrb[2].mxu1 }
  0xf0   :  { %859 = vrot.lane.b32.xlu1 %v5048_v45, %s4820_s0  ;;  %v5060_v51 = vadd.f32 %v4187_v49, %v5041_v41  ;;  %v811_v52 = vpop.f32.mrb[3].mxu1 }
  0xf1   :  { %855 = vrot.lane.b32.xlu0 %v5053_v48, %s4820_s0  ;;  %v5065_v53 = vadd.f32 %v5041_v41, %v811_v52 }
  0xf3   :  { %v5043_v42 = vpop.f32.mrb[4].mxu0 }
  0xf4   :  { %6147 = vst [vmem:[#allocation14_spill] sm:$0xff] %v5043_v42  ;;  %v5045_v44 = vpop.f32.mrb[5].mxu0  ;;  %861 = vrot.lane.b32.xlu1 %v5060_v51, %s4820_s0 }
  0xf5   :  { %6148 = vst [vmem:[#allocation15_spill] sm:$0xff] %v5045_v44  ;;  %v5050_v47 = vpop.f32.mrb[6].mxu0  ;;  %857 = vrot.lane.b32.xlu0 %v5065_v53, %s4820_s0 }
  0xf6   :  { %6149 = vst [vmem:[#allocation16_spill] sm:$0xff] %v5050_v47  ;;  %v5055_v50 = vpop.f32.mrb[7].mxu0 }
  0xf7   :  { %6150 = vst [vmem:[#allocation17_spill] sm:$0xff] %v5055_v50 }
  0xfb   :  { %v5069_v54 = vpop.f32.mrb[8].mxu0 }
  0xfc   :  { %6151 = vst [vmem:[#allocation18_spill] sm:$0xff] %v5069_v54  ;;  %v5073_v55 = vpop.f32.mrb[9].mxu0 }
  0xfd   :  { %6152 = vst [vmem:[#allocation19_spill] sm:$0xff] %v5073_v55  ;;  %v5075_v56 = vpop.f32.mrb[10].mxu0 }
  0xfe   :  { %6153 = vst [vmem:[#allocation20_spill] sm:$0xff] %v5075_v56  ;;  %v5077_v57 = vpop.f32.mrb[11].mxu0 }
  0xff   :  { %6154 = vst [vmem:[#allocation21_spill] sm:$0xff] %v5077_v57 }
 0x103   :  { %v5079_v58 = vpop.f32.mrb[12].mxu0 }
 0x104   :  { %6155 = vst [vmem:[#allocation22_spill] sm:$0xff] %v5079_v58  ;;  %v5081_v59 = vpop.f32.mrb[13].mxu0 }
 0x105   :  { %6156 = vst [vmem:[#allocation23_spill] sm:$0xff] %v5081_v59  ;;  %v5083_v60 = vpop.f32.mrb[14].mxu0 }
 0x106   :  { %6157 = vst [vmem:[#allocation24_spill] sm:$0xff] %v5083_v60  ;;  %v5085_v61 = vpop.f32.mrb[15].mxu0 }
 0x107   :  { %6158 = vst [vmem:[#allocation25_spill] sm:$0xff] %v5085_v61 }
 0x10b   :  { %v5087_v62 = vpop.f32.mrb[16].mxu0 }
 0x10c   :  { %6159 = vst [vmem:[#allocation26_spill] sm:$0xff] %v5087_v62  ;;  %v5089_v63 = vpop.f32.mrb[17].mxu0 }
 0x10d   :  { %6160 = vst [vmem:[#allocation27_spill] sm:$0xff] %v5089_v63  ;;  %v5091_v0 = vpop.f32.mrb[18].mxu0 }
 0x10e   :  { %6161 = vst [vmem:[#allocation28_spill] sm:$0xff] %v5091_v0  ;;  %v5093_v1 = vpop.f32.mrb[19].mxu0 }
 0x10f   :  { %6162 = vst [vmem:[#allocation29_spill] sm:$0xff] %v5093_v1 }
 0x113   :  { %v5095_v2 = vpop.f32.mrb[20].mxu0 }
 0x114   :  { %6163 = vst [vmem:[#allocation30_spill] sm:$0xff] %v5095_v2  ;;  %v5097_v3 = vpop.f32.mrb[21].mxu0 }
 0x115   :  { %v5099_v4 = vpop.f32.mrb[22].mxu0 }
 0x116   :  { %6164 = vst [vmem:[#allocation31_spill] sm:$0xff] %v5099_v4  ;;  %v5101_v5 = vpop.f32.mrb[23].mxu0 }
 0x117   :  { %6165 = vst [vmem:[#allocation32_spill] sm:$0xff] %v5101_v5 }
 0x11b   :  { %v5103_v8 = vpop.f32.mrb[24].mxu0 }
 0x11c   :  { %v5105_v9 = vpop.f32.mrb[25].mxu0 }
 0x11d   :  { %v5107_v10 = vpop.f32.mrb[26].mxu0 }
 0x11e   :  { %v5109_v11 = vpop.f32.mrb[27].mxu0 }
 0x123   :  { %v5111_v12 = vpop.f32.mrb[28].mxu0 }
 0x124   :  { %v5113_v13 = vpop.f32.mrb[29].mxu0 }
 0x125   :  { %v5115_v14 = vpop.f32.mrb[30].mxu0 }
 0x126   :  { %v5117_v15 = vpop.f32.mrb[31].mxu0 }
 0x12b   :  { %v5119_v16 = vpop.f32.mrb[32].mxu0 }
 0x12c   :  { %v5121_v17 = vpop.f32.mrb[33].mxu0 }
 0x12d   :  { %v5123_v18 = vpop.f32.mrb[34].mxu0 }
 0x12e   :  { %v5125_v19 = vpop.f32.mrb[35].mxu0 }
 0x133   :  { %v5127_v20 = vpop.f32.mrb[36].mxu0 }
 0x134   :  { %v5129_v21 = vpop.f32.mrb[37].mxu0 }
 0x135   :  { %v5131_v22 = vpop.f32.mrb[38].mxu0 }
 0x136   :  { %v5133_v23 = vpop.f32.mrb[39].mxu0 }
 0x13b   :  { %v5135_v24 = vpop.f32.mrb[40].mxu0 }
 0x13c   :  { %v5137_v25 = vpop.f32.mrb[41].mxu0 }
 0x13d   :  { %v5139_v26 = vpop.f32.mrb[42].mxu0 }
 0x13e   :  { %v5141_v27 = vpop.f32.mrb[43].mxu0 }
 0x143   :  { %v5143_v28 = vpop.f32.mrb[44].mxu0 }
 0x144   :  { %v5145_v29 = vpop.f32.mrb[45].mxu0 }
 0x145   :  { %v5147_v30 = vpop.f32.mrb[46].mxu0 }
 0x146   :  { %v5149_v31 = vpop.f32.mrb[47].mxu0 }
 0x14b   :  { %v5151_v32 = vpop.f32.mrb[48].mxu0 }
 0x14c   :  { %v5153_v33 = vpop.f32.mrb[49].mxu0 }
 0x14d   :  { %v5155_v34 = vpop.f32.mrb[50].mxu0 }
 0x14e   :  { %v5157_v35 = vpop.f32.mrb[51].mxu0 }
 0x153   :  { %v5159_v36 = vpop.f32.mrb[52].mxu0 }
 0x154   :  { %v5161_v43 = vpop.f32.mrb[53].mxu0 }
 0x155   :  { %v5163_v46 = vpop.f32.mrb[54].mxu0 }
 0x156   :  { %v5165_v49 = vpop.f32.mrb[55].mxu0 }
 0x15b   :  { %v5167_v52 = vpop.f32.mrb[56].mxu0 }
 0x15c   :  { %v5169_v39 = vpop.f32.mrb[57].mxu0 }
 0x15d   :  { %v5171_v37 = vpop.f32.mrb[58].mxu0 }
 0x15e   :  { %v5173_v40 = vpop.f32.mrb[59].mxu0 }
 0x163   :  { %v4178_v47 = vpop.f32.mrb[60].mxu0 }
 0x164   :  { %v674_v42 = vadd.f32 %v4178_v47, %v5178_v38  ;;  %v665_v50 = vpop.f32.mrb[61].mxu0 }
 0x165   :  { %v666_v44 = vadd.f32 %v5178_v38, %v665_v50  ;;  %v4179_v56 = vpop.f32.mrb[62].mxu0 }
 0x166   :  { %v825_v54 = vadd.f32 %v5048_v45, %v674_v42  ;;  %v677_v57 = vadd.f32 %v4179_v56, %v5178_v38  ;;  %v668_v55 = vpop.f32.mrb[63].mxu0 }
 0x167   :  { %v823_v60 = vadd.f32 %v5053_v48, %v666_v44  ;;  %v669_v58 = vadd.f32 %v5178_v38, %v668_v55 }
 0x168   :  { %v3903_v61 = vmul.f32 -1.442695, %v825_v54  ;;  %v826_v59 = vadd.f32 %v5060_v51, %v677_v57  ;;  %v856_v51 = vpop.permute.xlu0 %855 }
 0x169   :  { %v3901_v0 = vmul.f32 -1.442695, %v823_v60  ;;  %v824_v62 = vadd.f32 %v5065_v53, %v669_v58  ;;  %v860_v60 = vpop.permute.xlu1 %859 }
 0x16a   :  { %4352 = vpow2.f32 %v3903_v61  ;;  %v3904_v47 = vmul.f32 -1.442695, %v826_v59 }
 0x16b   :  { %4354 = vpow2.f32 %v3901_v0  ;;  %v3902_v50 = vmul.f32 -1.442695, %v824_v62 }
 0x16c   :  { %4356 = vpow2.f32 %v3904_v47  ;;  %v858_v0 = vpop.permute.xlu0 %857 }
 0x16d   :  { %4358 = vpow2.f32 %v3902_v50 }
 0x174   :  { %v4353_v45 = vpop.eup %4352 }
 0x175   :  { %v4355_v1 = vpop.eup %4354  ;;  %v841_v56 = vadd.f32 1.0, %v4353_v45 }
 0x176   :  { %v4357_v63 = vpop.eup %4356  ;;  %v839_v4 = vadd.f32 1.0, %v4355_v1  ;;  %v862_v1 = vpop.permute.xlu1 %861 }
 0x177   :  { %v4359_v48 = vpop.eup %4358  ;;  %v842_v55 = vadd.f32 1.0, %v4357_v63 }
 0x178   :  { %4360 = vrcp.f32 %v839_v4  ;;  %v840_v54 = vadd.f32 1.0, %v4359_v48 }
 0x179   :  { %4362 = vrcp.f32 %v841_v56 }
 0x17a   :  { %4364 = vrcp.f32 %v840_v54 }
 0x17b   :  { %4366 = vrcp.f32 %v842_v55 }
 0x182   :  { %v4361_v53 = vpop.eup %4360 }
 0x183   :  { %v4363_v59 = vpop.eup %4362  ;;  %v867_v61 = vmul.f32 %v4361_v53, %v856_v51 }
 0x184   :  { %v4365_v62 = vpop.eup %4364  ;;  %v869_v45 = vmul.f32 %v4363_v59, %v860_v60 }
 0x185   :  { %v868_v47 = vmul.f32 %v4365_v62, %v858_v0  ;;  %875 = vrot.lane.b32.xlu0 %v867_v61, %s4820_s0  ;;  %v4367_v50 = vpop.eup %4366 }
 0x186   :  { %v870_v63 = vmul.f32 %v4367_v50, %v862_v1  ;;  %v922_v2 = vmul.f32 0.0, %v4367_v50 }
 0x187   :  { %877 = vrot.lane.b32.xlu1 %v868_v47, %s4820_s0 }
 0x189   :  { %879 = vrot.lane.b32.xlu0 %v869_v45, %s4820_s0 }
 0x18b   :  { %881 = vrot.lane.b32.xlu1 %v870_v63, %s4820_s0  ;;  %v896_v63 = vsub.f32 1.0, %v4365_v62 }
 0x1f7   :  { %v876_v4 = vpop.permute.xlu0 %875 }
 0x1f8   :  { %v887_v56 = vadd.f32 %v876_v4, %v666_v44 }
 0x1f9   :  { %v878_v48 = vpop.permute.xlu1 %877 }
 0x1fa   :  { %4368 = vtanh.f32 %v887_v56  ;;  %v888_v55 = vadd.f32 %v878_v48, %v669_v58  ;;  %v895_v58 = vsub.f32 1.0, %v4361_v53  ;;  %v920_v56 = vmul.f32 0.0, %v4365_v62 }
 0x1fb   :  { %v880_v54 = vpop.permute.xlu0 %879 }
 0x1fc   :  { %4370 = vtanh.f32 %v888_v55  ;;  %v889_v51 = vadd.f32 %v880_v54, %v674_v42  ;;  %v897_v55 = vsub.f32 1.0, %v4363_v59 }
 0x1fd   :  { %v882_v0 = vpop.permute.xlu1 %881 }
 0x1fe   :  { %4372 = vtanh.f32 %v889_v51  ;;  %v890_v61 = vadd.f32 %v882_v0, %v677_v57  ;;  %v919_v57 = vmul.f32 0.0, %v4361_v53 }
 0x200   :  { %4374 = vtanh.f32 %v890_v61 }
 0x204   :  { %v4369_v60 = vpop.eup %4368 }
 0x205   :  { %903 = vrot.lane.b32.xlu0 %v4369_v60, %s4821_s20  ;;  %v898_v60 = vsub.f32 1.0, %v4367_v50 }
 0x206   :  { %v4371_v47 = vpop.eup %4370 }
 0x207   :  { %905 = vrot.lane.b32.xlu1 %v4371_v47, %s4821_s20 }
 0x208   :  { %v4373_v45 = vpop.eup %4372 }
 0x209   :  { %907 = vrot.lane.b32.xlu0 %v4373_v45, %s4821_s20  ;;  %v921_v45 = vmul.f32 0.0, %v4363_v59 }
 0x20a   :  { %v4375_v44 = vpop.eup %4374 }
 0x20b   :  { %909 = vrot.lane.b32.xlu1 %v4375_v44, %s4821_s20 }
 0x277   :  { %v904_v1 = vpop.permute.xlu0 %903 }
 0x278   :  { %v915_v42 = vmul.f32 %v904_v1, %v895_v58 }
 0x279   :  { %v906_v4 = vpop.permute.xlu1 %905 }
 0x27a   :  { %v916_v48 = vmul.f32 %v906_v4, %v896_v63  ;;  %v5196_v51 = vadd.f32 %v919_v57, %v915_v42 }
 0x27b   :  { %v908_v54 = vpop.permute.xlu0 %907 }
 0x27c   :  { %v5198_v0 = vadd.f32 %v920_v56, %v916_v48  ;;  %v917_v61 = vmul.f32 %v908_v54, %v897_v55  ;;  %v650_v54 = vadd.f32 %v5178_v38, %v5169_v39 }
 0x27d   :  { %v910_v47 = vpop.permute.xlu1 %909 }
 0x27e   :  { %v918_v44 = vmul.f32 %v910_v47, %v898_v60  ;;  %v941_v58 = vpack.c.bf16 %v5198_v0, %v5196_v51  ;;  %v5202_v1 = vadd.f32 %v921_v45, %v917_v61  ;;  %v653_v61 = vadd.f32 %v5178_v38, %v5173_v40 }
 0x27f   :  { %v658_v47 = vadd.f32 %v5167_v52, %v5178_v38 }
 0x280   :  { %v5204_v53 = vadd.f32 %v922_v2, %v918_v44  ;;  %945 = vrot.lane.b32.xlu0 %v941_v58, %s4821_s20  ;;  %v661_v44 = vadd.f32 %v5171_v37, %v5178_v38 }
 0x282   :  { %v942_v62 = vpack.c.bf16 %v5204_v53, %v5202_v1 }
 0x284   :  { %947 = vrot.lane.b32.xlu1 %v942_v62, %s4821_s20 }
 0x2f2   :  { %v946_v42 = vpop.permute.xlu0 %945 }
 0x2f3   :  { %4192 = vmatprep.mubr.msk.bf16.mxu1 %vm294_vm0, %v946_v42 }
 0x2f6   :  { %v948_v59 = vpop.permute.xlu1 %947 }
 0x2f7   :  { %4193 = vmatmul.mubr.msk.bf16.vlgmr.msra.gmra.mrb[4].mxu1 %vm294_vm0, %v948_v59 }
 0x2f8   :  { %4197 = vmatpush3.bf16.msra.mxu1 %v4896_v6 }
 0x2f9   :  { %4198 = vmatprep.subr.bf16.mxu1 %v4901_v7 }
 0x2fc   :  { %4199 = vmatpush3.bf16.msra.mxu1 %v4901_v7 }
 0x2fd   :  { %4204 = vmatprep.subr.bf16.mxu1 %v4896_v6 }
 0x3ca   :  { %v4194_v2 = vpop.f32.mrb[4].mxu1 }
 0x3cb   :  { %v989_v50 = vpop.f32.mrb[5].mxu1  ;;  %v998_v48 = vadd.f32 %v4194_v2, %v5041_v41 }
 0x3cc   :  { %v990_v63 = vadd.f32 %v5041_v41, %v989_v50  ;;  %v4195_v4 = vpop.f32.mrb[6].mxu1 }
 0x3cd   :  { %v992_v57 = vpop.f32.mrb[7].mxu1  ;;  %v1001_v55 = vadd.f32 %v4195_v4, %v5041_v41  ;;  %v1006_v58 = vadd.f32 %v998_v48, %v658_v47 }
 0x3ce   :  { %v993_v56 = vadd.f32 %v5041_v41, %v992_v57  ;;  %1036 = vrot.lane.b32.xlu0 %v990_v63, %s4820_s0  ;;  %v1004_v60 = vadd.f32 %v990_v63, %v650_v54 }
 0x3cf   :  { %v1007_v42 = vadd.f32 %v1001_v55, %v661_v44  ;;  %v3910_v2 = vmul.f32 -1.442695, %v1006_v58 }
 0x3d0   :  { %1038 = vrot.lane.b32.xlu1 %v993_v56, %s4820_s0  ;;  %v1005_v45 = vadd.f32 %v993_v56, %v653_v61  ;;  %v3908_v62 = vmul.f32 -1.442695, %v1004_v60 }
 0x3d1   :  { %v3911_v50 = vmul.f32 -1.442695, %v1007_v42 }
 0x3d2   :  { %1040 = vrot.lane.b32.xlu0 %v998_v48, %s4820_s0  ;;  %v3909_v59 = vmul.f32 -1.442695, %v1005_v45  ;;  %4376 = vpow2.f32 %v3908_v62 }
 0x3d4   :  { %1042 = vrot.lane.b32.xlu1 %v1001_v55, %s4820_s0  ;;  %4378 = vpow2.f32 %v3909_v59 }
 0x3d5   :  { %4380 = vpow2.f32 %v3910_v2 }
 0x3d6   :  { %4382 = vpow2.f32 %v3911_v50 }
 0x3dc   :  { %v4377_v39 = vpop.eup %4376 }
 0x3dd   :  { %v1020_v63 = vadd.f32 1.0, %v4377_v39 }
 0x3de   :  { %v4379_v40 = vpop.eup %4378 }
 0x3df   :  { %v4381_v4 = vpop.eup %4380  ;;  %v1021_v57 = vadd.f32 1.0, %v4379_v40  ;;  %4384 = vrcp.f32 %v1020_v63 }
 0x3e0   :  { %v4383_v52 = vpop.eup %4382  ;;  %v1022_v56 = vadd.f32 1.0, %v4381_v4 }
 0x3e1   :  { %v1023_v5 = vadd.f32 1.0, %v4383_v52  ;;  %4386 = vrcp.f32 %v1021_v57 }
 0x3e2   :  { %4388 = vrcp.f32 %v1022_v56 }
 0x3e3   :  { %4390 = vrcp.f32 %v1023_v5 }
 0x3e9   :  { %v4385_v37 = vpop.eup %4384 }
 0x3eb   :  { %v4387_v60 = vpop.eup %4386 }
 0x3ec   :  { %v4389_v62 = vpop.eup %4388 }
 0x3ed   :  { %v4391_v2 = vpop.eup %4390 }
 0x440   :  { %v1037_v48 = vpop.permute.xlu0 %1036 }
 0x441   :  { %v1048_v55 = vmul.f32 %v4385_v37, %v1037_v48 }
 0x442   :  { %v1039_v45 = vpop.permute.xlu1 %1038 }
 0x443   :  { %v1049_v58 = vmul.f32 %v4387_v60, %v1039_v45  ;;  %1056 = vrot.lane.b32.xlu0 %v1048_v55, %s4820_s0 }
 0x444   :  { %v1041_v42 = vpop.permute.xlu0 %1040 }
 0x445   :  { %v1050_v59 = vmul.f32 %v4389_v62, %v1041_v42  ;;  %1058 = vrot.lane.b32.xlu1 %v1049_v58, %s4820_s0 }
 0x446   :  { %v1043_v50 = vpop.permute.xlu1 %1042 }
 0x447   :  { %v1051_v39 = vmul.f32 %v4391_v2, %v1043_v50  ;;  %1060 = vrot.lane.b32.xlu0 %v1050_v59, %s4820_s0  ;;  %v1077_v59 = vsub.f32 1.0, %v4387_v60 }
 0x449   :  { %1062 = vrot.lane.b32.xlu1 %v1051_v39, %s4820_s0 }
 0x4b5   :  { %v1057_v5 = vpop.permute.xlu0 %1056 }
 0x4b6   :  { %v1068_v40 = vadd.f32 %v1057_v5, %v650_v54  ;;  %v1078_v5 = vsub.f32 1.0, %v4389_v62 }
 0x4b7   :  { %v1059_v63 = vpop.permute.xlu1 %1058 }
 0x4b8   :  { %4392 = vtanh.f32 %v1068_v40  ;;  %v1069_v4 = vadd.f32 %v1059_v63, %v653_v61  ;;  %v1076_v61 = vsub.f32 1.0, %v4385_v37  ;;  %v1100_v40 = vmul.f32 %v4385_v37, %v5196_v51 }
 0x4b9   :  { %v1061_v57 = vpop.permute.xlu0 %1060 }
 0x4ba   :  { %4394 = vtanh.f32 %v1069_v4  ;;  %v1070_v52 = vadd.f32 %v1061_v57, %v658_v47 }
 0x4bb   :  { %v1063_v56 = vpop.permute.xlu1 %1062 }
 0x4bc   :  { %4396 = vtanh.f32 %v1070_v52  ;;  %v1071_v48 = vadd.f32 %v1063_v56, %v661_v44  ;;  %v1101_v44 = vmul.f32 %v4387_v60, %v5198_v0  ;;  %v1079_v52 = vsub.f32 1.0, %v4391_v2 }
 0x4be   :  { %4398 = vtanh.f32 %v1071_v48 }
 0x4c2   :  { %v4393_v55 = vpop.eup %4392 }
 0x4c3   :  { %1084 = vrot.lane.b32.xlu0 %v4393_v55, %s4821_s20  ;;  %v1102_v55 = vmul.f32 %v4389_v62, %v5202_v1 }
 0x4c4   :  { %v4395_v45 = vpop.eup %4394 }
 0x4c5   :  { %1086 = vrot.lane.b32.xlu1 %v4395_v45, %s4821_s20  ;;  %v1103_v45 = vmul.f32 %v4391_v2, %v5204_v53 }
 0x4c6   :  { %v4397_v58 = vpop.eup %4396 }
 0x4c7   :  { %1088 = vrot.lane.b32.xlu0 %v4397_v58, %s4821_s20 }
 0x4c8   :  { %v4399_v54 = vpop.eup %4398 }
 0x4c9   :  { %1090 = vrot.lane.b32.xlu1 %v4399_v54, %s4821_s20 }
 0x535   :  { %v1085_v42 = vpop.permute.xlu0 %1084 }
 0x536   :  { %v1096_v47 = vmul.f32 %v1085_v42, %v1076_v61 }
 0x537   :  { %v1087_v50 = vpop.permute.xlu1 %1086 }
 0x538   :  { %v1097_v39 = vmul.f32 %v1087_v50, %v1077_v59  ;;  %v5244_v56 = vadd.f32 %v1100_v40, %v1096_v47 }
 0x539   :  { %v1089_v63 = vpop.permute.xlu0 %1088 }
 0x53a   :  { %v5242_v4 = vadd.f32 %v1101_v44, %v1097_v39  ;;  %v1098_v57 = vmul.f32 %v1089_v63, %v1078_v5 }
 0x53b   :  { %v1091_v48 = vpop.permute.xlu1 %1090 }
 0x53c   :  { %v1099_v58 = vmul.f32 %v1091_v48, %v1079_v52  ;;  %v1122_v60 = vpack.c.bf16 %v5242_v4, %v5244_v56  ;;  %v5250_v54 = vadd.f32 %v1102_v55, %v1098_v57  ;;  %v642_v57 = vadd.f32 %v5159_v36, %v5178_v38 }
 0x53d   :  { %v645_v48 = vadd.f32 %v5163_v46, %v5178_v38 }
 0x53e   :  { %v5252_v61 = vadd.f32 %v1103_v45, %v1099_v58  ;;  %1126 = vrot.lane.b32.xlu0 %v1122_v60, %s4821_s20 }
 0x540   :  { %v1123_v37 = vpack.c.bf16 %v5252_v61, %v5250_v54 }
 0x542   :  { %1128 = vrot.lane.b32.xlu1 %v1123_v37, %s4821_s20 }
 0x5b0   :  { %v1127_v42 = vpop.permute.xlu0 %1126 }
 0x5b1   :  { %4200 = vmatprep.mubr.msk.bf16.mxu1 %vm294_vm0, %v1127_v42 }
 0x5b4   :  { %v1129_v62 = vpop.permute.xlu1 %1128 }
 0x5b5   :  { %4201 = vmatmul.mubr.msk.bf16.vlgmr.msra.gmra.mrb[8].mxu1 %vm294_vm0, %v1129_v62 }
 0x5b6   :  { %4205 = vmatpush3.bf16.msra.mxu1 %v4896_v6 }
 0x5b7   :  { %4206 = vmatprep.subr.bf16.mxu1 %v4901_v7 }
 0x5ba   :  { %4207 = vmatpush3.bf16.msra.mxu1 %v4901_v7  ;;  %v637_v7 = vadd.f32 %v5178_v38, %v5165_v49 }
 0x5bb   :  { %4212 = vmatprep.subr.bf16.mxu1 %v4896_v6  ;;  %v634_v6 = vadd.f32 %v5178_v38, %v5161_v43 }
 0x688   :  { %v4202_v2 = vpop.f32.mrb[8].mxu1 }
 0x689   :  { %v1170_v59 = vpop.f32.mrb[9].mxu1  ;;  %v1179_v5 = vadd.f32 %v4202_v2, %v5041_v41 }
 0x68a   :  { %v1171_v47 = vadd.f32 %v5041_v41, %v1170_v59  ;;  %v4203_v50 = vpop.f32.mrb[10].mxu1 }
 0x68b   :  { %v1173_v44 = vpop.f32.mrb[11].mxu1  ;;  %v1182_v40 = vadd.f32 %v4203_v50, %v5041_v41  ;;  %v1187_v55 = vadd.f32 %v1179_v5, %v642_v57 }
 0x68c   :  { %v1174_v39 = vadd.f32 %v5041_v41, %v1173_v44  ;;  %1217 = vrot.lane.b32.xlu0 %v1171_v47, %s4820_s0  ;;  %v1185_v63 = vadd.f32 %v1171_v47, %v634_v6 }
 0x68d   :  { %v1188_v58 = vadd.f32 %v1182_v40, %v645_v48  ;;  %v3917_v37 = vmul.f32 -1.442695, %v1187_v55 }
 0x68e   :  { %1219 = vrot.lane.b32.xlu1 %v1174_v39, %s4820_s0  ;;  %v1186_v52 = vadd.f32 %v1174_v39, %v637_v7  ;;  %v3915_v45 = vmul.f32 -1.442695, %v1185_v63 }
 0x68f   :  { %v3918_v42 = vmul.f32 -1.442695, %v1188_v58 }
 0x690   :  { %1221 = vrot.lane.b32.xlu0 %v1179_v5, %s4820_s0  ;;  %v3916_v60 = vmul.f32 -1.442695, %v1186_v52  ;;  %4400 = vpow2.f32 %v3915_v45 }
 0x692   :  { %1223 = vrot.lane.b32.xlu1 %v1182_v40, %s4820_s0  ;;  %4402 = vpow2.f32 %v3916_v60 }
 0x693   :  { %4404 = vpow2.f32 %v3917_v37 }
 0x694   :  { %4406 = vpow2.f32 %v3918_v42 }
 0x69a   :  { %v4401_v43 = vpop.eup %4400 }
 0x69b   :  { %v1201_v62 = vadd.f32 1.0, %v4401_v43 }
 0x69c   :  { %v4403_v49 = vpop.eup %4402 }
 0x69d   :  { %v4405_v2 = vpop.eup %4404  ;;  %v1202_v59 = vadd.f32 1.0, %v4403_v49  ;;  %4408 = vrcp.f32 %v1201_v62 }
 0x69e   :  { %v4407_v36 = vpop.eup %4406  ;;  %v1203_v47 = vadd.f32 1.0, %v4405_v2 }
 0x69f   :  { %v1204_v50 = vadd.f32 1.0, %v4407_v36  ;;  %4410 = vrcp.f32 %v1202_v59 }
 0x6a0   :  { %4412 = vrcp.f32 %v1203_v47 }
 0x6a1   :  { %4414 = vrcp.f32 %v1204_v50 }
 0x6a7   :  { %v4409_v46 = vpop.eup %4408 }
 0x6a9   :  { %v4411_v5 = vpop.eup %4410 }
 0x6aa   :  { %v4413_v52 = vpop.eup %4412 }
 0x6ab   :  { %v4415_v58 = vpop.eup %4414 }
 0x6fe   :  { %v1218_v44 = vpop.permute.xlu0 %1217 }
 0x6ff   :  { %v1229_v39 = vmul.f32 %v4409_v46, %v1218_v44 }
 0x700   :  { %v1220_v40 = vpop.permute.xlu1 %1219 }
 0x701   :  { %v1230_v63 = vmul.f32 %v4411_v5, %v1220_v40  ;;  %1237 = vrot.lane.b32.xlu0 %v1229_v39, %s4820_s0 }
 0x702   :  { %v1222_v55 = vpop.permute.xlu0 %1221 }
 0x703   :  { %v1231_v45 = vmul.f32 %v4413_v52, %v1222_v55  ;;  %1239 = vrot.lane.b32.xlu1 %v1230_v63, %s4820_s0  ;;  %v1258_v63 = vsub.f32 1.0, %v4411_v5 }
 0x704   :  { %v1224_v60 = vpop.permute.xlu1 %1223 }
 0x705   :  { %v1232_v37 = vmul.f32 %v4415_v58, %v1224_v60  ;;  %1241 = vrot.lane.b32.xlu0 %v1231_v45, %s4820_s0  ;;  %v1259_v60 = vsub.f32 1.0, %v4413_v52 }
 0x707   :  { %1243 = vrot.lane.b32.xlu1 %v1232_v37, %s4820_s0  ;;  %v1281_v37 = vmul.f32 %v4409_v46, %v5244_v56 }
 0x773   :  { %v1238_v42 = vpop.permute.xlu0 %1237 }
 0x774   :  { %v1249_v43 = vadd.f32 %v1238_v42, %v634_v6 }
 0x775   :  { %v1240_v49 = vpop.permute.xlu1 %1239 }
 0x776   :  { %4416 = vtanh.f32 %v1249_v43  ;;  %v1250_v62 = vadd.f32 %v1240_v49, %v637_v7  ;;  %v1257_v7 = vsub.f32 1.0, %v4409_v46 }
 0x777   :  { %v1242_v2 = vpop.permute.xlu0 %1241 }
 0x778   :  { %4418 = vtanh.f32 %v1250_v62  ;;  %v1251_v59 = vadd.f32 %v1242_v2, %v642_v57  ;;  %v1260_v62 = vsub.f32 1.0, %v4415_v58 }
 0x779   :  { %v1244_v36 = vpop.permute.xlu1 %1243 }
 0x77a   :  { %4420 = vtanh.f32 %v1251_v59  ;;  %v1252_v47 = vadd.f32 %v1244_v36, %v645_v48  ;;  %v1282_v48 = vmul.f32 %v4411_v5, %v5242_v4  ;;  %v1283_v36 = vmul.f32 %v4413_v52, %v5250_v54 }
 0x77c   :  { %4422 = vtanh.f32 %v1252_v47  ;;  %v1284_v47 = vmul.f32 %v4415_v58, %v5252_v61  ;;  %v5311_v58 = vld [vmem:[%s6112_s2] sm:$0xff]  }
 0x780   :  { %v4417_v50 = vpop.eup %4416 }
 0x781   :  { %1265 = vrot.lane.b32.xlu0 %v4417_v50, %s4821_s20 }
 0x782   :  { %v4419_v44 = vpop.eup %4418 }
 0x783   :  { %1267 = vrot.lane.b32.xlu1 %v4419_v44, %s4821_s20 }
 0x784   :  { %v4421_v39 = vpop.eup %4420 }
 0x785   :  { %1269 = vrot.lane.b32.xlu0 %v4421_v39, %s4821_s20 }
 0x786   :  { %v4423_v6 = vpop.eup %4422 }
 0x787   :  { %1271 = vrot.lane.b32.xlu1 %v4423_v6, %s4821_s20 }
 0x7f3   :  { %v1266_v40 = vpop.permute.xlu0 %1265 }
 0x7f4   :  { %v1277_v57 = vmul.f32 %v1266_v40, %v1257_v7  ;;  %v5317_v7 = vld [vmem:[%s6112_s2 + $0x8] sm:$0xff]  }
 0x7f5   :  { %v1268_v55 = vpop.permute.xlu1 %1267 }
 0x7f6   :  { %v1278_v45 = vmul.f32 %v1268_v55, %v1258_v63  ;;  %v5292_v2 = vadd.f32 %v1281_v37, %v1277_v57 }
 0x7f7   :  { %v1270_v42 = vpop.permute.xlu0 %1269 }
 0x7f8   :  { %v5290_v43 = vadd.f32 %v1282_v48, %v1278_v45  ;;  %v1279_v49 = vmul.f32 %v1270_v42, %v1259_v60  ;;  %v618_v42 = vadd.f32 %v5178_v38, %v5153_v33 }
 0x7f9   :  { %v1272_v59 = vpop.permute.xlu1 %1271 }
 0x7fa   :  { %v1280_v50 = vmul.f32 %v1272_v59, %v1260_v62  ;;  %v1303_v5 = vpack.c.bf16 %v5290_v43, %v5292_v2  ;;  %v5298_v44 = vadd.f32 %v1283_v36, %v1279_v49  ;;  %v621_v49 = vadd.f32 %v5178_v38, %v5157_v35 }
 0x7fb   :  { %v626_v59 = vadd.f32 %v5151_v32, %v5178_v38 }
 0x7fc   :  { %v5300_v39 = vadd.f32 %v1284_v47, %v1280_v50  ;;  %1307 = vrot.lane.b32.xlu0 %v1303_v5, %s4821_s20  ;;  %v629_v47 = vadd.f32 %v5155_v34, %v5178_v38 }
 0x7fe   :  { %v1304_v46 = vpack.c.bf16 %v5300_v39, %v5298_v44 }
 0x800   :  { %1309 = vrot.lane.b32.xlu1 %v1304_v46, %s4821_s20 }
 0x86e   :  { %v1308_v6 = vpop.permute.xlu0 %1307 }
 0x86f   :  { %4208 = vmatprep.mubr.msk.bf16.mxu1 %vm294_vm0, %v1308_v6 }
 0x872   :  { %v1310_v52 = vpop.permute.xlu1 %1309 }
 0x873   :  { %4209 = vmatmul.mubr.msk.bf16.vlgmr.msra.gmra.mrb[12].mxu1 %vm294_vm0, %v1310_v52 }
 0x874   :  { %4213 = vmatpush3.bf16.msra.mxu1 %v5311_v58 }
 0x875   :  { %4214 = vmatprep.subr.bf16.mxu1 %v5317_v7 }
 0x878   :  { %4215 = vmatpush3.bf16.msra.mxu1 %v5317_v7 }
 0x879   :  { %4220 = vmatprep.subr.bf16.mxu1 %v5311_v58 }
 0x946   :  { %v4210_v40 = vpop.f32.mrb[12].mxu1 }
 0x947   :  { %v1351_v63 = vpop.f32.mrb[13].mxu1  ;;  %v1360_v60 = vadd.f32 %v4210_v40, %v5041_v41 }
 0x948   :  { %v1352_v57 = vadd.f32 %v5041_v41, %v1351_v63  ;;  %v4211_v55 = vpop.f32.mrb[14].mxu1 }
 0x949   :  { %v1354_v48 = vpop.f32.mrb[15].mxu1  ;;  %v1363_v37 = vadd.f32 %v4211_v55, %v5041_v41  ;;  %v1368_v50 = vadd.f32 %v1360_v60, %v626_v59 }
 0x94a   :  { %v1355_v45 = vadd.f32 %v5041_v41, %v1354_v48  ;;  %1398 = vrot.lane.b32.xlu0 %v1352_v57, %s4820_s0  ;;  %v1366_v62 = vadd.f32 %v1352_v57, %v618_v42 }
 0x94b   :  { %v1369_v46 = vadd.f32 %v1363_v37, %v629_v47  ;;  %v3924_v52 = vmul.f32 -1.442695, %v1368_v50 }
 0x94c   :  { %1400 = vrot.lane.b32.xlu1 %v1355_v45, %s4820_s0  ;;  %v1367_v36 = vadd.f32 %v1355_v45, %v621_v49  ;;  %v3922_v5 = vmul.f32 -1.442695, %v1366_v62 }
 0x94d   :  { %v3925_v40 = vmul.f32 -1.442695, %v1369_v46 }
 0x94e   :  { %1402 = vrot.lane.b32.xlu0 %v1360_v60, %s4820_s0  ;;  %v3923_v6 = vmul.f32 -1.442695, %v1367_v36  ;;  %4424 = vpow2.f32 %v3922_v5 }
 0x950   :  { %1404 = vrot.lane.b32.xlu1 %v1363_v37, %s4820_s0  ;;  %4426 = vpow2.f32 %v3923_v6 }
 0x951   :  { %4428 = vpow2.f32 %v3924_v52 }
 0x952   :  { %4430 = vpow2.f32 %v3925_v40 }
 0x958   :  { %v4425_v33 = vpop.eup %4424 }
 0x959   :  { %v1382_v63 = vadd.f32 1.0, %v4425_v33 }
 0x95a   :  { %v4427_v35 = vpop.eup %4426 }
 0x95b   :  { %v4429_v57 = vpop.eup %4428  ;;  %v1383_v55 = vadd.f32 1.0, %v4427_v35  ;;  %4432 = vrcp.f32 %v1382_v63 }
 0x95c   :  { %v4431_v32 = vpop.eup %4430  ;;  %v1384_v48 = vadd.f32 1.0, %v4429_v57 }
 0x95d   :  { %v1385_v45 = vadd.f32 1.0, %v4431_v32  ;;  %4434 = vrcp.f32 %v1383_v55 }
 0x95e   :  { %4436 = vrcp.f32 %v1384_v48 }
 0x95f   :  { %4438 = vrcp.f32 %v1385_v45 }
 0x965   :  { %v4433_v34 = vpop.eup %4432 }
 0x967   :  { %v4435_v62 = vpop.eup %4434 }
 0x968   :  { %v4437_v5 = vpop.eup %4436 }
 0x969   :  { %v4439_v52 = vpop.eup %4438 }
 0x9bc   :  { %v1399_v60 = vpop.permute.xlu0 %1398 }
 0x9bd   :  { %v1410_v37 = vmul.f32 %v4433_v34, %v1399_v60 }
 0x9be   :  { %v1401_v36 = vpop.permute.xlu1 %1400 }
 0x9bf   :  { %v1411_v50 = vmul.f32 %v4435_v62, %v1401_v36  ;;  %1418 = vrot.lane.b32.xlu0 %v1410_v37, %s4820_s0 }
 0x9c0   :  { %v1403_v46 = vpop.permute.xlu0 %1402 }
 0x9c1   :  { %v1412_v6 = vmul.f32 %v4437_v5, %v1403_v46  ;;  %1420 = vrot.lane.b32.xlu1 %v1411_v50, %s4820_s0 }
 0x9c2   :  { %v1405_v40 = vpop.permute.xlu1 %1404 }
 0x9c3   :  { %v1413_v33 = vmul.f32 %v4439_v52, %v1405_v40  ;;  %1422 = vrot.lane.b32.xlu0 %v1412_v6, %s4820_s0  ;;  %v1439_v6 = vsub.f32 1.0, %v4435_v62 }
 0x9c5   :  { %1424 = vrot.lane.b32.xlu1 %v1413_v33, %s4820_s0 }
 0xa31   :  { %v1419_v35 = vpop.permute.xlu0 %1418 }
 0xa32   :  { %v1430_v63 = vadd.f32 %v1419_v35, %v618_v42  ;;  %v1440_v35 = vsub.f32 1.0, %v4437_v5 }
 0xa33   :  { %v1421_v57 = vpop.permute.xlu1 %1420 }
 0xa34   :  { %4440 = vtanh.f32 %v1430_v63  ;;  %v1431_v55 = vadd.f32 %v1421_v57, %v621_v49  ;;  %v1438_v49 = vsub.f32 1.0, %v4433_v34  ;;  %v1462_v63 = vmul.f32 %v4433_v34, %v5292_v2 }
 0xa35   :  { %v1423_v32 = vpop.permute.xlu0 %1422 }
 0xa36   :  { %4442 = vtanh.f32 %v1431_v55  ;;  %v1432_v48 = vadd.f32 %v1423_v32, %v626_v59 }
 0xa37   :  { %v1425_v45 = vpop.permute.xlu1 %1424 }
 0xa38   :  { %4444 = vtanh.f32 %v1432_v48  ;;  %v1433_v60 = vadd.f32 %v1425_v45, %v629_v47  ;;  %v1463_v47 = vmul.f32 %v4435_v62, %v5290_v43  ;;  %v1441_v48 = vsub.f32 1.0, %v4439_v52 }
 0xa3a   :  { %4446 = vtanh.f32 %v1433_v60 }
 0xa3e   :  { %v4441_v37 = vpop.eup %4440 }
 0xa3f   :  { %1446 = vrot.lane.b32.xlu0 %v4441_v37, %s4821_s20  ;;  %v1464_v37 = vmul.f32 %v4437_v5, %v5298_v44 }
 0xa40   :  { %v4443_v36 = vpop.eup %4442 }
 0xa41   :  { %1448 = vrot.lane.b32.xlu1 %v4443_v36, %s4821_s20  ;;  %v1465_v36 = vmul.f32 %v4439_v52, %v5300_v39 }
 0xa42   :  { %v4445_v50 = vpop.eup %4444 }
 0xa43   :  { %1450 = vrot.lane.b32.xlu0 %v4445_v50, %s4821_s20 }
 0xa44   :  { %v4447_v42 = vpop.eup %4446 }
 0xa45   :  { %1452 = vrot.lane.b32.xlu1 %v4447_v42, %s4821_s20 }
 0xab1   :  { %v1447_v46 = vpop.permute.xlu0 %1446 }
 0xab2   :  { %v1458_v59 = vmul.f32 %v1447_v46, %v1438_v49 }
 0xab3   :  { %v1449_v40 = vpop.permute.xlu1 %1448 }
 0xab4   :  { %v1459_v33 = vmul.f32 %v1449_v40, %v1439_v6  ;;  %v5350_v45 = vadd.f32 %v1462_v63, %v1458_v59 }
 0xab5   :  { %v1451_v57 = vpop.permute.xlu0 %1450 }
 0xab6   :  { %v5348_v55 = vadd.f32 %v1463_v47, %v1459_v33  ;;  %v1460_v32 = vmul.f32 %v1451_v57, %v1440_v35  ;;  %v602_v57 = vadd.f32 %v5178_v38, %v5145_v29 }
 0xab7   :  { %v1453_v60 = vpop.permute.xlu1 %1452 }
 0xab8   :  { %v1461_v50 = vmul.f32 %v1453_v60, %v1441_v48  ;;  %v1484_v62 = vpack.c.bf16 %v5348_v55, %v5350_v45  ;;  %v5356_v42 = vadd.f32 %v1464_v37, %v1460_v32  ;;  %v605_v32 = vadd.f32 %v5178_v38, %v5149_v31 }
 0xab9   :  { %v610_v60 = vadd.f32 %v5143_v28, %v5178_v38 }
 0xaba   :  { %v5358_v49 = vadd.f32 %v1465_v36, %v1461_v50  ;;  %1488 = vrot.lane.b32.xlu0 %v1484_v62, %s4821_s20  ;;  %v613_v36 = vadd.f32 %v5147_v30, %v5178_v38 }
 0xabc   :  { %v1485_v34 = vpack.c.bf16 %v5358_v49, %v5356_v42 }
 0xabe   :  { %1490 = vrot.lane.b32.xlu1 %v1485_v34, %s4821_s20 }
 0xb2c   :  { %v1489_v46 = vpop.permute.xlu0 %1488 }
 0xb2d   :  { %4216 = vmatprep.mubr.msk.bf16.mxu1 %vm294_vm0, %v1489_v46 }
 0xb30   :  { %v1491_v5 = vpop.permute.xlu1 %1490 }
 0xb31   :  { %4217 = vmatmul.mubr.msk.bf16.vlgmr.msra.gmra.mrb[16].mxu1 %vm294_vm0, %v1491_v5 }
 0xb32   :  { %4221 = vmatpush3.bf16.msra.mxu1 %v5311_v58 }
 0xb33   :  { %4222 = vmatprep.subr.bf16.mxu1 %v5317_v7 }
 0xb36   :  { %4223 = vmatpush3.bf16.msra.mxu1 %v5317_v7 }
 0xb37   :  { %4228 = vmatprep.subr.bf16.mxu1 %v5311_v58 }
 0xc04   :  { %v4218_v52 = vpop.f32.mrb[16].mxu1 }
 0xc05   :  { %v1532_v6 = vpop.f32.mrb[17].mxu1  ;;  %v1541_v35 = vadd.f32 %v4218_v52, %v5041_v41 }
 0xc06   :  { %v1533_v59 = vadd.f32 %v5041_v41, %v1532_v6  ;;  %v4219_v40 = vpop.f32.mrb[18].mxu1 }
 0xc07   :  { %v1535_v47 = vpop.f32.mrb[19].mxu1  ;;  %v1544_v63 = vadd.f32 %v4219_v40, %v5041_v41  ;;  %v1549_v50 = vadd.f32 %v1541_v35, %v610_v60 }
 0xc08   :  { %v1536_v33 = vadd.f32 %v5041_v41, %v1535_v47  ;;  %1579 = vrot.lane.b32.xlu0 %v1533_v59, %s4820_s0  ;;  %v1547_v48 = vadd.f32 %v1533_v59, %v602_v57 }
 0xc09   :  { %v1550_v62 = vadd.f32 %v1544_v63, %v613_v36  ;;  %v3931_v46 = vmul.f32 -1.442695, %v1549_v50 }
 0xc0a   :  { %1581 = vrot.lane.b32.xlu1 %v1536_v33, %s4820_s0  ;;  %v1548_v37 = vadd.f32 %v1536_v33, %v605_v32  ;;  %v3929_v41 = vmul.f32 -1.442695, %v1547_v48 }
 0xc0b   :  { %v3932_v5 = vmul.f32 -1.442695, %v1550_v62 }
 0xc0c   :  { %1583 = vrot.lane.b32.xlu0 %v1541_v35, %s4820_s0  ;;  %v3930_v34 = vmul.f32 -1.442695, %v1548_v37  ;;  %4448 = vpow2.f32 %v3929_v41 }
 0xc0e   :  { %1585 = vrot.lane.b32.xlu1 %v1544_v63, %s4820_s0  ;;  %4450 = vpow2.f32 %v3930_v34 }
 0xc0f   :  { %4452 = vpow2.f32 %v3931_v46 }
 0xc10   :  { %4454 = vpow2.f32 %v3932_v5 }
 0xc16   :  { %v4449_v29 = vpop.eup %4448 }
 0xc17   :  { %v1563_v52 = vadd.f32 1.0, %v4449_v29 }
 0xc18   :  { %v4451_v31 = vpop.eup %4450 }
 0xc19   :  { %v4453_v6 = vpop.eup %4452  ;;  %v1564_v59 = vadd.f32 1.0, %v4451_v31  ;;  %4456 = vrcp.f32 %v1563_v52 }
 0xc1a   :  { %v4455_v28 = vpop.eup %4454  ;;  %v1565_v40 = vadd.f32 1.0, %v4453_v6 }
 0xc1b   :  { %v1566_v47 = vadd.f32 1.0, %v4455_v28  ;;  %4458 = vrcp.f32 %v1564_v59 }
 0xc1c   :  { %4460 = vrcp.f32 %v1565_v40 }
 0xc1d   :  { %4462 = vrcp.f32 %v1566_v47 }
 0xc23   :  { %v4457_v38 = vpop.eup %4456 }
 0xc25   :  { %v4459_v35 = vpop.eup %4458 }
 0xc26   :  { %v4461_v37 = vpop.eup %4460 }
 0xc27   :  { %v4463_v62 = vpop.eup %4462 }
 0xc7a   :  { %v1580_v30 = vpop.permute.xlu0 %1579 }
 0xc7b   :  { %v1591_v33 = vmul.f32 %v4457_v38, %v1580_v30 }
 0xc7c   :  { %v1582_v63 = vpop.permute.xlu1 %1581 }
 0xc7d   :  { %v1592_v48 = vmul.f32 %v4459_v35, %v1582_v63  ;;  %1599 = vrot.lane.b32.xlu0 %v1591_v33, %s4820_s0 }
 0xc7e   :  { %v1584_v50 = vpop.permute.xlu0 %1583 }
 0xc7f   :  { %v1593_v41 = vmul.f32 %v4461_v37, %v1584_v50  ;;  %1601 = vrot.lane.b32.xlu1 %v1592_v48, %s4820_s0  ;;  %v1620_v48 = vsub.f32 1.0, %v4459_v35 }
 0xc80   :  { %v1586_v34 = vpop.permute.xlu1 %1585 }
 0xc81   :  { %v1594_v46 = vmul.f32 %v4463_v62, %v1586_v34  ;;  %1603 = vrot.lane.b32.xlu0 %v1593_v41, %s4820_s0  ;;  %v1621_v34 = vsub.f32 1.0, %v4461_v37 }
 0xc83   :  { %1605 = vrot.lane.b32.xlu1 %v1594_v46, %s4820_s0  ;;  %v1643_v46 = vmul.f32 %v4457_v38, %v5350_v45 }
 0xcef   :  { %v1600_v5 = vpop.permute.xlu0 %1599 }
 0xcf0   :  { %v1611_v29 = vadd.f32 %v1600_v5, %v602_v57 }
 0xcf1   :  { %v1602_v31 = vpop.permute.xlu1 %1601 }
 0xcf2   :  { %4464 = vtanh.f32 %v1611_v29  ;;  %v1612_v52 = vadd.f32 %v1602_v31, %v605_v32  ;;  %v1619_v32 = vsub.f32 1.0, %v4457_v38 }
 0xcf3   :  { %v1604_v6 = vpop.permute.xlu0 %1603 }
 0xcf4   :  { %4466 = vtanh.f32 %v1612_v52  ;;  %v1613_v59 = vadd.f32 %v1604_v6, %v610_v60  ;;  %v1622_v52 = vsub.f32 1.0, %v4463_v62 }
 0xcf5   :  { %v1606_v28 = vpop.permute.xlu1 %1605 }
 0xcf6   :  { %4468 = vtanh.f32 %v1613_v59  ;;  %v1614_v40 = vadd.f32 %v1606_v28, %v613_v36  ;;  %v1644_v36 = vmul.f32 %v4459_v35, %v5348_v55  ;;  %v1645_v28 = vmul.f32 %v4461_v37, %v5356_v42 }
 0xcf8   :  { %4470 = vtanh.f32 %v1614_v40  ;;  %v1646_v40 = vmul.f32 %v4463_v62, %v5358_v49 }
 0xcfc   :  { %v4465_v47 = vpop.eup %4464 }
 0xcfd   :  { %1627 = vrot.lane.b32.xlu0 %v4465_v47, %s4821_s20 }
 0xcfe   :  { %v4467_v30 = vpop.eup %4466 }
 0xcff   :  { %1629 = vrot.lane.b32.xlu1 %v4467_v30, %s4821_s20 }
 0xd00   :  { %v4469_v33 = vpop.eup %4468 }
 0xd01   :  { %1631 = vrot.lane.b32.xlu0 %v4469_v33, %s4821_s20 }
 0xd02   :  { %v4471_v57 = vpop.eup %4470 }
 0xd03   :  { %1633 = vrot.lane.b32.xlu1 %v4471_v57, %s4821_s20 }
 0xd6f   :  { %v1628_v63 = vpop.permute.xlu0 %1627 }
 0xd70   :  { %v1639_v60 = vmul.f32 %v1628_v63, %v1619_v32  ;;  %v5421_v63 = vld [vmem:[%s6114_s4] ss:$0 sm:$0xff] }
 0xd71   :  { %v1630_v50 = vpop.permute.xlu1 %1629 }
 0xd72   :  { %v1640_v41 = vmul.f32 %v1630_v50, %v1620_v48  ;;  %v5398_v6 = vadd.f32 %v1643_v46, %v1639_v60  ;;  %v5434_v46 = vld [vmem:[%s6113_s3] ss:$0 sm:$0xff] }
 0xd73   :  { %v1632_v5 = vpop.permute.xlu0 %1631 }
 0xd74   :  { %v5396_v29 = vadd.f32 %v1644_v36, %v1640_v41  ;;  %v1641_v31 = vmul.f32 %v1632_v5, %v1621_v34  ;;  %v586_v5 = vadd.f32 %v5434_v46, %v5137_v25 }
 0xd75   :  { %v1634_v59 = vpop.permute.xlu1 %1633 }
 0xd76   :  { %v1642_v47 = vmul.f32 %v1634_v59, %v1622_v52  ;;  %v1665_v35 = vpack.c.bf16 %v5396_v29, %v5398_v6  ;;  %v5404_v30 = vadd.f32 %v1645_v28, %v1641_v31  ;;  %v589_v31 = vadd.f32 %v5434_v46, %v5141_v27 }
 0xd77   :  { %v594_v59 = vadd.f32 %v5434_v46, %v5135_v24 }
 0xd78   :  { %v5406_v33 = vadd.f32 %v1646_v40, %v1642_v47  ;;  %1669 = vrot.lane.b32.xlu0 %v1665_v35, %s4821_s20  ;;  %v597_v40 = vadd.f32 %v5434_v46, %v5139_v26 }
 0xd7a   :  { %v1666_v38 = vpack.c.bf16 %v5406_v33, %v5404_v30 }
 0xd7c   :  { %1671 = vrot.lane.b32.xlu1 %v1666_v38, %s4821_s20 }
 0xdea   :  { %v1670_v57 = vpop.permute.xlu0 %1669 }
 0xdeb   :  { %4224 = vmatprep.mubr.msk.bf16.mxu1 %vm294_vm0, %v1670_v57 }
 0xdee   :  { %v1672_v37 = vpop.permute.xlu1 %1671 }
 0xdef   :  { %4225 = vmatmul.mubr.msk.bf16.vlgmr.msra.gmra.mrb[20].mxu1 %vm294_vm0, %v1672_v37 }
 0xdf0   :  { %4229 = vmatpush3.bf16.msra.mxu1 %v5311_v58 }
 0xdf1   :  { %4230 = vmatprep.subr.bf16.mxu1 %v5317_v7 }
 0xdf4   :  { %4231 = vmatpush3.bf16.msra.mxu1 %v5317_v7 }
 0xdf5   :  { %4236 = vmatprep.subr.bf16.mxu1 %v5311_v58 }
 0xec2   :  { %v4226_v62 = vpop.f32.mrb[20].mxu1 }
 0xec3   :  { %v1713_v32 = vpop.f32.mrb[21].mxu1  ;;  %v1722_v41 = vadd.f32 %v5421_v63, %v4226_v62 }
 0xec4   :  { %v1714_v48 = vadd.f32 %v5421_v63, %v1713_v32  ;;  %v4227_v60 = vpop.f32.mrb[22].mxu1 }
 0xec5   :  { %v1716_v50 = vpop.f32.mrb[23].mxu1  ;;  %v1725_v34 = vadd.f32 %v5421_v63, %v4227_v60  ;;  %v1730_v47 = vadd.f32 %v1722_v41, %v594_v59 }
 0xec6   :  { %v1717_v36 = vadd.f32 %v5421_v63, %v1716_v50  ;;  %1760 = vrot.lane.b32.xlu0 %v1714_v48, %s4820_s0  ;;  %v1728_v52 = vadd.f32 %v1714_v48, %v586_v5 }
 0xec7   :  { %v1731_v38 = vadd.f32 %v1725_v34, %v597_v40  ;;  %v3938_v37 = vmul.f32 -1.442695, %v1730_v47 }
 0xec8   :  { %1762 = vrot.lane.b32.xlu1 %v1717_v36, %s4820_s0  ;;  %v1729_v28 = vadd.f32 %v1717_v36, %v589_v31  ;;  %v3936_v35 = vmul.f32 -1.442695, %v1728_v52 }
 0xec9   :  { %v3939_v62 = vmul.f32 -1.442695, %v1731_v38 }
 0xeca   :  { %1764 = vrot.lane.b32.xlu0 %v1722_v41, %s4820_s0  ;;  %v3937_v57 = vmul.f32 -1.442695, %v1729_v28  ;;  %4472 = vpow2.f32 %v3936_v35 }
 0xecc   :  { %1766 = vrot.lane.b32.xlu1 %v1725_v34, %s4820_s0  ;;  %4474 = vpow2.f32 %v3937_v57 }
 0xecd   :  { %4476 = vpow2.f32 %v3938_v37 }
 0xece   :  { %4478 = vpow2.f32 %v3939_v62 }
 0xed4   :  { %v4473_v25 = vpop.eup %4472 }
 0xed5   :  { %v1744_v32 = vadd.f32 1.0, %v4473_v25 }
 0xed6   :  { %v4475_v27 = vpop.eup %4474 }
 0xed7   :  { %v4477_v48 = vpop.eup %4476  ;;  %v1745_v60 = vadd.f32 1.0, %v4475_v27  ;;  %4480 = vrcp.f32 %v1744_v32 }
 0xed8   :  { %v4479_v24 = vpop.eup %4478  ;;  %v1746_v50 = vadd.f32 1.0, %v4477_v48 }
 0xed9   :  { %v1747_v36 = vadd.f32 1.0, %v4479_v24  ;;  %4482 = vrcp.f32 %v1745_v60 }
 0xeda   :  { %4484 = vrcp.f32 %v1746_v50 }
 0xedb   :  { %4486 = vrcp.f32 %v1747_v36 }
 0xee1   :  { %v4481_v26 = vpop.eup %4480 }
 0xee3   :  { %v4483_v52 = vpop.eup %4482 }
 0xee4   :  { %v4485_v35 = vpop.eup %4484 }
 0xee5   :  { %v4487_v37 = vpop.eup %4486 }
 0xf38   :  { %v1761_v41 = vpop.permute.xlu0 %1760 }
 0xf39   :  { %v1772_v34 = vmul.f32 %v4481_v26, %v1761_v41 }
 0xf3a   :  { %v1763_v28 = vpop.permute.xlu1 %1762 }
 0xf3b   :  { %v1773_v47 = vmul.f32 %v4483_v52, %v1763_v28  ;;  %1780 = vrot.lane.b32.xlu0 %v1772_v34, %s4820_s0 }
 0xf3c   :  { %v1765_v38 = vpop.permute.xlu0 %1764 }
 0xf3d   :  { %v1774_v57 = vmul.f32 %v4485_v35, %v1765_v38  ;;  %1782 = vrot.lane.b32.xlu1 %v1773_v47, %s4820_s0 }
 0xf3e   :  { %v1767_v62 = vpop.permute.xlu1 %1766 }
 0xf3f   :  { %v1775_v25 = vmul.f32 %v4487_v37, %v1767_v62  ;;  %1784 = vrot.lane.b32.xlu0 %v1774_v57, %s4820_s0  ;;  %v1801_v57 = vsub.f32 1.0, %v4483_v52 }
 0xf41   :  { %1786 = vrot.lane.b32.xlu1 %v1775_v25, %s4820_s0 }
 0xfad   :  { %v1781_v27 = vpop.permute.xlu0 %1780 }
 0xfae   :  { %v1792_v32 = vadd.f32 %v1781_v27, %v586_v5  ;;  %v1802_v27 = vsub.f32 1.0, %v4485_v35 }
 0xfaf   :  { %v1783_v48 = vpop.permute.xlu1 %1782 }
 0xfb0   :  { %4488 = vtanh.f32 %v1792_v32  ;;  %v1793_v60 = vadd.f32 %v1783_v48, %v589_v31  ;;  %v1800_v31 = vsub.f32 1.0, %v4481_v26  ;;  %v1824_v32 = vmul.f32 %v4481_v26, %v5398_v6 }
 0xfb1   :  { %v1785_v24 = vpop.permute.xlu0 %1784 }
 0xfb2   :  { %4490 = vtanh.f32 %v1793_v60  ;;  %v1794_v50 = vadd.f32 %v1785_v24, %v594_v59 }
 0xfb3   :  { %v1787_v36 = vpop.permute.xlu1 %1786 }
 0xfb4   :  { %4492 = vtanh.f32 %v1794_v50  ;;  %v1795_v41 = vadd.f32 %v1787_v36, %v597_v40  ;;  %v1825_v40 = vmul.f32 %v4483_v52, %v5396_v29  ;;  %v1803_v50 = vsub.f32 1.0, %v4487_v37 }
 0xfb6   :  { %4494 = vtanh.f32 %v1795_v41 }
 0xfba   :  { %v4489_v34 = vpop.eup %4488 }
 0xfbb   :  { %1808 = vrot.lane.b32.xlu0 %v4489_v34, %s4821_s20  ;;  %v1826_v34 = vmul.f32 %v4485_v35, %v5404_v30 }
 0xfbc   :  { %v4491_v28 = vpop.eup %4490 }
 0xfbd   :  { %1810 = vrot.lane.b32.xlu1 %v4491_v28, %s4821_s20  ;;  %v1827_v28 = vmul.f32 %v4487_v37, %v5406_v33 }
 0xfbe   :  { %v4493_v47 = vpop.eup %4492 }
 0xfbf   :  { %1812 = vrot.lane.b32.xlu0 %v4493_v47, %s4821_s20 }
 0xfc0   :  { %v4495_v5 = vpop.eup %4494 }
 0xfc1   :  { %1814 = vrot.lane.b32.xlu1 %v4495_v5, %s4821_s20 }
0x102d   :  { %v1809_v38 = vpop.permute.xlu0 %1808 }
0x102e   :  { %v1820_v59 = vmul.f32 %v1809_v38, %v1800_v31 }
0x102f   :  { %v1811_v62 = vpop.permute.xlu1 %1810 }
0x1030   :  { %v1821_v25 = vmul.f32 %v1811_v62, %v1801_v57  ;;  %v5456_v36 = vadd.f32 %v1824_v32, %v1820_v59 }
0x1031   :  { %v1813_v48 = vpop.permute.xlu0 %1812 }
0x1032   :  { %v5454_v60 = vadd.f32 %v1825_v40, %v1821_v25  ;;  %v1822_v24 = vmul.f32 %v1813_v48, %v1802_v27  ;;  %v570_v48 = vadd.f32 %v5434_v46, %v5129_v21 }
0x1033   :  { %v1815_v41 = vpop.permute.xlu1 %1814 }
0x1034   :  { %v1823_v47 = vmul.f32 %v1815_v41, %v1803_v50  ;;  %v1846_v52 = vpack.c.bf16 %v5454_v60, %v5456_v36  ;;  %v5462_v5 = vadd.f32 %v1826_v34, %v1822_v24  ;;  %v573_v24 = vadd.f32 %v5434_v46, %v5133_v23 }
0x1035   :  { %v578_v41 = vadd.f32 %v5434_v46, %v5127_v20 }
0x1036   :  { %v5464_v31 = vadd.f32 %v1827_v28, %v1823_v47  ;;  %1850 = vrot.lane.b32.xlu0 %v1846_v52, %s4821_s20  ;;  %v581_v28 = vadd.f32 %v5434_v46, %v5131_v22 }
0x1038   :  { %v1847_v26 = vpack.c.bf16 %v5464_v31, %v5462_v5 }
0x103a   :  { %1852 = vrot.lane.b32.xlu1 %v1847_v26, %s4821_s20 }
0x10a8   :  { %v1851_v38 = vpop.permute.xlu0 %1850 }
0x10a9   :  { %4232 = vmatprep.mubr.msk.bf16.mxu1 %vm294_vm0, %v1851_v38 }
0x10ac   :  { %v1853_v35 = vpop.permute.xlu1 %1852 }
0x10ad   :  { %4233 = vmatmul.mubr.msk.bf16.vlgmr.msra.gmra.mrb[24].mxu1 %vm294_vm0, %v1853_v35 }
0x10ae   :  { %4237 = vmatpush3.bf16.msra.mxu1 %v5311_v58 }
0x10af   :  { %4238 = vmatprep.subr.bf16.mxu1 %v5317_v7 }
0x10b2   :  { %4239 = vmatpush3.bf16.msra.mxu1 %v5317_v7 }
0x10b3   :  { %4244 = vmatprep.subr.bf16.mxu1 %v5311_v58 }
0x1180   :  { %v4234_v37 = vpop.f32.mrb[24].mxu1 }
0x1181   :  { %v1894_v57 = vpop.f32.mrb[25].mxu1  ;;  %v1903_v27 = vadd.f32 %v5421_v63, %v4234_v37 }
0x1182   :  { %v1895_v59 = vadd.f32 %v5421_v63, %v1894_v57  ;;  %v4235_v62 = vpop.f32.mrb[26].mxu1 }
0x1183   :  { %v1897_v40 = vpop.f32.mrb[27].mxu1  ;;  %v1906_v32 = vadd.f32 %v5421_v63, %v4235_v62  ;;  %v1911_v47 = vadd.f32 %v1903_v27, %v578_v41 }
0x1184   :  { %v1898_v25 = vadd.f32 %v5421_v63, %v1897_v40  ;;  %1941 = vrot.lane.b32.xlu0 %v1895_v59, %s4820_s0  ;;  %v1909_v50 = vadd.f32 %v1895_v59, %v570_v48 }
0x1185   :  { %v1912_v26 = vadd.f32 %v1906_v32, %v581_v28  ;;  %v3945_v35 = vmul.f32 -1.442695, %v1911_v47 }
0x1186   :  { %1943 = vrot.lane.b32.xlu1 %v1898_v25, %s4820_s0  ;;  %v1910_v34 = vadd.f32 %v1898_v25, %v573_v24  ;;  %v3943_v52 = vmul.f32 -1.442695, %v1909_v50 }
0x1187   :  { %v3946_v37 = vmul.f32 -1.442695, %v1912_v26 }
0x1188   :  { %1945 = vrot.lane.b32.xlu0 %v1903_v27, %s4820_s0  ;;  %v3944_v38 = vmul.f32 -1.442695, %v1910_v34  ;;  %4496 = vpow2.f32 %v3943_v52 }
0x118a   :  { %1947 = vrot.lane.b32.xlu1 %v1906_v32, %s4820_s0  ;;  %4498 = vpow2.f32 %v3944_v38 }
0x118b   :  { %4500 = vpow2.f32 %v3945_v35 }
0x118c   :  { %4502 = vpow2.f32 %v3946_v37 }
0x1192   :  { %v4497_v21 = vpop.eup %4496 }
0x1193   :  { %v1925_v57 = vadd.f32 1.0, %v4497_v21 }
0x1194   :  { %v4499_v23 = vpop.eup %4498 }
0x1195   :  { %v4501_v59 = vpop.eup %4500  ;;  %v1926_v62 = vadd.f32 1.0, %v4499_v23  ;;  %4504 = vrcp.f32 %v1925_v57 }
0x1196   :  { %v4503_v20 = vpop.eup %4502  ;;  %v1927_v40 = vadd.f32 1.0, %v4501_v59 }
0x1197   :  { %v1928_v25 = vadd.f32 1.0, %v4503_v20  ;;  %4506 = vrcp.f32 %v1926_v62 }
0x1198   :  { %4508 = vrcp.f32 %v1927_v40 }
0x1199   :  { %4510 = vrcp.f32 %v1928_v25 }
0x119f   :  { %v4505_v22 = vpop.eup %4504 }
0x11a1   :  { %v4507_v50 = vpop.eup %4506 }
0x11a2   :  { %v4509_v52 = vpop.eup %4508 }
0x11a3   :  { %v4511_v35 = vpop.eup %4510 }
0x11f6   :  { %v1942_v27 = vpop.permute.xlu0 %1941 }
0x11f7   :  { %v1953_v32 = vmul.f32 %v4505_v22, %v1942_v27 }
0x11f8   :  { %v1944_v34 = vpop.permute.xlu1 %1943 }
0x11f9   :  { %v1954_v47 = vmul.f32 %v4507_v50, %v1944_v34  ;;  %1961 = vrot.lane.b32.xlu0 %v1953_v32, %s4820_s0 }
0x11fa   :  { %v1946_v26 = vpop.permute.xlu0 %1945 }
0x11fb   :  { %v1955_v38 = vmul.f32 %v4509_v52, %v1946_v26  ;;  %1963 = vrot.lane.b32.xlu1 %v1954_v47, %s4820_s0 }
0x11fc   :  { %v1948_v37 = vpop.permute.xlu1 %1947 }
0x11fd   :  { %v1956_v21 = vmul.f32 %v4511_v35, %v1948_v37  ;;  %1965 = vrot.lane.b32.xlu0 %v1955_v38, %s4820_s0  ;;  %v1982_v38 = vsub.f32 1.0, %v4507_v50 }
0x11ff   :  { %1967 = vrot.lane.b32.xlu1 %v1956_v21, %s4820_s0 }
0x126b   :  { %v1962_v23 = vpop.permute.xlu0 %1961 }
0x126c   :  { %v1973_v57 = vadd.f32 %v1962_v23, %v570_v48  ;;  %v1983_v23 = vsub.f32 1.0, %v4509_v52 }
0x126d   :  { %v1964_v59 = vpop.permute.xlu1 %1963 }
0x126e   :  { %4512 = vtanh.f32 %v1973_v57  ;;  %v1974_v62 = vadd.f32 %v1964_v59, %v573_v24  ;;  %v1981_v24 = vsub.f32 1.0, %v4505_v22  ;;  %v2005_v57 = vmul.f32 %v4505_v22, %v5456_v36 }
0x126f   :  { %v1966_v20 = vpop.permute.xlu0 %1965 }
0x1270   :  { %4514 = vtanh.f32 %v1974_v62  ;;  %v1975_v40 = vadd.f32 %v1966_v20, %v578_v41 }
0x1271   :  { %v1968_v25 = vpop.permute.xlu1 %1967 }
0x1272   :  { %4516 = vtanh.f32 %v1975_v40  ;;  %v1976_v27 = vadd.f32 %v1968_v25, %v581_v28  ;;  %v2006_v28 = vmul.f32 %v4507_v50, %v5454_v60  ;;  %v1984_v40 = vsub.f32 1.0, %v4511_v35 }
0x1274   :  { %4518 = vtanh.f32 %v1976_v27 }
0x1278   :  { %v4513_v32 = vpop.eup %4512 }
0x1279   :  { %1989 = vrot.lane.b32.xlu0 %v4513_v32, %s4821_s20  ;;  %v2007_v32 = vmul.f32 %v4509_v52, %v5462_v5 }
0x127a   :  { %v4515_v34 = vpop.eup %4514 }
0x127b   :  { %1991 = vrot.lane.b32.xlu1 %v4515_v34, %s4821_s20  ;;  %v2008_v34 = vmul.f32 %v4511_v35, %v5464_v31 }
0x127c   :  { %v4517_v47 = vpop.eup %4516 }
0x127d   :  { %1993 = vrot.lane.b32.xlu0 %v4517_v47, %s4821_s20 }
0x127e   :  { %v4519_v48 = vpop.eup %4518 }
0x127f   :  { %1995 = vrot.lane.b32.xlu1 %v4519_v48, %s4821_s20 }
0x12eb   :  { %v1990_v26 = vpop.permute.xlu0 %1989 }
0x12ec   :  { %v2001_v41 = vmul.f32 %v1990_v26, %v1981_v24 }
0x12ed   :  { %v1992_v37 = vpop.permute.xlu1 %1991 }
0x12ee   :  { %v2002_v21 = vmul.f32 %v1992_v37, %v1982_v38  ;;  %v5504_v25 = vadd.f32 %v2005_v57, %v2001_v41 }
0x12ef   :  { %v1994_v59 = vpop.permute.xlu0 %1993 }
0x12f0   :  { %v5502_v62 = vadd.f32 %v2006_v28, %v2002_v21  ;;  %v2003_v20 = vmul.f32 %v1994_v59, %v1983_v23 }
0x12f1   :  { %v1996_v27 = vpop.permute.xlu1 %1995 }
0x12f2   :  { %v2004_v47 = vmul.f32 %v1996_v27, %v1984_v40  ;;  %v2027_v50 = vpack.c.bf16 %v5502_v62, %v5504_v25  ;;  %v5510_v48 = vadd.f32 %v2007_v32, %v2003_v20  ;;  %v562_v20 = vadd.f32 %v5434_v46, %v5119_v16 }
0x12f3   :  { %v565_v27 = vadd.f32 %v5434_v46, %v5123_v18 }
0x12f4   :  { %v5512_v24 = vadd.f32 %v2008_v34, %v2004_v47  ;;  %2031 = vrot.lane.b32.xlu0 %v2027_v50, %s4821_s20 }
0x12f6   :  { %v2028_v22 = vpack.c.bf16 %v5512_v24, %v5510_v48 }
0x12f8   :  { %2033 = vrot.lane.b32.xlu1 %v2028_v22, %s4821_s20 }
0x1366   :  { %v2032_v26 = vpop.permute.xlu0 %2031 }
0x1367   :  { %4240 = vmatprep.mubr.msk.bf16.mxu1 %vm294_vm0, %v2032_v26 }
0x136a   :  { %v2034_v52 = vpop.permute.xlu1 %2033 }
0x136b   :  { %4241 = vmatmul.mubr.msk.bf16.vlgmr.msra.gmra.mrb[28].mxu1 %vm294_vm0, %v2034_v52 }
0x136c   :  { %4245 = vmatpush3.bf16.msra.mxu1 %v5311_v58 }
0x136d   :  { %4246 = vmatprep.subr.bf16.mxu1 %v5317_v7 }
0x1370   :  { %4247 = vmatpush3.bf16.msra.mxu1 %v5317_v7  ;;  %v557_v7 = vadd.f32 %v5434_v46, %v5125_v19 }
0x1371   :  { %4252 = vmatprep.subr.bf16.mxu1 %v5311_v58  ;;  %v554_v58 = vadd.f32 %v5434_v46, %v5121_v17 }
0x143e   :  { %v4242_v35 = vpop.f32.mrb[28].mxu1 }
0x143f   :  { %v2075_v38 = vpop.f32.mrb[29].mxu1  ;;  %v2084_v23 = vadd.f32 %v5421_v63, %v4242_v35 }
0x1440   :  { %v2076_v41 = vadd.f32 %v5421_v63, %v2075_v38  ;;  %v4243_v37 = vpop.f32.mrb[30].mxu1 }
0x1441   :  { %v2078_v28 = vpop.f32.mrb[31].mxu1  ;;  %v2087_v57 = vadd.f32 %v5421_v63, %v4243_v37  ;;  %v2092_v32 = vadd.f32 %v2084_v23, %v562_v20 }
0x1442   :  { %v2079_v21 = vadd.f32 %v5421_v63, %v2078_v28  ;;  %2122 = vrot.lane.b32.xlu0 %v2076_v41, %s4820_s0  ;;  %v2090_v59 = vadd.f32 %v2076_v41, %v554_v58 }
0x1443   :  { %v2093_v47 = vadd.f32 %v2087_v57, %v565_v27  ;;  %v3952_v22 = vmul.f32 -1.442695, %v2092_v32 }
0x1444   :  { %2124 = vrot.lane.b32.xlu1 %v2079_v21, %s4820_s0  ;;  %v2091_v40 = vadd.f32 %v2079_v21, %v557_v7  ;;  %v3950_v34 = vmul.f32 -1.442695, %v2090_v59 }
0x1445   :  { %v3953_v26 = vmul.f32 -1.442695, %v2093_v47 }
0x1446   :  { %2126 = vrot.lane.b32.xlu0 %v2084_v23, %s4820_s0  ;;  %v3951_v50 = vmul.f32 -1.442695, %v2091_v40  ;;  %4520 = vpow2.f32 %v3950_v34 }
0x1448   :  { %2128 = vrot.lane.b32.xlu1 %v2087_v57, %s4820_s0  ;;  %4522 = vpow2.f32 %v3951_v50 }
0x1449   :  { %4524 = vpow2.f32 %v3952_v22 }
0x144a   :  { %4526 = vpow2.f32 %v3953_v26 }
0x1450   :  { %v4521_v17 = vpop.eup %4520 }
0x1451   :  { %v2106_v52 = vadd.f32 1.0, %v4521_v17 }
0x1452   :  { %v4523_v19 = vpop.eup %4522 }
0x1453   :  { %v4525_v35 = vpop.eup %4524  ;;  %v2107_v38 = vadd.f32 1.0, %v4523_v19  ;;  %4528 = vrcp.f32 %v2106_v52 }
0x1454   :  { %v4527_v16 = vpop.eup %4526  ;;  %v2108_v41 = vadd.f32 1.0, %v4525_v35 }
0x1455   :  { %v2109_v37 = vadd.f32 1.0, %v4527_v16  ;;  %4530 = vrcp.f32 %v2107_v38 }
0x1456   :  { %4532 = vrcp.f32 %v2108_v41 }
0x1457   :  { %4534 = vrcp.f32 %v2109_v37 }
0x145d   :  { %v4529_v18 = vpop.eup %4528 }
0x145f   :  { %v4531_v23 = vpop.eup %4530 }
0x1460   :  { %v4533_v40 = vpop.eup %4532 }
0x1461   :  { %v4535_v47 = vpop.eup %4534 }
0x14b4   :  { %v2123_v28 = vpop.permute.xlu0 %2122 }
0x14b5   :  { %v2134_v21 = vmul.f32 %v4529_v18, %v2123_v28 }
0x14b6   :  { %v2125_v57 = vpop.permute.xlu1 %2124 }
0x14b7   :  { %v2135_v59 = vmul.f32 %v4531_v23, %v2125_v57  ;;  %2142 = vrot.lane.b32.xlu0 %v2134_v21, %s4820_s0 }
0x14b8   :  { %v2127_v32 = vpop.permute.xlu0 %2126 }
0x14b9   :  { %v2136_v34 = vmul.f32 %v4533_v40, %v2127_v32  ;;  %2144 = vrot.lane.b32.xlu1 %v2135_v59, %s4820_s0  ;;  %v2163_v59 = vsub.f32 1.0, %v4531_v23 }
0x14ba   :  { %v2129_v50 = vpop.permute.xlu1 %2128 }
0x14bb   :  { %v2137_v22 = vmul.f32 %v4535_v47, %v2129_v50  ;;  %2146 = vrot.lane.b32.xlu0 %v2136_v34, %s4820_s0  ;;  %v2164_v50 = vsub.f32 1.0, %v4533_v40 }
0x14bd   :  { %2148 = vrot.lane.b32.xlu1 %v2137_v22, %s4820_s0  ;;  %v2186_v22 = vmul.f32 %v4529_v18, %v5504_v25 }
0x1529   :  { %v2143_v26 = vpop.permute.xlu0 %2142 }
0x152a   :  { %v2154_v17 = vadd.f32 %v2143_v26, %v554_v58 }
0x152b   :  { %v2145_v19 = vpop.permute.xlu1 %2144 }
0x152c   :  { %4536 = vtanh.f32 %v2154_v17  ;;  %v2155_v52 = vadd.f32 %v2145_v19, %v557_v7  ;;  %v2162_v7 = vsub.f32 1.0, %v4529_v18 }
0x152d   :  { %v2147_v35 = vpop.permute.xlu0 %2146 }
0x152e   :  { %4538 = vtanh.f32 %v2155_v52  ;;  %v2156_v38 = vadd.f32 %v2147_v35, %v562_v20  ;;  %v2165_v52 = vsub.f32 1.0, %v4535_v47 }
0x152f   :  { %v2149_v16 = vpop.permute.xlu1 %2148 }
0x1530   :  { %4540 = vtanh.f32 %v2156_v38  ;;  %v2157_v41 = vadd.f32 %v2149_v16, %v565_v27  ;;  %v2187_v27 = vmul.f32 %v4531_v23, %v5502_v62  ;;  %v2188_v16 = vmul.f32 %v4533_v40, %v5510_v48 }
0x1532   :  { %4542 = vtanh.f32 %v2157_v41  ;;  %v2189_v41 = vmul.f32 %v4535_v47, %v5512_v24  ;;  %v5571_v47 = vld [vmem:[%s6112_s2] sm:$0xff]  }
0x1536   :  { %v4537_v37 = vpop.eup %4536 }
0x1537   :  { %2170 = vrot.lane.b32.xlu0 %v4537_v37, %s4821_s20 }
0x1538   :  { %v4539_v28 = vpop.eup %4538 }
0x1539   :  { %2172 = vrot.lane.b32.xlu1 %v4539_v28, %s4821_s20 }
0x153a   :  { %v4541_v21 = vpop.eup %4540 }
0x153b   :  { %2174 = vrot.lane.b32.xlu0 %v4541_v21, %s4821_s20 }
0x153c   :  { %v4543_v58 = vpop.eup %4542 }
0x153d   :  { %2176 = vrot.lane.b32.xlu1 %v4543_v58, %s4821_s20 }
0x15a9   :  { %v2171_v57 = vpop.permute.xlu0 %2170 }
0x15aa   :  { %v2182_v20 = vmul.f32 %v2171_v57, %v2162_v7  ;;  %v5577_v7 = vld [vmem:[%s6112_s2 + $0x8] sm:$0xff]  }
0x15ab   :  { %v2173_v32 = vpop.permute.xlu1 %2172 }
0x15ac   :  { %v2183_v34 = vmul.f32 %v2173_v32, %v2163_v59  ;;  %v5552_v35 = vadd.f32 %v2186_v22, %v2182_v20 }
0x15ad   :  { %v2175_v26 = vpop.permute.xlu0 %2174 }
0x15ae   :  { %v5550_v17 = vadd.f32 %v2187_v27, %v2183_v34  ;;  %v2184_v19 = vmul.f32 %v2175_v26, %v2164_v50  ;;  %v538_v26 = vadd.f32 %v5434_v46, %v5113_v13 }
0x15af   :  { %v2177_v38 = vpop.permute.xlu1 %2176 }
0x15b0   :  { %v2185_v37 = vmul.f32 %v2177_v38, %v2165_v52  ;;  %v2208_v23 = vpack.c.bf16 %v5550_v17, %v5552_v35  ;;  %v5558_v28 = vadd.f32 %v2188_v16, %v2184_v19  ;;  %v541_v19 = vadd.f32 %v5434_v46, %v5117_v15 }
0x15b1   :  { %v546_v38 = vadd.f32 %v5434_v46, %v5111_v12 }
0x15b2   :  { %v5560_v21 = vadd.f32 %v2189_v41, %v2185_v37  ;;  %2212 = vrot.lane.b32.xlu0 %v2208_v23, %s4821_s20  ;;  %v549_v41 = vadd.f32 %v5434_v46, %v5115_v14 }
0x15b4   :  { %v2209_v18 = vpack.c.bf16 %v5560_v21, %v5558_v28 }
0x15b6   :  { %2214 = vrot.lane.b32.xlu1 %v2209_v18, %s4821_s20 }
0x1624   :  { %v2213_v58 = vpop.permute.xlu0 %2212 }
0x1625   :  { %4248 = vmatprep.mubr.msk.bf16.mxu1 %vm294_vm0, %v2213_v58 }
0x1628   :  { %v2215_v40 = vpop.permute.xlu1 %2214 }
0x1629   :  { %4249 = vmatmul.mubr.msk.bf16.vlgmr.msra.gmra.mrb[32].mxu1 %vm294_vm0, %v2215_v40 }
0x162a   :  { %4253 = vmatpush3.bf16.msra.mxu1 %v5571_v47 }
0x162b   :  { %4254 = vmatprep.subr.bf16.mxu1 %v5577_v7 }
0x162e   :  { %4255 = vmatpush3.bf16.msra.mxu1 %v5577_v7 }
0x162f   :  { %4260 = vmatprep.subr.bf16.mxu1 %v5571_v47 }
0x16fc   :  { %v4250_v57 = vpop.f32.mrb[32].mxu1 }
0x16fd   :  { %v2256_v59 = vpop.f32.mrb[33].mxu1  ;;  %v2265_v50 = vadd.f32 %v5421_v63, %v4250_v57 }
0x16fe   :  { %v2257_v20 = vadd.f32 %v5421_v63, %v2256_v59  ;;  %v4251_v32 = vpop.f32.mrb[34].mxu1 }
0x16ff   :  { %v2259_v27 = vpop.f32.mrb[35].mxu1  ;;  %v2268_v22 = vadd.f32 %v5421_v63, %v4251_v32  ;;  %v2273_v37 = vadd.f32 %v2265_v50, %v546_v38 }
0x1700   :  { %v2260_v34 = vadd.f32 %v5421_v63, %v2259_v27  ;;  %2303 = vrot.lane.b32.xlu0 %v2257_v20, %s4820_s0  ;;  %v2271_v52 = vadd.f32 %v2257_v20, %v538_v26 }
0x1701   :  { %v2274_v18 = vadd.f32 %v2268_v22, %v549_v41  ;;  %v3959_v40 = vmul.f32 -1.442695, %v2273_v37 }
0x1702   :  { %2305 = vrot.lane.b32.xlu1 %v2260_v34, %s4820_s0  ;;  %v2272_v16 = vadd.f32 %v2260_v34, %v541_v19  ;;  %v3957_v23 = vmul.f32 -1.442695, %v2271_v52 }
0x1703   :  { %v3960_v57 = vmul.f32 -1.442695, %v2274_v18 }
0x1704   :  { %2307 = vrot.lane.b32.xlu0 %v2265_v50, %s4820_s0  ;;  %v3958_v58 = vmul.f32 -1.442695, %v2272_v16  ;;  %4544 = vpow2.f32 %v3957_v23 }
0x1706   :  { %2309 = vrot.lane.b32.xlu1 %v2268_v22, %s4820_s0  ;;  %4546 = vpow2.f32 %v3958_v58 }
0x1707   :  { %4548 = vpow2.f32 %v3959_v40 }
0x1708   :  { %4550 = vpow2.f32 %v3960_v57 }
0x170e   :  { %v4545_v13 = vpop.eup %4544 }
0x170f   :  { %v2287_v59 = vadd.f32 1.0, %v4545_v13 }
0x1710   :  { %v4547_v15 = vpop.eup %4546 }
0x1711   :  { %v4549_v20 = vpop.eup %4548  ;;  %v2288_v32 = vadd.f32 1.0, %v4547_v15  ;;  %4552 = vrcp.f32 %v2287_v59 }
0x1712   :  { %v4551_v12 = vpop.eup %4550  ;;  %v2289_v27 = vadd.f32 1.0, %v4549_v20 }
0x1713   :  { %v2290_v34 = vadd.f32 1.0, %v4551_v12  ;;  %4554 = vrcp.f32 %v2288_v32 }
0x1714   :  { %4556 = vrcp.f32 %v2289_v27 }
0x1715   :  { %4558 = vrcp.f32 %v2290_v34 }
0x171b   :  { %v4553_v14 = vpop.eup %4552 }
0x171d   :  { %v4555_v52 = vpop.eup %4554 }
0x171e   :  { %v4557_v23 = vpop.eup %4556 }
0x171f   :  { %v4559_v40 = vpop.eup %4558 }
0x1772   :  { %v2304_v50 = vpop.permute.xlu0 %2303 }
0x1773   :  { %v2315_v22 = vmul.f32 %v4553_v14, %v2304_v50 }
0x1774   :  { %v2306_v16 = vpop.permute.xlu1 %2305 }
0x1775   :  { %v2316_v37 = vmul.f32 %v4555_v52, %v2306_v16  ;;  %2323 = vrot.lane.b32.xlu0 %v2315_v22, %s4820_s0 }
0x1776   :  { %v2308_v18 = vpop.permute.xlu0 %2307 }
0x1777   :  { %v2317_v58 = vmul.f32 %v4557_v23, %v2308_v18  ;;  %2325 = vrot.lane.b32.xlu1 %v2316_v37, %s4820_s0 }
0x1778   :  { %v2310_v57 = vpop.permute.xlu1 %2309 }
0x1779   :  { %v2318_v13 = vmul.f32 %v4559_v40, %v2310_v57  ;;  %2327 = vrot.lane.b32.xlu0 %v2317_v58, %s4820_s0  ;;  %v2344_v58 = vsub.f32 1.0, %v4555_v52 }
0x177b   :  { %2329 = vrot.lane.b32.xlu1 %v2318_v13, %s4820_s0 }
0x17e7   :  { %v2324_v15 = vpop.permute.xlu0 %2323 }
0x17e8   :  { %v2335_v59 = vadd.f32 %v2324_v15, %v538_v26  ;;  %v2345_v15 = vsub.f32 1.0, %v4557_v23 }
0x17e9   :  { %v2326_v20 = vpop.permute.xlu1 %2325 }
0x17ea   :  { %4560 = vtanh.f32 %v2335_v59  ;;  %v2336_v32 = vadd.f32 %v2326_v20, %v541_v19  ;;  %v2343_v19 = vsub.f32 1.0, %v4553_v14  ;;  %v2367_v59 = vmul.f32 %v4553_v14, %v5552_v35 }
0x17eb   :  { %v2328_v12 = vpop.permute.xlu0 %2327 }
0x17ec   :  { %4562 = vtanh.f32 %v2336_v32  ;;  %v2337_v27 = vadd.f32 %v2328_v12, %v546_v38 }
0x17ed   :  { %v2330_v34 = vpop.permute.xlu1 %2329 }
0x17ee   :  { %4564 = vtanh.f32 %v2337_v27  ;;  %v2338_v50 = vadd.f32 %v2330_v34, %v549_v41  ;;  %v2368_v41 = vmul.f32 %v4555_v52, %v5550_v17  ;;  %v2346_v27 = vsub.f32 1.0, %v4559_v40 }
0x17f0   :  { %4566 = vtanh.f32 %v2338_v50 }
0x17f4   :  { %v4561_v22 = vpop.eup %4560 }
0x17f5   :  { %2351 = vrot.lane.b32.xlu0 %v4561_v22, %s4821_s20  ;;  %v2369_v22 = vmul.f32 %v4557_v23, %v5558_v28 }
0x17f6   :  { %v4563_v16 = vpop.eup %4562 }
0x17f7   :  { %2353 = vrot.lane.b32.xlu1 %v4563_v16, %s4821_s20  ;;  %v2370_v16 = vmul.f32 %v4559_v40, %v5560_v21 }
0x17f8   :  { %v4565_v37 = vpop.eup %4564 }
0x17f9   :  { %2355 = vrot.lane.b32.xlu0 %v4565_v37, %s4821_s20 }
0x17fa   :  { %v4567_v26 = vpop.eup %4566 }
0x17fb   :  { %2357 = vrot.lane.b32.xlu1 %v4567_v26, %s4821_s20 }
0x1867   :  { %v2352_v18 = vpop.permute.xlu0 %2351 }
0x1868   :  { %v2363_v38 = vmul.f32 %v2352_v18, %v2343_v19 }
0x1869   :  { %v2354_v57 = vpop.permute.xlu1 %2353 }
0x186a   :  { %v2364_v13 = vmul.f32 %v2354_v57, %v2344_v58  ;;  %v5610_v34 = vadd.f32 %v2367_v59, %v2363_v38 }
0x186b   :  { %v2356_v20 = vpop.permute.xlu0 %2355 }
0x186c   :  { %v5608_v32 = vadd.f32 %v2368_v41, %v2364_v13  ;;  %v2365_v12 = vmul.f32 %v2356_v20, %v2345_v15  ;;  %v522_v20 = vadd.f32 %v5434_v46, %v5105_v9 }
0x186d   :  { %v2358_v50 = vpop.permute.xlu1 %2357 }
0x186e   :  { %6166 = vst [vmem:[#allocation33_spill] sm:$0xff] %v5608_v32  ;;  %v2366_v37 = vmul.f32 %v2358_v50, %v2346_v27  ;;  %v2389_v52 = vpack.c.bf16 %v5608_v32, %v5610_v34  ;;  %v5616_v26 = vadd.f32 %v2369_v22, %v2365_v12  ;;  %v525_v12 = vadd.f32 %v5434_v46, %v5109_v11 }
0x186f   :  { %v530_v50 = vadd.f32 %v5434_v46, %v5103_v8 }
0x1870   :  { %6167 = vst [vmem:[#allocation34_spill] sm:$0xff] %v5616_v26  ;;  %v5618_v19 = vadd.f32 %v2370_v16, %v2366_v37  ;;  %2393 = vrot.lane.b32.xlu0 %v2389_v52, %s4821_s20  ;;  %v533_v16 = vadd.f32 %v5434_v46, %v5107_v10 }
0x1872   :  { %6168 = vst [vmem:[#allocation35_spill] sm:$0xff] %v5618_v19  ;;  %v2390_v14 = vpack.c.bf16 %v5618_v19, %v5616_v26 }
0x1874   :  { %2395 = vrot.lane.b32.xlu1 %v2390_v14, %s4821_s20 }
0x18e2   :  { %v2394_v18 = vpop.permute.xlu0 %2393 }
0x18e3   :  { %4256 = vmatprep.mubr.msk.bf16.mxu1 %vm294_vm0, %v2394_v18 }
0x18e6   :  { %v2396_v23 = vpop.permute.xlu1 %2395 }
0x18e7   :  { %4257 = vmatmul.mubr.msk.bf16.vlgmr.msra.gmra.mrb[36].mxu1 %vm294_vm0, %v2396_v23 }
0x18e8   :  { %4261 = vmatpush3.bf16.msra.mxu1 %v5571_v47 }
0x18e9   :  { %4262 = vmatprep.subr.bf16.mxu1 %v5577_v7 }
0x18ec   :  { %4263 = vmatpush3.bf16.msra.mxu1 %v5577_v7 }
0x18ed   :  { %4268 = vmatprep.subr.bf16.mxu1 %v5571_v47 }
0x19ba   :  { %v4258_v40 = vpop.f32.mrb[36].mxu1 }
0x19bb   :  { %v2437_v58 = vpop.f32.mrb[37].mxu1  ;;  %v2446_v15 = vadd.f32 %v5421_v63, %v4258_v40 }
0x19bc   :  { %v2438_v38 = vadd.f32 %v5421_v63, %v2437_v58  ;;  %v4259_v57 = vpop.f32.mrb[38].mxu1 }
0x19bd   :  { %v2440_v41 = vpop.f32.mrb[39].mxu1  ;;  %v2449_v59 = vadd.f32 %v5421_v63, %v4259_v57  ;;  %v2454_v37 = vadd.f32 %v2446_v15, %v530_v50 }
0x19be   :  { %v2441_v13 = vadd.f32 %v5421_v63, %v2440_v41  ;;  %2484 = vrot.lane.b32.xlu0 %v2438_v38, %s4820_s0  ;;  %v2452_v27 = vadd.f32 %v2438_v38, %v522_v20 }
0x19bf   :  { %v2455_v52 = vadd.f32 %v2449_v59, %v533_v16  ;;  %v3966_v18 = vmul.f32 -1.442695, %v2454_v37 }
0x19c0   :  { %2486 = vrot.lane.b32.xlu1 %v2441_v13, %s4820_s0  ;;  %v2453_v22 = vadd.f32 %v2441_v13, %v525_v12  ;;  %v3964_v63 = vmul.f32 -1.442695, %v2452_v27 }
0x19c1   :  { %v3967_v23 = vmul.f32 -1.442695, %v2455_v52 }
0x19c2   :  { %2488 = vrot.lane.b32.xlu0 %v2446_v15, %s4820_s0  ;;  %v3965_v14 = vmul.f32 -1.442695, %v2453_v22  ;;  %4568 = vpow2.f32 %v3964_v63 }
0x19c4   :  { %2490 = vrot.lane.b32.xlu1 %v2449_v59, %s4820_s0  ;;  %4570 = vpow2.f32 %v3965_v14 }
0x19c5   :  { %4572 = vpow2.f32 %v3966_v18 }
0x19c6   :  { %4574 = vpow2.f32 %v3967_v23 }
0x19cc   :  { %v4569_v9 = vpop.eup %4568 }
0x19cd   :  { %v2468_v40 = vadd.f32 1.0, %v4569_v9 }
0x19ce   :  { %v4571_v11 = vpop.eup %4570 }
0x19cf   :  { %v4573_v58 = vpop.eup %4572  ;;  %v2469_v38 = vadd.f32 1.0, %v4571_v11  ;;  %4576 = vrcp.f32 %v2468_v40 }
0x19d0   :  { %v4575_v8 = vpop.eup %4574  ;;  %v2470_v57 = vadd.f32 1.0, %v4573_v58 }
0x19d1   :  { %v2471_v41 = vadd.f32 1.0, %v4575_v8  ;;  %4578 = vrcp.f32 %v2469_v38 }
0x19d2   :  { %4580 = vrcp.f32 %v2470_v57 }
0x19d3   :  { %4582 = vrcp.f32 %v2471_v41 }
0x19d9   :  { %v4577_v10 = vpop.eup %4576 }
0x19db   :  { %v4579_v15 = vpop.eup %4578 }
0x19dc   :  { %v4581_v22 = vpop.eup %4580 }
0x19dd   :  { %v4583_v52 = vpop.eup %4582 }
0x1a30   :  { %v2485_v46 = vpop.permute.xlu0 %2484 }
0x1a31   :  { %v2496_v13 = vmul.f32 %v4577_v10, %v2485_v46 }
0x1a32   :  { %v2487_v59 = vpop.permute.xlu1 %2486 }
0x1a33   :  { %v2497_v27 = vmul.f32 %v4579_v15, %v2487_v59  ;;  %2504 = vrot.lane.b32.xlu0 %v2496_v13, %s4820_s0 }
0x1a34   :  { %v2489_v37 = vpop.permute.xlu0 %2488 }
0x1a35   :  { %v2498_v63 = vmul.f32 %v4581_v22, %v2489_v37  ;;  %2506 = vrot.lane.b32.xlu1 %v2497_v27, %s4820_s0  ;;  %v2525_v27 = vsub.f32 1.0, %v4579_v15 }
0x1a36   :  { %v2491_v14 = vpop.permute.xlu1 %2490 }
0x1a37   :  { %v2499_v18 = vmul.f32 %v4583_v52, %v2491_v14  ;;  %2508 = vrot.lane.b32.xlu0 %v2498_v63, %s4820_s0  ;;  %v2526_v14 = vsub.f32 1.0, %v4581_v22 }
0x1a39   :  { %2510 = vrot.lane.b32.xlu1 %v2499_v18, %s4820_s0  ;;  %v2548_v18 = vmul.f32 %v4577_v10, %v5610_v34 }
0x1aa5   :  { %v2505_v23 = vpop.permute.xlu0 %2504 }
0x1aa6   :  { %v2516_v9 = vadd.f32 %v2505_v23, %v522_v20 }
0x1aa7   :  { %v2507_v11 = vpop.permute.xlu1 %2506 }
0x1aa8   :  { %4584 = vtanh.f32 %v2516_v9  ;;  %v2517_v40 = vadd.f32 %v2507_v11, %v525_v12  ;;  %v2524_v12 = vsub.f32 1.0, %v4577_v10 }
0x1aa9   :  { %v2509_v58 = vpop.permute.xlu0 %2508 }
0x1aaa   :  { %4586 = vtanh.f32 %v2517_v40  ;;  %v2518_v38 = vadd.f32 %v2509_v58, %v530_v50  ;;  %v2527_v40 = vsub.f32 1.0, %v4583_v52 }
0x1aab   :  { %v2511_v8 = vpop.permute.xlu1 %2510 }
0x1aac   :  { %4588 = vtanh.f32 %v2518_v38  ;;  %v2519_v57 = vadd.f32 %v2511_v8, %v533_v16  ;;  %v2549_v16 = vmul.f32 %v4579_v15, %v5608_v32  ;;  %v2550_v8 = vmul.f32 %v4581_v22, %v5616_v26 }
0x1aae   :  { %4590 = vtanh.f32 %v2519_v57  ;;  %v2551_v57 = vmul.f32 %v4583_v52, %v5618_v19 }
0x1ab2   :  { %v4585_v41 = vpop.eup %4584 }
0x1ab3   :  { %2532 = vrot.lane.b32.xlu0 %v4585_v41, %s4821_s20 }
0x1ab4   :  { %v4587_v46 = vpop.eup %4586 }
0x1ab5   :  { %2534 = vrot.lane.b32.xlu1 %v4587_v46, %s4821_s20 }
0x1ab6   :  { %v4589_v13 = vpop.eup %4588 }
0x1ab7   :  { %2536 = vrot.lane.b32.xlu0 %v4589_v13, %s4821_s20 }
0x1ab8   :  { %v4591_v20 = vpop.eup %4590 }
0x1ab9   :  { %2538 = vrot.lane.b32.xlu1 %v4591_v20, %s4821_s20 }
0x1b25   :  { %v2533_v59 = vpop.permute.xlu0 %2532 }
0x1b26   :  { %v2544_v50 = vmul.f32 %v2533_v59, %v2524_v12  ;;  %v5681_v59 = vld [vmem:[%s6114_s4] ss:$0 sm:$0xff] }
0x1b27   :  { %v2535_v37 = vpop.permute.xlu1 %2534 }
0x1b28   :  { %v2545_v63 = vmul.f32 %v2535_v37, %v2525_v27  ;;  %v5658_v58 = vadd.f32 %v2548_v18, %v2544_v50  ;;  %v5694_v18 = vld [vmem:[%s6113_s3] ss:$0 sm:$0xff] }
0x1b29   :  { %v2537_v23 = vpop.permute.xlu0 %2536 }
0x1b2a   :  { %v5656_v9 = vadd.f32 %v2549_v16, %v2545_v63  ;;  %v2546_v11 = vmul.f32 %v2537_v23, %v2526_v14  ;;  %6170 = vst [vmem:[#allocation37_spill] sm:$0xff] %v5658_v58  ;;  %v506_v23 = vadd.f32 %v5694_v18, %v5097_v3 }
0x1b2b   :  { %v2539_v38 = vpop.permute.xlu1 %2538 }
0x1b2c   :  { %6169 = vst [vmem:[#allocation36_spill] sm:$0xff] %v5656_v9  ;;  %v2547_v41 = vmul.f32 %v2539_v38, %v2527_v40  ;;  %v2570_v15 = vpack.c.bf16 %v5656_v9, %v5658_v58  ;;  %v5664_v46 = vadd.f32 %v2550_v8, %v2546_v11  ;;  %v6173_v11 = vld [vmem:[#allocation32_spill] sm:$0xff]  ;;  %v6174_v8 = vld [vmem:[#allocation30_spill] sm:$0xff] }
0x1b2d   :  { %v509_v40 = vadd.f32 %v5694_v18, %v6173_v11 }
0x1b2e   :  { %6171 = vst [vmem:[#allocation38_spill] sm:$0xff] %v5664_v46  ;;  %v5666_v13 = vadd.f32 %v2551_v57, %v2547_v41  ;;  %2574 = vrot.lane.b32.xlu0 %v2570_v15, %s4821_s20  ;;  %v514_v57 = vadd.f32 %v5694_v18, %v6174_v8  ;;  %v6175_v15 = vld [vmem:[#allocation31_spill] sm:$0xff] }
0x1b30   :  { %6172 = vst [vmem:[#allocation39_spill] sm:$0xff] %v5666_v13  ;;  %v2571_v10 = vpack.c.bf16 %v5666_v13, %v5664_v46 }
0x1b32   :  { %2576 = vrot.lane.b32.xlu1 %v2571_v10, %s4821_s20  ;;  %v517_v10 = vadd.f32 %v5694_v18, %v6175_v15 }
0x1ba0   :  { %v2575_v20 = vpop.permute.xlu0 %2574 }
0x1ba1   :  { %4264 = vmatprep.mubr.msk.bf16.mxu1 %vm294_vm0, %v2575_v20 }
0x1ba4   :  { %v2577_v22 = vpop.permute.xlu1 %2576 }
0x1ba5   :  { %4265 = vmatmul.mubr.msk.bf16.vlgmr.msra.gmra.mrb[40].mxu1 %vm294_vm0, %v2577_v22 }
0x1ba6   :  { %4269 = vmatpush3.bf16.msra.mxu1 %v5571_v47 }
0x1ba7   :  { %4270 = vmatprep.subr.bf16.mxu1 %v5577_v7 }
0x1baa   :  { %4271 = vmatpush3.bf16.msra.mxu1 %v5577_v7 }
0x1bab   :  { %4276 = vmatprep.subr.bf16.mxu1 %v5571_v47 }
0x1c78   :  { %v4266_v52 = vpop.f32.mrb[40].mxu1 }
0x1c79   :  { %v2618_v12 = vpop.f32.mrb[41].mxu1  ;;  %v2627_v63 = vadd.f32 %v5681_v59, %v4266_v52 }
0x1c7a   :  { %v2619_v27 = vadd.f32 %v5681_v59, %v2618_v12  ;;  %v4267_v50 = vpop.f32.mrb[42].mxu1 }
0x1c7b   :  { %v2621_v37 = vpop.f32.mrb[43].mxu1  ;;  %v2630_v14 = vadd.f32 %v5681_v59, %v4267_v50  ;;  %v2635_v20 = vadd.f32 %v2627_v63, %v514_v57 }
0x1c7c   :  { %v2622_v16 = vadd.f32 %v5681_v59, %v2621_v37  ;;  %2665 = vrot.lane.b32.xlu0 %v2619_v27, %s4820_s0  ;;  %v2633_v38 = vadd.f32 %v2619_v27, %v506_v23 }
0x1c7d   :  { %v2636_v52 = vadd.f32 %v2630_v14, %v517_v10  ;;  %v3973_v50 = vmul.f32 -1.442695, %v2635_v20 }
0x1c7e   :  { %2667 = vrot.lane.b32.xlu1 %v2622_v16, %s4820_s0  ;;  %v2634_v41 = vadd.f32 %v2622_v16, %v509_v40  ;;  %v3971_v22 = vmul.f32 -1.442695, %v2633_v38 }
0x1c7f   :  { %v3974_v37 = vmul.f32 -1.442695, %v2636_v52 }
0x1c80   :  { %2669 = vrot.lane.b32.xlu0 %v2627_v63, %s4820_s0  ;;  %v3972_v12 = vmul.f32 -1.442695, %v2634_v41  ;;  %4592 = vpow2.f32 %v3971_v22 }
0x1c82   :  { %2671 = vrot.lane.b32.xlu1 %v2630_v14, %s4820_s0  ;;  %4594 = vpow2.f32 %v3972_v12 }
0x1c83   :  { %4596 = vpow2.f32 %v3973_v50 }
0x1c84   :  { %4598 = vpow2.f32 %v3974_v37 }
0x1c8a   :  { %v4593_v3 = vpop.eup %4592 }
0x1c8b   :  { %v2649_v27 = vadd.f32 1.0, %v4593_v3 }
0x1c8c   :  { %v4595_v11 = vpop.eup %4594 }
0x1c8d   :  { %v4597_v19 = vpop.eup %4596  ;;  %v2650_v26 = vadd.f32 1.0, %v4595_v11  ;;  %4600 = vrcp.f32 %v2649_v27 }
0x1c8e   :  { %v4599_v8 = vpop.eup %4598  ;;  %v2651_v16 = vadd.f32 1.0, %v4597_v19 }
0x1c8f   :  { %v2652_v32 = vadd.f32 1.0, %v4599_v8  ;;  %4602 = vrcp.f32 %v2650_v26 }
0x1c90   :  { %4604 = vrcp.f32 %v2651_v16 }
0x1c91   :  { %4606 = vrcp.f32 %v2652_v32 }
0x1c97   :  { %v4601_v63 = vpop.eup %4600 }
0x1c99   :  { %v4603_v41 = vpop.eup %4602 }
0x1c9a   :  { %v4605_v22 = vpop.eup %4604 }
0x1c9b   :  { %v4607_v50 = vpop.eup %4606 }
0x1cee   :  { %v2666_v14 = vpop.permute.xlu0 %2665 }
0x1cef   :  { %v2677_v38 = vmul.f32 %v4601_v63, %v2666_v14 }
0x1cf0   :  { %v2668_v15 = vpop.permute.xlu1 %2667 }
0x1cf1   :  { %v2678_v20 = vmul.f32 %v4603_v41, %v2668_v15  ;;  %2685 = vrot.lane.b32.xlu0 %v2677_v38, %s4820_s0 }
0x1cf2   :  { %v2670_v52 = vpop.permute.xlu0 %2669 }
0x1cf3   :  { %v2679_v12 = vmul.f32 %v4605_v22, %v2670_v52  ;;  %2687 = vrot.lane.b32.xlu1 %v2678_v20, %s4820_s0 }
0x1cf4   :  { %v2672_v19 = vpop.permute.xlu1 %2671 }
0x1cf5   :  { %v2680_v37 = vmul.f32 %v4607_v50, %v2672_v19  ;;  %2689 = vrot.lane.b32.xlu0 %v2679_v12, %s4820_s0 }
0x1cf7   :  { %2691 = vrot.lane.b32.xlu1 %v2680_v37, %s4820_s0  ;;  %v2730_v37 = vmul.f32 %v4603_v41, %v5656_v9 }
0x1d63   :  { %v2686_v32 = vpop.permute.xlu0 %2685 }
0x1d64   :  { %v2697_v26 = vadd.f32 %v2686_v32, %v506_v23 }
0x1d65   :  { %v2688_v3 = vpop.permute.xlu1 %2687 }
0x1d66   :  { %4608 = vtanh.f32 %v2697_v26  ;;  %v2698_v11 = vadd.f32 %v2688_v3, %v509_v40  ;;  %v2705_v40 = vsub.f32 1.0, %v4601_v63  ;;  %v2707_v26 = vsub.f32 1.0, %v4605_v22 }
0x1d67   :  { %v2690_v27 = vpop.permute.xlu0 %2689 }
0x1d68   :  { %4610 = vtanh.f32 %v2698_v11  ;;  %v2699_v8 = vadd.f32 %v2690_v27, %v514_v57  ;;  %v2706_v57 = vsub.f32 1.0, %v4603_v41 }
0x1d69   :  { %v2692_v16 = vpop.permute.xlu1 %2691 }
0x1d6a   :  { %4612 = vtanh.f32 %v2699_v8  ;;  %v2700_v14 = vadd.f32 %v2692_v16, %v517_v10  ;;  %v2729_v10 = vmul.f32 %v4601_v63, %v5658_v58  ;;  %v2708_v16 = vsub.f32 1.0, %v4607_v50 }
0x1d6c   :  { %4614 = vtanh.f32 %v2700_v14 }
0x1d70   :  { %v4609_v38 = vpop.eup %4608 }
0x1d71   :  { %2713 = vrot.lane.b32.xlu0 %v4609_v38, %s4821_s20 }
0x1d72   :  { %v4611_v15 = vpop.eup %4610 }
0x1d73   :  { %2715 = vrot.lane.b32.xlu1 %v4611_v15, %s4821_s20  ;;  %v2731_v15 = vmul.f32 %v4605_v22, %v5664_v46 }
0x1d74   :  { %v4613_v20 = vpop.eup %4612 }
0x1d75   :  { %2717 = vrot.lane.b32.xlu0 %v4613_v20, %s4821_s20  ;;  %v2732_v20 = vmul.f32 %v4607_v50, %v5666_v13 }
0x1d76   :  { %v4615_v23 = vpop.eup %4614 }
0x1d77   :  { %2719 = vrot.lane.b32.xlu1 %v4615_v23, %s4821_s20 }
0x1de3   :  { %v2714_v52 = vpop.permute.xlu0 %2713 }
0x1de4   :  { %v2725_v12 = vmul.f32 %v2714_v52, %v2705_v40 }
0x1de5   :  { %v2716_v19 = vpop.permute.xlu1 %2715 }
0x1de6   :  { %v2726_v32 = vmul.f32 %v2716_v19, %v2706_v57  ;;  %v5714_v11 = vadd.f32 %v2729_v10, %v2725_v12 }
0x1de7   :  { %v2718_v3 = vpop.permute.xlu0 %2717 }
0x1de8   :  { %6176 = vst [vmem:[#allocation32_spill] sm:$0xff] %v5714_v11  ;;  %v5716_v27 = vadd.f32 %v2730_v37, %v2726_v32  ;;  %v2727_v8 = vmul.f32 %v2718_v3, %v2707_v26  ;;  %v6180_v3 = vld [vmem:[#allocation27_spill] sm:$0xff] }
0x1de9   :  { %v2720_v14 = vpop.permute.xlu1 %2719 }
0x1dea   :  { %6177 = vst [vmem:[#allocation30_spill] sm:$0xff] %v5716_v27  ;;  %v2751_v38 = vpack.c.bf16 %v5716_v27, %v5714_v11  ;;  %v2728_v63 = vmul.f32 %v2720_v14, %v2708_v16  ;;  %v5723_v41 = vadd.f32 %v2731_v15, %v2727_v8  ;;  %v490_v8 = vadd.f32 %v5694_v18, %v6180_v3  ;;  %v6181_v16 = vld [vmem:[#allocation29_spill] sm:$0xff]  ;;  %v6182_v15 = vld [vmem:[#allocation26_spill] sm:$0xff] }
0x1deb   :  { %v493_v14 = vadd.f32 %v5694_v18, %v6181_v16 }
0x1dec   :  { %2755 = vrot.lane.b32.xlu0 %v2751_v38, %s4821_s20  ;;  %6178 = vst [vmem:[#allocation31_spill] sm:$0xff] %v5723_v41  ;;  %v5725_v23 = vadd.f32 %v2732_v20, %v2728_v63  ;;  %v498_v20 = vadd.f32 %v5694_v18, %v6182_v15 }
0x1dee   :  { %6179 = vst [vmem:[#allocation40_spill] sm:$0xff] %v5725_v23  ;;  %v2752_v40 = vpack.c.bf16 %v5725_v23, %v5723_v41 }
0x1df0   :  { %2757 = vrot.lane.b32.xlu1 %v2752_v40, %s4821_s20  ;;  %v6183_v40 = vld [vmem:[#allocation28_spill] sm:$0xff] }
0x1e5e   :  { %v2756_v52 = vpop.permute.xlu0 %2755 }
0x1e5f   :  { %4272 = vmatprep.mubr.msk.bf16.mxu1 %vm294_vm0, %v2756_v52  ;;  %v501_v52 = vadd.f32 %v5694_v18, %v6183_v40 }
0x1e62   :  { %v2758_v12 = vpop.permute.xlu1 %2757 }
0x1e63   :  { %4273 = vmatmul.mubr.msk.bf16.vlgmr.msra.gmra.mrb[44].mxu1 %vm294_vm0, %v2758_v12 }
0x1e64   :  { %4277 = vmatpush3.bf16.msra.mxu1 %v5571_v47 }
0x1e65   :  { %4278 = vmatprep.subr.bf16.mxu1 %v5577_v7 }
0x1e68   :  { %4279 = vmatpush3.bf16.msra.mxu1 %v5577_v7 }
0x1e69   :  { %4284 = vmatprep.subr.bf16.mxu1 %v5571_v47 }
0x1f36   :  { %v4274_v22 = vpop.f32.mrb[44].mxu1 }
0x1f37   :  { %v2799_v50 = vpop.f32.mrb[45].mxu1  ;;  %v2808_v32 = vadd.f32 %v5681_v59, %v4274_v22 }
0x1f38   :  { %v2800_v57 = vadd.f32 %v5681_v59, %v2799_v50  ;;  %v4275_v19 = vpop.f32.mrb[46].mxu1 }
0x1f39   :  { %v2802_v10 = vpop.f32.mrb[47].mxu1  ;;  %v2811_v26 = vadd.f32 %v5681_v59, %v4275_v19  ;;  %v2816_v12 = vadd.f32 %v2808_v32, %v498_v20 }
0x1f3a   :  { %v2803_v37 = vadd.f32 %v5681_v59, %v2802_v10  ;;  %2846 = vrot.lane.b32.xlu0 %v2800_v57, %s4820_s0  ;;  %v2814_v38 = vadd.f32 %v2800_v57, %v490_v8 }
0x1f3b   :  { %v2817_v50 = vadd.f32 %v2811_v26, %v501_v52  ;;  %v3980_v10 = vmul.f32 -1.442695, %v2816_v12 }
0x1f3c   :  { %2848 = vrot.lane.b32.xlu1 %v2803_v37, %s4820_s0  ;;  %v2815_v63 = vadd.f32 %v2803_v37, %v493_v14  ;;  %v3978_v22 = vmul.f32 -1.442695, %v2814_v38 }
0x1f3d   :  { %v3981_v13 = vmul.f32 -1.442695, %v2817_v50 }
0x1f3e   :  { %2850 = vrot.lane.b32.xlu0 %v2808_v32, %s4820_s0  ;;  %v3979_v19 = vmul.f32 -1.442695, %v2815_v63  ;;  %4616 = vpow2.f32 %v3978_v22 }
0x1f40   :  { %2852 = vrot.lane.b32.xlu1 %v2811_v26, %s4820_s0  ;;  %4618 = vpow2.f32 %v3979_v19 }
0x1f41   :  { %4620 = vpow2.f32 %v3980_v10 }
0x1f42   :  { %4622 = vpow2.f32 %v3981_v13 }
0x1f48   :  { %v4617_v3 = vpop.eup %4616 }
0x1f49   :  { %v2830_v57 = vadd.f32 1.0, %v4617_v3 }
0x1f4a   :  { %v4619_v16 = vpop.eup %4618 }
0x1f4b   :  { %v4621_v46 = vpop.eup %4620  ;;  %v2831_v9 = vadd.f32 1.0, %v4619_v16  ;;  %4624 = vrcp.f32 %v2830_v57 }
0x1f4c   :  { %v4623_v15 = vpop.eup %4622  ;;  %v2832_v37 = vadd.f32 1.0, %v4621_v46 }
0x1f4d   :  { %v2833_v58 = vadd.f32 1.0, %v4623_v15  ;;  %4626 = vrcp.f32 %v2831_v9 }
0x1f4e   :  { %4628 = vrcp.f32 %v2832_v37 }
0x1f4f   :  { %4630 = vrcp.f32 %v2833_v58 }
0x1f55   :  { %v4625_v32 = vpop.eup %4624 }
0x1f57   :  { %v4627_v63 = vpop.eup %4626 }
0x1f58   :  { %v4629_v13 = vpop.eup %4628 }
0x1f59   :  { %v4631_v19 = vpop.eup %4630 }
0x1fac   :  { %v2847_v26 = vpop.permute.xlu0 %2846 }
0x1fad   :  { %v2858_v38 = vmul.f32 %v4625_v32, %v2847_v26 }
0x1fae   :  { %v2849_v40 = vpop.permute.xlu1 %2848 }
0x1faf   :  { %v2859_v12 = vmul.f32 %v4627_v63, %v2849_v40  ;;  %2866 = vrot.lane.b32.xlu0 %v2858_v38, %s4820_s0 }
0x1fb0   :  { %v2851_v22 = vpop.permute.xlu0 %2850 }
0x1fb1   :  { %v2860_v50 = vmul.f32 %v4629_v13, %v2851_v22  ;;  %2868 = vrot.lane.b32.xlu1 %v2859_v12, %s4820_s0 }
0x1fb2   :  { %v2853_v46 = vpop.permute.xlu1 %2852 }
0x1fb3   :  { %v2861_v10 = vmul.f32 %v4631_v19, %v2853_v46  ;;  %2870 = vrot.lane.b32.xlu0 %v2860_v50, %s4820_s0 }
0x1fb5   :  { %2872 = vrot.lane.b32.xlu1 %v2861_v10, %s4820_s0  ;;  %v2911_v10 = vmul.f32 %v4627_v63, %v5716_v27 }
0x2021   :  { %v2867_v9 = vpop.permute.xlu0 %2866 }
0x2022   :  { %v2878_v58 = vadd.f32 %v2867_v9, %v490_v8 }
0x2023   :  { %v2869_v3 = vpop.permute.xlu1 %2868 }
0x2024   :  { %4632 = vtanh.f32 %v2878_v58  ;;  %v2879_v16 = vadd.f32 %v2869_v3, %v493_v14  ;;  %v2886_v14 = vsub.f32 1.0, %v4625_v32  ;;  %v2888_v58 = vsub.f32 1.0, %v4629_v13 }
0x2025   :  { %v2871_v57 = vpop.permute.xlu0 %2870 }
0x2026   :  { %4634 = vtanh.f32 %v2879_v16  ;;  %v2880_v15 = vadd.f32 %v2871_v57, %v498_v20  ;;  %v2887_v20 = vsub.f32 1.0, %v4627_v63 }
0x2027   :  { %v2873_v37 = vpop.permute.xlu1 %2872 }
0x2028   :  { %4636 = vtanh.f32 %v2880_v15  ;;  %v2881_v26 = vadd.f32 %v2873_v37, %v501_v52  ;;  %v2910_v52 = vmul.f32 %v4625_v32, %v5714_v11  ;;  %v2889_v37 = vsub.f32 1.0, %v4631_v19 }
0x202a   :  { %4638 = vtanh.f32 %v2881_v26 }
0x202e   :  { %v4633_v38 = vpop.eup %4632 }
0x202f   :  { %2894 = vrot.lane.b32.xlu0 %v4633_v38, %s4821_s20 }
0x2030   :  { %v4635_v40 = vpop.eup %4634 }
0x2031   :  { %2896 = vrot.lane.b32.xlu1 %v4635_v40, %s4821_s20  ;;  %v2912_v40 = vmul.f32 %v4629_v13, %v5723_v41 }
0x2032   :  { %v4637_v12 = vpop.eup %4636 }
0x2033   :  { %2898 = vrot.lane.b32.xlu0 %v4637_v12, %s4821_s20  ;;  %v2913_v12 = vmul.f32 %v4631_v19, %v5725_v23 }
0x2034   :  { %v4639_v8 = vpop.eup %4638 }
0x2035   :  { %2900 = vrot.lane.b32.xlu1 %v4639_v8, %s4821_s20 }
0x20a1   :  { %v2895_v22 = vpop.permute.xlu0 %2894 }
0x20a2   :  { %v2906_v50 = vmul.f32 %v2895_v22, %v2886_v14 }
0x20a3   :  { %v2897_v46 = vpop.permute.xlu1 %2896 }
0x20a4   :  { %v2907_v9 = vmul.f32 %v2897_v46, %v2887_v20  ;;  %v5762_v16 = vadd.f32 %v2910_v52, %v2906_v50 }
0x20a5   :  { %v2899_v3 = vpop.permute.xlu0 %2898 }
0x20a6   :  { %6184 = vst [vmem:[#allocation27_spill] sm:$0xff] %v5762_v16  ;;  %v5764_v57 = vadd.f32 %v2911_v10, %v2907_v9  ;;  %v2908_v15 = vmul.f32 %v2899_v3, %v2888_v58  ;;  %v6189_v3 = vld [vmem:[#allocation25_spill] sm:$0xff] }
0x20a7   :  { %v2901_v26 = vpop.permute.xlu1 %2900 }
0x20a8   :  { %6185 = vst [vmem:[#allocation29_spill] sm:$0xff] %v5764_v57  ;;  %v2932_v38 = vpack.c.bf16 %v5764_v57, %v5762_v16  ;;  %v2909_v32 = vmul.f32 %v2901_v26, %v2889_v37  ;;  %v5771_v63 = vadd.f32 %v2912_v40, %v2908_v15  ;;  %v477_v15 = vadd.f32 %v5694_v18, %v6189_v3  ;;  %v6190_v26 = vld [vmem:[#allocation22_spill] sm:$0xff] }
0x20aa   :  { %2936 = vrot.lane.b32.xlu0 %v2932_v38, %s4821_s20  ;;  %6186 = vst [vmem:[#allocation26_spill] sm:$0xff] %v5771_v63  ;;  %v5773_v8 = vadd.f32 %v2913_v12, %v2909_v32  ;;  %v482_v38 = vadd.f32 %v5694_v18, %v6190_v26  ;;  %v6191_v12 = vld [vmem:[#allocation24_spill] sm:$0xff] }
0x20ab   :  { %v485_v32 = vadd.f32 %v5694_v18, %v6191_v12 }
0x20ac   :  { %6187 = vst [vmem:[#allocation28_spill] sm:$0xff] %v5773_v8  ;;  %v2933_v14 = vpack.c.bf16 %v5773_v8, %v5771_v63 }
0x20ae   :  { %2938 = vrot.lane.b32.xlu1 %v2933_v14, %s4821_s20 }
0x211c   :  { %v2937_v22 = vpop.permute.xlu0 %2936 }
0x211d   :  { %4280 = vmatprep.mubr.msk.bf16.mxu1 %vm294_vm0, %v2937_v22 }
0x2120   :  { %v2939_v50 = vpop.permute.xlu1 %2938 }
0x2121   :  { %4281 = vmatmul.mubr.msk.bf16.vlgmr.msra.gmra.mrb[48].mxu1 %vm294_vm0, %v2939_v50 }
0x2122   :  { %4285 = vmatpush3.bf16.msra.mxu1 %v5571_v47 }
0x2123   :  { %4286 = vmatprep.subr.bf16.mxu1 %v5577_v7 }
0x2126   :  { %4287 = vmatpush3.bf16.msra.mxu1 %v5577_v7 }
0x2127   :  { %4292 = vmatprep.subr.bf16.mxu1 %v5571_v47  ;;  %v6188_v47 = vld [vmem:[#allocation23_spill] sm:$0xff] }
0x2128   :  { %v474_v7 = vadd.f32 %v5694_v18, %v6188_v47 }
0x21f4   :  { %v4282_v13 = vpop.f32.mrb[48].mxu1 }
0x21f5   :  { %v2980_v19 = vpop.f32.mrb[49].mxu1  ;;  %v2989_v9 = vadd.f32 %v5681_v59, %v4282_v13 }
0x21f6   :  { %v2981_v20 = vadd.f32 %v5681_v59, %v2980_v19  ;;  %v4283_v46 = vpop.f32.mrb[50].mxu1 }
0x21f7   :  { %v2983_v52 = vpop.f32.mrb[51].mxu1  ;;  %v2992_v58 = vadd.f32 %v5681_v59, %v4283_v46  ;;  %v2997_v14 = vadd.f32 %v2989_v9, %v482_v38 }
0x21f8   :  { %v2984_v10 = vadd.f32 %v5681_v59, %v2983_v52  ;;  %3027 = vrot.lane.b32.xlu0 %v2981_v20, %s4820_s0  ;;  %v2995_v37 = vadd.f32 %v2981_v20, %v474_v7 }
0x21f9   :  { %v2998_v50 = vadd.f32 %v2992_v58, %v485_v32  ;;  %v3987_v19 = vmul.f32 -1.442695, %v2997_v14 }
0x21fa   :  { %3029 = vrot.lane.b32.xlu1 %v2984_v10, %s4820_s0  ;;  %v2996_v40 = vadd.f32 %v2984_v10, %v477_v15  ;;  %v3985_v22 = vmul.f32 -1.442695, %v2995_v37 }
0x21fb   :  { %v3988_v46 = vmul.f32 -1.442695, %v2998_v50 }
0x21fc   :  { %3031 = vrot.lane.b32.xlu0 %v2989_v9, %s4820_s0  ;;  %v3986_v13 = vmul.f32 -1.442695, %v2996_v40  ;;  %4640 = vpow2.f32 %v3985_v22 }
0x21fe   :  { %3033 = vrot.lane.b32.xlu1 %v2992_v58, %s4820_s0  ;;  %4642 = vpow2.f32 %v3986_v13 }
0x21ff   :  { %4644 = vpow2.f32 %v3987_v19 }
0x2200   :  { %4646 = vpow2.f32 %v3988_v46 }
0x2206   :  { %v4641_v52 = vpop.eup %4640 }
0x2207   :  { %v3011_v20 = vadd.f32 1.0, %v4641_v52 }
0x2208   :  { %v4643_v47 = vpop.eup %4642 }
0x2209   :  { %v4645_v3 = vpop.eup %4644  ;;  %v3012_v23 = vadd.f32 1.0, %v4643_v47  ;;  %4648 = vrcp.f32 %v3011_v20 }
0x220a   :  { %v4647_v26 = vpop.eup %4646  ;;  %v3013_v10 = vadd.f32 1.0, %v4645_v3 }
0x220b   :  { %v3014_v41 = vadd.f32 1.0, %v4647_v26  ;;  %4650 = vrcp.f32 %v3012_v23 }
0x220c   :  { %4652 = vrcp.f32 %v3013_v10 }
0x220d   :  { %4654 = vrcp.f32 %v3014_v41 }
0x2213   :  { %v4649_v9 = vpop.eup %4648 }
0x2215   :  { %v4651_v40 = vpop.eup %4650 }
0x2216   :  { %v4653_v22 = vpop.eup %4652 }
0x2217   :  { %v4655_v19 = vpop.eup %4654 }
0x226a   :  { %v3028_v58 = vpop.permute.xlu0 %3027 }
0x226b   :  { %v3039_v37 = vmul.f32 %v4649_v9, %v3028_v58 }
0x226c   :  { %v3030_v12 = vpop.permute.xlu1 %3029 }
0x226d   :  { %v3040_v14 = vmul.f32 %v4651_v40, %v3030_v12  ;;  %3047 = vrot.lane.b32.xlu0 %v3039_v37, %s4820_s0 }
0x226e   :  { %v3032_v50 = vpop.permute.xlu0 %3031 }
0x226f   :  { %v3041_v13 = vmul.f32 %v4653_v22, %v3032_v50  ;;  %3049 = vrot.lane.b32.xlu1 %v3040_v14, %s4820_s0 }
0x2270   :  { %v3034_v46 = vpop.permute.xlu1 %3033 }
0x2271   :  { %v3042_v52 = vmul.f32 %v4655_v19, %v3034_v46  ;;  %3051 = vrot.lane.b32.xlu0 %v3041_v13, %s4820_s0 }
0x2273   :  { %3053 = vrot.lane.b32.xlu1 %v3042_v52, %s4820_s0  ;;  %v3092_v52 = vmul.f32 %v4651_v40, %v5764_v57 }
0x22df   :  { %v3048_v41 = vpop.permute.xlu0 %3047 }
0x22e0   :  { %v3059_v23 = vadd.f32 %v3048_v41, %v474_v7 }
0x22e1   :  { %v3050_v47 = vpop.permute.xlu1 %3049 }
0x22e2   :  { %4656 = vtanh.f32 %v3059_v23  ;;  %v3060_v20 = vadd.f32 %v3050_v47, %v477_v15  ;;  %v3067_v15 = vsub.f32 1.0, %v4649_v9  ;;  %v3069_v23 = vsub.f32 1.0, %v4653_v22 }
0x22e3   :  { %v3052_v3 = vpop.permute.xlu0 %3051 }
0x22e4   :  { %4658 = vtanh.f32 %v3060_v20  ;;  %v3061_v26 = vadd.f32 %v3052_v3, %v482_v38  ;;  %v3068_v38 = vsub.f32 1.0, %v4651_v40 }
0x22e5   :  { %v3054_v10 = vpop.permute.xlu1 %3053 }
0x22e6   :  { %4660 = vtanh.f32 %v3061_v26  ;;  %v3062_v58 = vadd.f32 %v3054_v10, %v485_v32  ;;  %v3091_v32 = vmul.f32 %v4649_v9, %v5762_v16  ;;  %v3070_v10 = vsub.f32 1.0, %v4655_v19 }
0x22e8   :  { %4662 = vtanh.f32 %v3062_v58 }
0x22ec   :  { %v4657_v37 = vpop.eup %4656 }
0x22ed   :  { %3075 = vrot.lane.b32.xlu0 %v4657_v37, %s4821_s20 }
0x22ee   :  { %v4659_v12 = vpop.eup %4658 }
0x22ef   :  { %3077 = vrot.lane.b32.xlu1 %v4659_v12, %s4821_s20  ;;  %v3093_v12 = vmul.f32 %v4653_v22, %v5771_v63  ;;  %v5831_v22 = vld [vmem:[%s6112_s2] sm:$0xff]  }
0x22f0   :  { %v4661_v14 = vpop.eup %4660 }
0x22f1   :  { %3079 = vrot.lane.b32.xlu0 %v4661_v14, %s4821_s20  ;;  %v3094_v14 = vmul.f32 %v4655_v19, %v5773_v8  ;;  %v5837_v19 = vld [vmem:[%s6112_s2 + $0x8] sm:$0xff]  }
0x22f2   :  { %v4663_v7 = vpop.eup %4662 }
0x22f3   :  { %3081 = vrot.lane.b32.xlu1 %v4663_v7, %s4821_s20 }
0x235f   :  { %v3076_v50 = vpop.permute.xlu0 %3075 }
0x2360   :  { %v3087_v13 = vmul.f32 %v3076_v50, %v3067_v15 }
0x2361   :  { %v3078_v46 = vpop.permute.xlu1 %3077 }
0x2362   :  { %v3088_v41 = vmul.f32 %v3078_v46, %v3068_v38  ;;  %v5810_v20 = vadd.f32 %v3091_v32, %v3087_v13 }
0x2363   :  { %v3080_v47 = vpop.permute.xlu0 %3079 }
0x2364   :  { %v5812_v3 = vadd.f32 %v3092_v52, %v3088_v41  ;;  %v3089_v26 = vmul.f32 %v3080_v47, %v3069_v23 }
0x2365   :  { %v3082_v58 = vpop.permute.xlu1 %3081 }
0x2366   :  { %v3113_v37 = vpack.c.bf16 %v5812_v3, %v5810_v20  ;;  %v3090_v9 = vmul.f32 %v3082_v58, %v3070_v10  ;;  %v5819_v40 = vadd.f32 %v3093_v12, %v3089_v26  ;;  %v6193_v10 = vld [vmem:[#allocation19_spill] sm:$0xff] }
0x2367   :  { %v458_v58 = vadd.f32 %v5694_v18, %v6193_v10 }
0x2368   :  { %3117 = vrot.lane.b32.xlu0 %v3113_v37, %s4821_s20  ;;  %v5821_v7 = vadd.f32 %v3094_v14, %v3090_v9  ;;  %v6194_v37 = vld [vmem:[#allocation21_spill] sm:$0xff]  ;;  %v6195_v9 = vld [vmem:[#allocation18_spill] sm:$0xff] }
0x2369   :  { %v461_v12 = vadd.f32 %v5694_v18, %v6194_v37 }
0x236a   :  { %6192 = vst [vmem:[#allocation23_spill] sm:$0xff] %v5821_v7  ;;  %v3114_v15 = vpack.c.bf16 %v5821_v7, %v5819_v40 }
0x236c   :  { %3119 = vrot.lane.b32.xlu1 %v3114_v15, %s4821_s20  ;;  %v466_v15 = vadd.f32 %v5694_v18, %v6195_v9 }
0x23da   :  { %v3118_v50 = vpop.permute.xlu0 %3117 }
0x23db   :  { %4288 = vmatprep.mubr.msk.bf16.mxu1 %vm294_vm0, %v3118_v50 }
0x23de   :  { %v3120_v13 = vpop.permute.xlu1 %3119 }
0x23df   :  { %4289 = vmatmul.mubr.msk.bf16.vlgmr.msra.gmra.mrb[52].mxu1 %vm294_vm0, %v3120_v13  ;;  %v6196_v13 = vld [vmem:[#allocation20_spill] sm:$0xff] }
0x23e0   :  { %4293 = vmatpush3.bf16.msra.mxu1 %v5831_v22 }
0x23e1   :  { %4294 = vmatprep.subr.bf16.mxu1 %v5837_v19 }
0x23e4   :  { %4295 = vmatpush3.bf16.msra.mxu1 %v5837_v19 }
0x23e5   :  { %4300 = vmatprep.subr.bf16.mxu1 %v5831_v22 }
0x24b2   :  { %v4290_v38 = vpop.f32.mrb[52].mxu1 }
0x24b3   :  { %v3161_v46 = vpop.f32.mrb[53].mxu1  ;;  %v3170_v47 = vadd.f32 %v5681_v59, %v4290_v38  ;;  %v469_v38 = vadd.f32 %v5694_v18, %v6196_v13 }
0x24b4   :  { %v3162_v32 = vadd.f32 %v5681_v59, %v3161_v46  ;;  %v4291_v52 = vpop.f32.mrb[54].mxu1 }
0x24b5   :  { %v3164_v41 = vpop.f32.mrb[55].mxu1  ;;  %v3173_v26 = vadd.f32 %v5681_v59, %v4291_v52  ;;  %v3178_v46 = vadd.f32 %v3170_v47, %v466_v15 }
0x24b6   :  { %v3165_v23 = vadd.f32 %v5681_v59, %v3164_v41  ;;  %3208 = vrot.lane.b32.xlu0 %v3162_v32, %s4820_s0  ;;  %v3176_v14 = vadd.f32 %v3162_v32, %v458_v58 }
0x24b7   :  { %v3179_v41 = vadd.f32 %v3173_v26, %v469_v38  ;;  %v3994_v63 = vmul.f32 -1.442695, %v3178_v46 }
0x24b8   :  { %3210 = vrot.lane.b32.xlu1 %v3165_v23, %s4820_s0  ;;  %v3177_v50 = vadd.f32 %v3165_v23, %v461_v12  ;;  %v3992_v52 = vmul.f32 -1.442695, %v3176_v14 }
0x24b9   :  { %v3995_v57 = vmul.f32 -1.442695, %v3179_v41 }
0x24ba   :  { %3212 = vrot.lane.b32.xlu0 %v3170_v47, %s4820_s0  ;;  %v3993_v8 = vmul.f32 -1.442695, %v3177_v50  ;;  %4664 = vpow2.f32 %v3992_v52 }
0x24bc   :  { %3214 = vrot.lane.b32.xlu1 %v3173_v26, %s4820_s0  ;;  %4666 = vpow2.f32 %v3993_v8 }
0x24bd   :  { %4668 = vpow2.f32 %v3994_v63 }
0x24be   :  { %4670 = vpow2.f32 %v3995_v57 }
0x24c4   :  { %v4665_v10 = vpop.eup %4664 }
0x24c5   :  { %v3192_v32 = vadd.f32 1.0, %v4665_v10 }
0x24c6   :  { %v4667_v37 = vpop.eup %4666 }
0x24c7   :  { %v4669_v16 = vpop.eup %4668  ;;  %v3193_v27 = vadd.f32 1.0, %v4667_v37  ;;  %4672 = vrcp.f32 %v3192_v32 }
0x24c8   :  { %v4671_v9 = vpop.eup %4670  ;;  %v3194_v23 = vadd.f32 1.0, %v4669_v16 }
0x24c9   :  { %v3195_v11 = vadd.f32 1.0, %v4671_v9  ;;  %4674 = vrcp.f32 %v3193_v27 }
0x24ca   :  { %4676 = vrcp.f32 %v3194_v23 }
0x24cb   :  { %4678 = vrcp.f32 %v3195_v11 }
0x24d1   :  { %v4673_v47 = vpop.eup %4672 }
0x24d3   :  { %v4675_v50 = vpop.eup %4674 }
0x24d4   :  { %v4677_v57 = vpop.eup %4676 }
0x24d5   :  { %v4679_v52 = vpop.eup %4678 }
0x2528   :  { %v3209_v26 = vpop.permute.xlu0 %3208 }
0x2529   :  { %v3220_v14 = vmul.f32 %v4673_v47, %v3209_v26 }
0x252a   :  { %v3211_v13 = vpop.permute.xlu1 %3210 }
0x252b   :  { %v3221_v8 = vmul.f32 %v4675_v50, %v3211_v13  ;;  %3228 = vrot.lane.b32.xlu0 %v3220_v14, %s4820_s0 }
0x252c   :  { %v3213_v63 = vpop.permute.xlu0 %3212 }
0x252d   :  { %v3222_v46 = vmul.f32 %v4677_v57, %v3213_v63  ;;  %3230 = vrot.lane.b32.xlu1 %v3221_v8, %s4820_s0 }
0x252e   :  { %v3215_v16 = vpop.permute.xlu1 %3214 }
0x252f   :  { %v3223_v41 = vmul.f32 %v4679_v52, %v3215_v16  ;;  %3232 = vrot.lane.b32.xlu0 %v3222_v46, %s4820_s0 }
0x2531   :  { %3234 = vrot.lane.b32.xlu1 %v3223_v41, %s4820_s0  ;;  %v3273_v41 = vmul.f32 %v4675_v50, %v5812_v3 }
0x259d   :  { %v3229_v11 = vpop.permute.xlu0 %3228 }
0x259e   :  { %v3240_v27 = vadd.f32 %v3229_v11, %v458_v58 }
0x259f   :  { %v3231_v10 = vpop.permute.xlu1 %3230 }
0x25a0   :  { %4680 = vtanh.f32 %v3240_v27  ;;  %v3241_v37 = vadd.f32 %v3231_v10, %v461_v12  ;;  %v3248_v12 = vsub.f32 1.0, %v4673_v47  ;;  %v3250_v27 = vsub.f32 1.0, %v4677_v57 }
0x25a1   :  { %v3233_v32 = vpop.permute.xlu0 %3232 }
0x25a2   :  { %4682 = vtanh.f32 %v3241_v37  ;;  %v3242_v9 = vadd.f32 %v3233_v32, %v466_v15  ;;  %v3249_v15 = vsub.f32 1.0, %v4675_v50 }
0x25a3   :  { %v3235_v23 = vpop.permute.xlu1 %3234 }
0x25a4   :  { %4684 = vtanh.f32 %v3242_v9  ;;  %v3243_v26 = vadd.f32 %v3235_v23, %v469_v38  ;;  %v3272_v38 = vmul.f32 %v4673_v47, %v5810_v20  ;;  %v3251_v23 = vsub.f32 1.0, %v4679_v52 }
0x25a6   :  { %4686 = vtanh.f32 %v3243_v26 }
0x25aa   :  { %v4681_v14 = vpop.eup %4680 }
0x25ab   :  { %3256 = vrot.lane.b32.xlu0 %v4681_v14, %s4821_s20 }
0x25ac   :  { %v4683_v13 = vpop.eup %4682 }
0x25ad   :  { %3258 = vrot.lane.b32.xlu1 %v4683_v13, %s4821_s20  ;;  %v3274_v13 = vmul.f32 %v4677_v57, %v5819_v40 }
0x25ae   :  { %v4685_v8 = vpop.eup %4684 }
0x25af   :  { %3260 = vrot.lane.b32.xlu0 %v4685_v8, %s4821_s20  ;;  %v3275_v8 = vmul.f32 %v4679_v52, %v5821_v7 }
0x25b0   :  { %v4687_v58 = vpop.eup %4686 }
0x25b1   :  { %3262 = vrot.lane.b32.xlu1 %v4687_v58, %s4821_s20 }
0x261d   :  { %v3257_v63 = vpop.permute.xlu0 %3256 }
0x261e   :  { %v3268_v46 = vmul.f32 %v3257_v63, %v3248_v12 }
0x261f   :  { %v3259_v16 = vpop.permute.xlu1 %3258 }
0x2620   :  { %v3269_v11 = vmul.f32 %v3259_v16, %v3249_v15  ;;  %v5868_v37 = vadd.f32 %v3272_v38, %v3268_v46 }
0x2621   :  { %v3261_v10 = vpop.permute.xlu0 %3260 }
0x2622   :  { %v5870_v32 = vadd.f32 %v3273_v41, %v3269_v11  ;;  %v3270_v9 = vmul.f32 %v3261_v10, %v3250_v27  ;;  %v6199_v10 = vld [vmem:[#allocation17_spill] sm:$0xff] }
0x2623   :  { %v3263_v26 = vpop.permute.xlu1 %3262 }
0x2624   :  { %v3294_v14 = vpack.c.bf16 %v5870_v32, %v5868_v37  ;;  %v3271_v47 = vmul.f32 %v3263_v26, %v3251_v23  ;;  %v5877_v50 = vadd.f32 %v3274_v13, %v3270_v9  ;;  %v445_v9 = vadd.f32 %v5694_v18, %v6199_v10  ;;  %v6200_v26 = vld [vmem:[#allocation14_spill] sm:$0xff] }
0x2626   :  { %3298 = vrot.lane.b32.xlu0 %v3294_v14, %s4821_s20  ;;  %v5879_v58 = vadd.f32 %v3275_v8, %v3271_v47  ;;  %v450_v14 = vadd.f32 %v5694_v18, %v6200_v26  ;;  %v6201_v8 = vld [vmem:[#allocation16_spill] sm:$0xff] }
0x2627   :  { %v453_v47 = vadd.f32 %v5694_v18, %v6201_v8 }
0x2628   :  { %6197 = vst [vmem:[#allocation25_spill] sm:$0xff] %v5879_v58  ;;  %v3295_v12 = vpack.c.bf16 %v5879_v58, %v5877_v50 }
0x262a   :  { %3300 = vrot.lane.b32.xlu1 %v3295_v12, %s4821_s20 }
0x2698   :  { %v3299_v63 = vpop.permute.xlu0 %3298 }
0x2699   :  { %4296 = vmatprep.mubr.msk.bf16.mxu1 %vm294_vm0, %v3299_v63 }
0x269c   :  { %v3301_v46 = vpop.permute.xlu1 %3300 }
0x269d   :  { %4297 = vmatmul.mubr.msk.bf16.vlgmr.msra.gmra.mrb[56].mxu1 %vm294_vm0, %v3301_v46 }
0x269e   :  { %4301 = vmatpush3.bf16.msra.mxu1 %v5831_v22 }
0x269f   :  { %4302 = vmatprep.subr.bf16.mxu1 %v5837_v19 }
0x26a2   :  { %4303 = vmatpush3.bf16.msra.mxu1 %v5837_v19  ;;  %v6198_v19 = vld [vmem:[#allocation15_spill] sm:$0xff] }
0x26a3   :  { %v442_v27 = vadd.f32 %v5694_v18, %v6198_v19 }
0x2770   :  { %v4298_v57 = vpop.f32.mrb[56].mxu1 }
0x2771   :  { %v3342_v52 = vpop.f32.mrb[57].mxu1  ;;  %v3351_v11 = vadd.f32 %v5681_v59, %v4298_v57 }
0x2772   :  { %v3343_v15 = vadd.f32 %v5681_v59, %v3342_v52  ;;  %v4299_v16 = vpop.f32.mrb[58].mxu1 }
0x2773   :  { %v3345_v38 = vpop.f32.mrb[59].mxu1  ;;  %v3354_v22 = vadd.f32 %v5681_v59, %v4299_v16  ;;  %v3359_v12 = vadd.f32 %v3351_v11, %v450_v14 }
0x2774   :  { %v3346_v41 = vadd.f32 %v5681_v59, %v3345_v38  ;;  %3389 = vrot.lane.b32.xlu0 %v3343_v15, %s4820_s0  ;;  %v3357_v23 = vadd.f32 %v3343_v15, %v442_v27 }
0x2775   :  { %v3360_v63 = vadd.f32 %v3354_v22, %v453_v47  ;;  %v4001_v57 = vmul.f32 -1.442695, %v3359_v12 }
0x2776   :  { %3391 = vrot.lane.b32.xlu1 %v3346_v41, %s4820_s0  ;;  %v3358_v13 = vadd.f32 %v3346_v41, %v445_v9  ;;  %v3999_v59 = vmul.f32 -1.442695, %v3357_v23 }
0x2777   :  { %v4002_v52 = vmul.f32 -1.442695, %v3360_v63 }
0x2778   :  { %3393 = vrot.lane.b32.xlu0 %v3351_v11, %s4820_s0  ;;  %v4000_v46 = vmul.f32 -1.442695, %v3358_v13  ;;  %4688 = vpow2.f32 %v3999_v59 }
0x277a   :  { %3395 = vrot.lane.b32.xlu1 %v3354_v22, %s4820_s0  ;;  %4690 = vpow2.f32 %v4000_v46 }
0x277b   :  { %4692 = vpow2.f32 %v4001_v57 }
0x277c   :  { %4694 = vpow2.f32 %v4002_v52 }
0x2782   :  { %v4689_v16 = vpop.eup %4688 }
0x2783   :  { %v3373_v15 = vadd.f32 1.0, %v4689_v16 }
0x2784   :  { %v4691_v38 = vpop.eup %4690 }
0x2785   :  { %v4693_v19 = vpop.eup %4692  ;;  %v3374_v10 = vadd.f32 1.0, %v4691_v38  ;;  %4696 = vrcp.f32 %v3373_v15 }
0x2786   :  { %v4695_v26 = vpop.eup %4694  ;;  %v3375_v41 = vadd.f32 1.0, %v4693_v19 }
0x2787   :  { %v3376_v7 = vadd.f32 1.0, %v4695_v26  ;;  %4698 = vrcp.f32 %v3374_v10 }
0x2788   :  { %4700 = vrcp.f32 %v3375_v41 }
0x2789   :  { %4702 = vrcp.f32 %v3376_v7 }
0x278f   :  { %v4697_v18 = vpop.eup %4696 }
0x2791   :  { %v4699_v23 = vpop.eup %4698 }
0x2792   :  { %v4701_v12 = vpop.eup %4700 }
0x2793   :  { %v4703_v46 = vpop.eup %4702 }
0x27e6   :  { %v3390_v11 = vpop.permute.xlu0 %3389 }
0x27e7   :  { %v3401_v22 = vmul.f32 %v4697_v18, %v3390_v11 }
0x27e8   :  { %v3392_v13 = vpop.permute.xlu1 %3391 }
0x27e9   :  { %v3402_v8 = vmul.f32 %v4699_v23, %v3392_v13  ;;  %3409 = vrot.lane.b32.xlu0 %v3401_v22, %s4820_s0 }
0x27ea   :  { %v3394_v59 = vpop.permute.xlu0 %3393 }
0x27eb   :  { %v3403_v63 = vmul.f32 %v4701_v12, %v3394_v59  ;;  %3411 = vrot.lane.b32.xlu1 %v3402_v8, %s4820_s0 }
0x27ec   :  { %v3396_v57 = vpop.permute.xlu1 %3395 }
0x27ed   :  { %v3404_v52 = vmul.f32 %v4703_v46, %v3396_v57  ;;  %3413 = vrot.lane.b32.xlu0 %v3403_v63, %s4820_s0  ;;  %v3454_v57 = vmul.f32 %v4699_v23, %v5870_v32 }
0x27ef   :  { %3415 = vrot.lane.b32.xlu1 %v3404_v52, %s4820_s0 }
0x285b   :  { %v3410_v7 = vpop.permute.xlu0 %3409 }
0x285c   :  { %v3421_v16 = vadd.f32 %v3410_v7, %v442_v27  ;;  %v3431_v7 = vsub.f32 1.0, %v4701_v12 }
0x285d   :  { %v3412_v38 = vpop.permute.xlu1 %3411 }
0x285e   :  { %4704 = vtanh.f32 %v3421_v16  ;;  %v3422_v15 = vadd.f32 %v3412_v38, %v445_v9  ;;  %v3429_v9 = vsub.f32 1.0, %v4697_v18 }
0x285f   :  { %v3414_v19 = vpop.permute.xlu0 %3413 }
0x2860   :  { %4706 = vtanh.f32 %v3422_v15  ;;  %v3423_v10 = vadd.f32 %v3414_v19, %v450_v14  ;;  %v3430_v14 = vsub.f32 1.0, %v4699_v23 }
0x2861   :  { %v3416_v26 = vpop.permute.xlu1 %3415 }
0x2862   :  { %4708 = vtanh.f32 %v3423_v10  ;;  %v3424_v41 = vadd.f32 %v3416_v26, %v453_v47  ;;  %v3453_v47 = vmul.f32 %v4697_v18, %v5868_v37  ;;  %v3432_v10 = vsub.f32 1.0, %v4703_v46 }
0x2864   :  { %4710 = vtanh.f32 %v3424_v41 }
0x2868   :  { %v4705_v11 = vpop.eup %4704 }
0x2869   :  { %3437 = vrot.lane.b32.xlu0 %v4705_v11, %s4821_s20  ;;  %v3455_v11 = vmul.f32 %v4701_v12, %v5877_v50 }
0x286a   :  { %v4707_v22 = vpop.eup %4706 }
0x286b   :  { %3439 = vrot.lane.b32.xlu1 %v4707_v22, %s4821_s20  ;;  %v3456_v22 = vmul.f32 %v4703_v46, %v5879_v58 }
0x286c   :  { %v4709_v13 = vpop.eup %4708 }
0x286d   :  { %3441 = vrot.lane.b32.xlu0 %v4709_v13, %s4821_s20 }
0x286e   :  { %v4711_v27 = vpop.eup %4710 }
0x286f   :  { %3443 = vrot.lane.b32.xlu1 %v4711_v27, %s4821_s20 }
0x28db   :  { %v3438_v8 = vpop.permute.xlu0 %3437 }
0x28dc   :  { %v3449_v59 = vmul.f32 %v3438_v8, %v3429_v9 }
0x28dd   :  { %v3440_v63 = vpop.permute.xlu1 %3439 }
0x28de   :  { %v3450_v52 = vmul.f32 %v3440_v63, %v3430_v14  ;;  %v5915_v38 = vadd.f32 %v3453_v47, %v3449_v59  ;;  %v4778_v59 = vld [vmem:[%s6114_s4] ss:$0 sm:$0xff]  ;;  %s3905_s4 = sld [smem:[#allocation4 + $0xf]] }
0x28df   :  { %v3442_v16 = vpop.permute.xlu0 %3441 }
0x28e0   :  { %v5917_v15 = vadd.f32 %v3454_v57, %v3450_v52  ;;  %v3451_v19 = vmul.f32 %v3442_v16, %v3431_v7  ;;  %v4779_v16 = vld [vmem:[%s6113_s3] ss:$0 sm:$0xff]  ;;  %s3912_s3 = sld [smem:[#allocation4 + $0xe]] }
0x28e1   :  { %v3444_v26 = vpop.permute.xlu1 %3443 }
0x28e2   :  { %6202 = vst [vmem:[#allocation22_spill] sm:$0xff] %v5917_v15  ;;  %v3475_v41 = vpack.c.bf16 %v5917_v15, %v5915_v38  ;;  %v3452_v18 = vmul.f32 %v3444_v26, %v3432_v10  ;;  %v5923_v13 = vadd.f32 %v3455_v11, %v3451_v19  ;;  %v6205_v19 = vld [vmem:[#allocation11_spill] sm:$0xff]  ;;  %v6206_v26 = vld [vmem:[#allocation13_spill] sm:$0xff] }
0x28e3   :  { %v426_v10 = vadd.f32 %v4779_v16, %v6205_v19 }
0x28e4   :  { %6203 = vst [vmem:[#allocation24_spill] sm:$0xff] %v5923_v13  ;;  %v5925_v23 = vadd.f32 %v3456_v22, %v3452_v18  ;;  %3479 = vrot.lane.b32.xlu0 %v3475_v41, %s4821_s20  ;;  %v429_v41 = vadd.f32 %v4779_v16, %v6206_v26  ;;  %v6207_v22 = vld [vmem:[#allocation10_spill] sm:$0xff] }
0x28e5   :  { %v434_v18 = vadd.f32 %v4779_v16, %v6207_v22 }
0x28e6   :  { %6204 = vst [vmem:[#allocation19_spill] sm:$0xff] %v5925_v23  ;;  %v3476_v27 = vpack.c.bf16 %v5925_v23, %v5923_v13 }
0x28e8   :  { %3481 = vrot.lane.b32.xlu1 %v3476_v27, %s4821_s20 }
0x2956   :  { %v3480_v9 = vpop.permute.xlu0 %3479 }
0x2957   :  { %4304 = vmatprep.mubr.msk.bf16.mxu1 %vm294_vm0, %v3480_v9  ;;  %v6208_v9 = vld [vmem:[#allocation12_spill] sm:$0xff] }
0x295a   :  { %v3482_v8 = vpop.permute.xlu1 %3481 }
0x295b   :  { %4305 = vmatmul.mubr.msk.bf16.vlgmr.msra.gmra.mrb[60].mxu1 %vm294_vm0, %v3482_v8  ;;  %v437_v8 = vadd.f32 %v4779_v16, %v6208_v9 }
0x2a2e   :  { %v4306_v12 = vpop.f32.mrb[60].mxu1 }
0x2a2f   :  { %v3523_v46 = vpop.f32.mrb[61].mxu1  ;;  %v3532_v52 = vadd.f32 %v4778_v59, %v4306_v12 }
0x2a30   :  { %v3524_v14 = vadd.f32 %v4778_v59, %v3523_v46  ;;  %v4307_v63 = vpop.f32.mrb[62].mxu1 }
0x2a31   :  { %v3526_v47 = vpop.f32.mrb[63].mxu1  ;;  %v3535_v7 = vadd.f32 %v4778_v59, %v4307_v63  ;;  %v3540_v12 = vadd.f32 %v3532_v52, %v434_v18 }
0x2a32   :  { %v3527_v57 = vadd.f32 %v4778_v59, %v3526_v47  ;;  %3570 = vrot.lane.b32.xlu0 %v3524_v14, %s4820_s0  ;;  %v3538_v11 = vadd.f32 %v3524_v14, %v426_v10 }
0x2a33   :  { %v3541_v59 = vadd.f32 %v3535_v7, %v437_v8  ;;  %v4008_v47 = vmul.f32 -1.442695, %v3540_v12 }
0x2a34   :  { %3572 = vrot.lane.b32.xlu1 %v3527_v57, %s4820_s0  ;;  %v3539_v27 = vadd.f32 %v3527_v57, %v429_v41  ;;  %v4006_v46 = vmul.f32 -1.442695, %v3538_v11 }
0x2a35   :  { %v4009_v23 = vmul.f32 -1.442695, %v3541_v59 }
0x2a36   :  { %3574 = vrot.lane.b32.xlu0 %v3532_v52, %s4820_s0  ;;  %v4007_v63 = vmul.f32 -1.442695, %v3539_v27  ;;  %4712 = vpow2.f32 %v4006_v46 }
0x2a38   :  { %3576 = vrot.lane.b32.xlu1 %v3535_v7, %s4820_s0  ;;  %4714 = vpow2.f32 %v4007_v63 }
0x2a39   :  { %4716 = vpow2.f32 %v4008_v47 }
0x2a3a   :  { %4718 = vpow2.f32 %v4009_v23 }
0x2a40   :  { %v4713_v13 = vpop.eup %4712 }
0x2a41   :  { %v3554_v58 = vadd.f32 1.0, %v4713_v13 }
0x2a42   :  { %v4715_v19 = vpop.eup %4714 }
0x2a43   :  { %v4717_v26 = vpop.eup %4716  ;;  %v3555_v14 = vadd.f32 1.0, %v4715_v19  ;;  %4720 = vrcp.f32 %v3554_v58 }
0x2a44   :  { %v4719_v15 = vpop.eup %4718  ;;  %v3556_v22 = vadd.f32 1.0, %v4717_v26 }
0x2a45   :  { %v3557_v57 = vadd.f32 1.0, %v4719_v15  ;;  %4722 = vrcp.f32 %v3555_v14 }
0x2a46   :  { %4724 = vrcp.f32 %v3556_v22 }
0x2a47   :  { %4726 = vrcp.f32 %v3557_v57 }
0x2a4d   :  { %v5947_v52 = vpop.eup %4720 }
0x2a4f   :  { %v5950_v11 = vpop.eup %4722 }
0x2a50   :  { %v5954_v13 = vpop.eup %4724 }
0x2a51   :  { %v5958_v15 = vpop.eup %4726 }
0x2aa4   :  { %v3571_v7 = vpop.permute.xlu0 %3570 }
0x2aa5   :  { %v3582_v16 = vmul.f32 %v5947_v52, %v3571_v7 }
0x2aa6   :  { %v3573_v23 = vpop.permute.xlu1 %3572 }
0x2aa7   :  { %v3583_v27 = vmul.f32 %v5950_v11, %v3573_v23  ;;  %3590 = vrot.lane.b32.xlu0 %v3582_v16, %s4820_s0 }
0x2aa8   :  { %v3575_v9 = vpop.permute.xlu0 %3574 }
0x2aa9   :  { %v3584_v58 = vmul.f32 %v5954_v13, %v3575_v9  ;;  %3592 = vrot.lane.b32.xlu1 %v3583_v27, %s4820_s0 }
0x2aaa   :  { %v3577_v12 = vpop.permute.xlu1 %3576 }
0x2aab   :  { %v3585_v46 = vmul.f32 %v5958_v15, %v3577_v12  ;;  %3594 = vrot.lane.b32.xlu0 %v3584_v58, %s4820_s0 }
0x2aad   :  { %3596 = vrot.lane.b32.xlu1 %v3585_v46, %s4820_s0  ;;  %s3919_s0 = sld [smem:[#allocation4 + $0xd]] }
0x2b19   :  { %v3591_v59 = vpop.permute.xlu0 %3590 }
0x2b1a   :  { %v3602_v63 = vadd.f32 %v3591_v59, %v426_v10 }
0x2b1b   :  { %v3593_v47 = vpop.permute.xlu1 %3592 }
0x2b1c   :  { %4728 = vtanh.f32 %v3602_v63  ;;  %v3603_v19 = vadd.f32 %v3593_v47, %v429_v41  ;;  %v1109_v41 = vstv %s3912_s3  ;;  %v1471_v63 = vstv %s3926_s22 }
0x2b1d   :  { %v3595_v26 = vpop.permute.xlu0 %3594  ;;  %v1110_v27 = vmul.f32 %v1109_v41, %v5244_v56  ;;  %v1111_v58 = vmul.f32 %v1109_v41, %v5242_v4  ;;  %v1112_v12 = vmul.f32 %v1109_v41, %v5250_v54  ;;  %v1113_v46 = vmul.f32 %v1109_v41, %v5252_v61 }
0x2b1e   :  { %4730 = vtanh.f32 %v3603_v19  ;;  %v3604_v14 = vadd.f32 %v3595_v26, %v434_v18  ;;  %v928_v18 = vstv %s3905_s4 }
0x2b1f   :  { %v3597_v22 = vpop.permute.xlu1 %3596  ;;  %v929_v9 = vmul.f32 %v928_v18, %v5196_v51  ;;  %v930_v47 = vmul.f32 %v928_v18, %v5198_v0  ;;  %v931_v19 = vmul.f32 %v928_v18, %v5202_v1  ;;  %v932_v26 = vmul.f32 %v928_v18, %v5204_v53 }
0x2b20   :  { %4732 = vtanh.f32 %v3604_v14  ;;  %v3605_v57 = vadd.f32 %v3597_v22, %v437_v8  ;;  %v1290_v8 = vstv %s3919_s0  ;;  %v1652_v51 = vstv %s3933_s1 }
0x2b21   :  { %v1291_v59 = vmul.f32 %v1290_v8, %v5292_v2  ;;  %v1114_v14 = vadd.f32 %v1110_v27, %v929_v9  ;;  %v1292_v56 = vmul.f32 %v1290_v8, %v5290_v43  ;;  %v1115_v4 = vadd.f32 %v1111_v58, %v930_v47 }
0x2b22   :  { %4734 = vtanh.f32 %v3605_v57  ;;  %v1293_v54 = vmul.f32 %v1290_v8, %v5298_v44  ;;  %v1294_v61 = vmul.f32 %v1290_v8, %v5300_v39  ;;  %v1472_v2 = vmul.f32 %v1471_v63, %v5350_v45 }
0x2b23   :  { %v1116_v22 = vadd.f32 %v1112_v12, %v931_v19  ;;  %v1117_v57 = vadd.f32 %v1113_v46, %v932_v26  ;;  %v1295_v0 = vadd.f32 %v1291_v59, %v1114_v14  ;;  %v1473_v1 = vmul.f32 %v1471_v63, %v5348_v55 }
0x2b24   :  { %v1474_v53 = vmul.f32 %v1471_v63, %v5356_v42  ;;  %v1653_v43 = vmul.f32 %v1652_v51, %v5398_v6  ;;  %v1654_v45 = vmul.f32 %v1652_v51, %v5396_v29  ;;  %v1655_v41 = vmul.f32 %v1652_v51, %v5404_v30 }
0x2b25   :  { %v1298_v44 = vadd.f32 %v1294_v61, %v1117_v57  ;;  %v1476_v39 = vadd.f32 %v1472_v2, %v1295_v0  ;;  %v1656_v55 = vmul.f32 %v1652_v51, %v5406_v33  ;;  %v2195_v29 = vstv %s5977_s24 }
0x2b26   :  { %v4729_v7 = vpop.eup %4728  ;;  %v2376_v47 = vstv %s3961_s25  ;;  %v2199_v51 = vmul.f32 %v2195_v29, %v5560_v21  ;;  %v2738_v21 = vstv %s5996_s27 }
0x2b27   :  { %3618 = vrot.lane.b32.xlu0 %v4729_v7, %s4821_s20  ;;  %v1475_v7 = vmul.f32 %v1471_v63, %v5358_v49  ;;  %v1657_v27 = vadd.f32 %v1653_v43, %v1476_v39 }
0x2b28   :  { %v4731_v16 = vpop.eup %4730 }
0x2b29   :  { %3620 = vrot.lane.b32.xlu1 %v4731_v16, %s4821_s20  ;;  %v1833_v16 = vstv %s3940_s23  ;;  %v1479_v8 = vadd.f32 %v1475_v7, %v1298_v44 }
0x2b2a   :  { %v4733_v23 = vpop.eup %4732  ;;  %v1834_v42 = vmul.f32 %v1833_v16, %v5456_v36  ;;  %v1835_v9 = vmul.f32 %v1833_v16, %v5454_v60  ;;  %v1836_v58 = vmul.f32 %v1833_v16, %v5462_v5  ;;  %v1837_v12 = vmul.f32 %v1833_v16, %v5464_v31 }
0x2b2b   :  { %3622 = vrot.lane.b32.xlu0 %v4733_v23, %s4821_s20  ;;  %v1296_v23 = vadd.f32 %v1292_v56, %v1115_v4  ;;  %v1660_v59 = vadd.f32 %v1656_v55, %v1479_v8  ;;  %v2196_v31 = vmul.f32 %v2195_v29, %v5552_v35  ;;  %v2557_v4 = vstv %s5987_s26  ;;  %v6217_v8 = vld [vmem:[#allocation30_spill] sm:$0xff] }
0x2b2c   :  { %v4735_v10 = vpop.eup %4734  ;;  %v1838_v36 = vadd.f32 %v1834_v42, %v1657_v27  ;;  %v2919_v42 = vstv %s6000_s28  ;;  %v2740_v27 = vmul.f32 %v2738_v21, %v6217_v8  ;;  %v6226_v8 = vld [vmem:[#allocation25_spill] sm:$0xff] }
0x2b2d   :  { %3624 = vrot.lane.b32.xlu1 %v4735_v10, %s4821_s20  ;;  %s3947_s20 = sld [smem:[#allocation4 + $0x9]]  ;;  %v1297_v10 = vadd.f32 %v1293_v54, %v1116_v22  ;;  %v1477_v18 = vadd.f32 %v1473_v1, %v1296_v23  ;;  %v1841_v14 = vadd.f32 %v1837_v12, %v1660_v59  ;;  %v6209_v54 = vld [vmem:[#allocation33_spill] sm:$0xff]  ;;  %v6210_v22 = vld [vmem:[#allocation34_spill] sm:$0xff]  ;;  %v6211_v1 = vld [vmem:[#allocation35_spill] sm:$0xff] }
0x2b2e   :  { %v2378_v35 = vmul.f32 %v2376_v47, %v6209_v54  ;;  %v2379_v57 = vmul.f32 %v2376_v47, %v6210_v22 }
0x2b2f   :  { %v1478_v6 = vadd.f32 %v1474_v53, %v1297_v10  ;;  %v1658_v46 = vadd.f32 %v1654_v45, %v1477_v18  ;;  %v2380_v53 = vmul.f32 %v2376_v47, %v6211_v1  ;;  %v6214_v10 = vld [vmem:[#allocation38_spill] sm:$0xff]  ;;  %v6216_v18 = vld [vmem:[#allocation32_spill] sm:$0xff] }
0x2b30   :  { %v2560_v44 = vmul.f32 %v2557_v4, %v6214_v10 }
0x2b31   :  { %v1659_v33 = vadd.f32 %v1655_v41, %v1478_v6  ;;  %v1839_v19 = vadd.f32 %v1835_v9, %v1658_v46  ;;  %v6215_v41 = vld [vmem:[#allocation39_spill] sm:$0xff]  ;;  %v2739_v6 = vmul.f32 %v2738_v21, %v6216_v18  ;;  %v6219_v46 = vld [vmem:[#allocation40_spill] sm:$0xff] }
0x2b32   :  { %v2561_v55 = vmul.f32 %v2557_v4, %v6215_v41  ;;  %v6218_v9 = vld [vmem:[#allocation31_spill] sm:$0xff]  ;;  %v3643_v41 = vstv %s6035_s11 }
0x2b33   :  { %v2014_v49 = vstv %s3947_s20  ;;  %v1840_v26 = vadd.f32 %v1836_v58, %v1659_v33  ;;  %v2741_v58 = vmul.f32 %v2738_v21, %v6218_v9  ;;  %v3100_v33 = vstv %s6006_s29  ;;  %v6227_v9 = vld [vmem:[#allocation24_spill] sm:$0xff]  ;;  %s4823_s20 = smov [#allocation7]  }
0x2b34   :  { %v2015_v30 = vmul.f32 %v2014_v49, %v5504_v25  ;;  %v2016_v63 = vmul.f32 %v2014_v49, %v5502_v62  ;;  %v2017_v60 = vmul.f32 %v2014_v49, %v5510_v48  ;;  %v2018_v5 = vmul.f32 %v2014_v49, %v5512_v24  ;;  %s3818_s24 = sshll.u32 %s4823_s20, 4  ;;  %s3819_s24 = int_to_ptr.vmem [resolvable:$true] %s3818_s24 }
0x2b35   :  { %v2197_v25 = vmul.f32 %v2195_v29, %v5550_v17  ;;  %v2198_v62 = vmul.f32 %v2195_v29, %v5558_v28  ;;  %v2377_v24 = vmul.f32 %v2376_v47, %v5610_v34  ;;  %v6212_v28 = vld [vmem:[#allocation37_spill] sm:$0xff]  ;;  %v6213_v34 = vld [vmem:[#allocation36_spill] sm:$0xff]  ;;  %v3102_v54 = vmul.f32 %v3100_v33, %v5812_v3  ;;  %s4792_s26 = scalar_lea.vmem %s3819_s24, 16  ;;  %s4796_s27 = scalar_lea.vmem %s3819_s24, 32 }
0x2b36   :  { %v2019_v56 = vadd.f32 %v2015_v30, %v1838_v36  ;;  %v2020_v48 = vadd.f32 %v2016_v63, %v1839_v19  ;;  %v2021_v61 = vadd.f32 %v2017_v60, %v1840_v26  ;;  %v2022_v2 = vadd.f32 %v2018_v5, %v1841_v14  ;;  %v6220_v63 = vld [vmem:[#allocation27_spill] sm:$0xff]  ;;  %v6221_v5 = vld [vmem:[#allocation29_spill] sm:$0xff]  ;;  %v6222_v19 = vld [vmem:[#allocation26_spill] sm:$0xff]  ;;  %p4793_p5 = scmp.ne.s32.totalorder %s3819_s24, %s4792_s26  ;;  %p4797_p6 = scmp.lt.s32.totalorder %s3819_s24, %s3819_s24 }
0x2b37   :  { %v2558_v7 = vmul.f32 %v2557_v4, %v6212_v28  ;;  %v2559_v23 = vmul.f32 %v2557_v4, %v6213_v34  ;;  %v2742_v30 = vmul.f32 %v2738_v21, %v6219_v46  ;;  %v2920_v60 = vmul.f32 %v2919_v42, %v6220_v63  ;;  %v6223_v14 = vld [vmem:[#allocation28_spill] sm:$0xff]  ;;  %p4798_p7 = scmp.lt.s32.totalorder %s4796_s27, %s4792_s26 }
0x2b38   :  { %v2200_v17 = vadd.f32 %v2196_v31, %v2019_v56  ;;  %v2201_v0 = vadd.f32 %v2197_v25, %v2020_v48  ;;  %v2202_v43 = vadd.f32 %v2198_v62, %v2021_v61  ;;  %v2203_v16 = vadd.f32 %v2199_v51, %v2022_v2  ;;  %v6224_v61 = vld [vmem:[#allocation23_spill] sm:$0xff] }
0x2b39   :  { %v2921_v31 = vmul.f32 %v2919_v42, %v6221_v5  ;;  %v2922_v26 = vmul.f32 %v2919_v42, %v6222_v19  ;;  %v2923_v25 = vmul.f32 %v2919_v42, %v6223_v14  ;;  %v3281_v56 = vstv %s6013_s30  ;;  %p4799_p8 = por %p4798_p7, %p4797_p6 }
0x2b3a   :  { %v2381_v39 = vadd.f32 %v2377_v24, %v2200_v17  ;;  %v2382_v45 = vadd.f32 %v2378_v35, %v2201_v0  ;;  %v2383_v49 = vadd.f32 %v2379_v57, %v2202_v43  ;;  %v2384_v12 = vadd.f32 %v2380_v53, %v2203_v16 }
0x2b3b   :  { %v3101_v48 = vmul.f32 %v3100_v33, %v5810_v20  ;;  %v3103_v35 = vmul.f32 %v3100_v33, %v5819_v40  ;;  %v3104_v2 = vmul.f32 %v3100_v33, %v6224_v61  ;;  %v3282_v57 = vmul.f32 %v3281_v56, %v5868_v37  ;;  %p4800_p9 = pnand %p4799_p8, %p4793_p5 }
0x2b3c   :  { %v2562_v29 = vadd.f32 %v2558_v7, %v2381_v39  ;;  %v2563_v59 = vadd.f32 %v2559_v23, %v2382_v45  ;;  %v2564_v36 = vadd.f32 %v2560_v44, %v2383_v49  ;;  %v2565_v47 = vadd.f32 %v2561_v55, %v2384_v12  ;;  %v6225_v45 = vld [vmem:[#allocation22_spill] sm:$0xff] }
0x2b3d   :  { %v3462_v0 = vstv %s6021_s10  ;;  %v3283_v28 = vmul.f32 %v3281_v56, %v5870_v32  ;;  %v3284_v7 = vmul.f32 %v3281_v56, %v5877_v50  ;;  %v3610_v21 = vsub.f32 1.0, %v5947_v52 }
0x2b3e   :  { %v2743_v62 = vadd.f32 %v2739_v6, %v2562_v29  ;;  %v2744_v51 = vadd.f32 %v2740_v27, %v2563_v59  ;;  %v2745_v4 = vadd.f32 %v2741_v58, %v2564_v36  ;;  %v2746_v24 = vadd.f32 %v2742_v30, %v2565_v47  ;;  %v6228_v59 = vld [vmem:[#allocation19_spill] sm:$0xff] }
0x2b3f   :  { %v3463_v16 = vmul.f32 %v3462_v0, %v5915_v38  ;;  %v3634_v37 = vmul.f32 %v5947_v52, %v5915_v38  ;;  %v3611_v44 = vsub.f32 1.0, %v5950_v11  ;;  %v3464_v50 = vmul.f32 %v3462_v0, %v6225_v45 }
0x2b40   :  { %v2924_v17 = vadd.f32 %v2920_v60, %v2743_v62  ;;  %v2925_v22 = vadd.f32 %v2921_v31, %v2744_v51  ;;  %v2926_v1 = vadd.f32 %v2922_v26, %v2745_v4  ;;  %v2927_v53 = vadd.f32 %v2923_v25, %v2746_v24 }
0x2b41   :  { %v3635_v49 = vmul.f32 %v5950_v11, %v6225_v45  ;;  %v3612_v6 = vsub.f32 1.0, %v5954_v13  ;;  %v3285_v27 = vmul.f32 %v3281_v56, %v6226_v8  ;;  %v3465_v38 = vmul.f32 %v3462_v0, %v6227_v9 }
0x2b42   :  { %v3105_v20 = vadd.f32 %v3101_v48, %v2924_v17  ;;  %v3106_v3 = vadd.f32 %v3102_v54, %v2925_v22  ;;  %v3107_v43 = vadd.f32 %v3103_v35, %v2926_v1  ;;  %v3108_v40 = vadd.f32 %v3104_v2, %v2927_v53 }
0x2b43   :  { %v3636_v58 = vmul.f32 %v5954_v13, %v6227_v9  ;;  %v3613_v33 = vsub.f32 1.0, %v5958_v15  ;;  %v3466_v36 = vmul.f32 %v3462_v0, %v6228_v59  ;;  %v3653_v11 = vstv %s6117_s7  ;;  %s4822_s7 = smov 65  }
0x2b44   :  { %v3286_v23 = vadd.f32 %v3282_v57, %v3105_v20  ;;  %v3287_v32 = vadd.f32 %v3283_v28, %v3106_v3  ;;  %v3288_v39 = vadd.f32 %v3284_v7, %v3107_v43  ;;  %v3637_v60 = vmul.f32 %v5958_v15, %v6228_v59 }
0x2b45   :  { %v3289_v26 = vadd.f32 %v3285_v27, %v3108_v40 }
0x2b46   :  { %v3467_v52 = vadd.f32 %v3463_v16, %v3286_v23  ;;  %v3468_v63 = vadd.f32 %v3464_v50, %v3287_v32  ;;  %v3469_v14 = vadd.f32 %v3465_v38, %v3288_v39 }
0x2b47   :  { %v3470_v4 = vadd.f32 %v3466_v36, %v3289_v26 }
0x2b99   :  { %v3619_v34 = vpop.permute.xlu0 %3618 }
0x2b9a   :  { %v3630_v10 = vmul.f32 %v3619_v34, %v3610_v21 }
0x2b9b   :  { %v3621_v55 = vpop.permute.xlu1 %3620 }
0x2b9c   :  { %v3638_v42 = vadd.f32 %v3634_v37, %v3630_v10  ;;  %v3631_v18 = vmul.f32 %v3621_v55, %v3611_v44 }
0x2b9d   :  { %v3623_v12 = vpop.permute.xlu0 %3622 }
0x2b9e   :  { %v3644_v29 = vmul.f32 %v3643_v41, %v3638_v42  ;;  %v3639_v46 = vadd.f32 %v3635_v49, %v3631_v18  ;;  %v3632_v30 = vmul.f32 %v3623_v12, %v3612_v6 }
0x2b9f   :  { %v3625_v5 = vpop.permute.xlu1 %3624 }
0x2ba0   :  { %v3648_v31 = vadd.f32 %v3644_v29, %v3467_v52  ;;  %v3645_v47 = vmul.f32 %v3643_v41, %v3639_v46  ;;  %v3640_v13 = vadd.f32 %v3636_v58, %v3632_v30  ;;  %v3633_v19 = vmul.f32 %v3625_v5, %v3613_v33 }
0x2ba2   :  { %v3654_v25 = vadd.f32 %v3653_v11, %v3648_v31  ;;  %v3649_v56 = vadd.f32 %v3645_v47, %v3468_v63  ;;  %v3646_v62 = vmul.f32 %v3643_v41, %v3640_v13  ;;  %v3641_v51 = vadd.f32 %v3637_v60, %v3633_v19  ;;  %v3705_v63 = vld [vmem:[%s6115_s5 + $0x10] sm:$0xff]  ;;  %v3703_v31 = vld [vmem:[%s6115_s5] sm:$0xff]  ;;  %v3704_v13 = vld [vmem:[%s6115_s5 + $0x8] sm:$0xff] }
0x2ba3   :  { %v3709_v60 = vmax.f32 %v3705_v63, 0.0  ;;  %v3707_v26 = vmax.f32 %v3703_v31, 0.0 }
0x2ba4   :  { %v4010_v48 = vmul.f32 -1.442695, %v3654_v25  ;;  %v3655_v24 = vadd.f32 %v3653_v11, %v3649_v56  ;;  %v3650_v54 = vadd.f32 %v3646_v62, %v3469_v14  ;;  %v3647_v35 = vmul.f32 %v3643_v41, %v3641_v51  ;;  %v3706_v14 = vld [vmem:[%s6115_s5 + $0x18] sm:$0xff] }
0x2ba5   :  { %v3761_v19 = vsub.f32 1.0, %v3709_v60  ;;  %v3708_v56 = vmax.f32 %v3704_v13, 0.0  ;;  %v3759_v62 = vsub.f32 1.0, %v3707_v26 }
0x2ba6   :  { %4736 = vpow2.f32 %v4010_v48  ;;  %v4011_v61 = vmul.f32 -1.442695, %v3655_v24  ;;  %v3656_v2 = vadd.f32 %v3653_v11, %v3650_v54  ;;  %v3651_v15 = vadd.f32 %v3647_v35, %v3470_v4 }
0x2ba7   :  { %v3710_v4 = vmax.f32 %v3706_v14, 0.0  ;;  %v3760_v24 = vsub.f32 1.0, %v3708_v56 }
0x2ba8   :  { %4738 = vpow2.f32 %v4011_v61  ;;  %v4012_v17 = vmul.f32 -1.442695, %v3656_v2  ;;  %v3657_v22 = vadd.f32 %v3653_v11, %v3651_v15 }
0x2baa   :  { %4740 = vpow2.f32 %v4012_v17  ;;  %v4013_v57 = vmul.f32 -1.442695, %v3657_v22  ;;  %v3762_v17 = vsub.f32 1.0, %v3710_v4 }
0x2bac   :  { %4742 = vpow2.f32 %v4013_v57 }
0x2bb0   :  { %v4737_v0 = vpop.eup %4736 }
0x2bb1   :  { %v3670_v1 = vadd.f32 1.0, %v4737_v0 }
0x2bb2   :  { %v4739_v53 = vpop.eup %4738 }
0x2bb3   :  { %v3671_v28 = vadd.f32 1.0, %v4739_v53  ;;  %4744 = vrcp.f32 %v3670_v1 }
0x2bb4   :  { %v4741_v7 = vpop.eup %4740 }
0x2bb5   :  { %v3672_v20 = vadd.f32 1.0, %v4741_v7  ;;  %4746 = vrcp.f32 %v3671_v28 }
0x2bb6   :  { %v4743_v21 = vpop.eup %4742 }
0x2bb7   :  { %4748 = vrcp.f32 %v3672_v20  ;;  %v3673_v3 = vadd.f32 1.0, %v4743_v21 }
0x2bb9   :  { %4750 = vrcp.f32 %v3673_v3 }
0x2bbd   :  { %v4745_v43 = vpop.eup %4744 }
0x2bbe   :  { %4752 = vlog2.f32 %v4745_v43  ;;  %v3723_v23 = vsub.f32 1.0, %v4745_v43 }
0x2bbf   :  { %v4747_v40 = vpop.eup %4746 }
0x2bc0   :  { %v3724_v37 = vsub.f32 1.0, %v4747_v40 }
0x2bc1   :  { %v4749_v16 = vpop.eup %4748 }
0x2bc2   :  { %4754 = vlog2.f32 %v4749_v16  ;;  %v3725_v34 = vsub.f32 1.0, %v4749_v16 }
0x2bc3   :  { %4756 = vlog2.f32 %v4747_v40  ;;  %v4751_v10 = vpop.eup %4750 }
0x2bc4   :  { %4758 = vlog2.f32 %v3725_v34  ;;  %v3726_v44 = vsub.f32 1.0, %v4751_v10 }
0x2bc5   :  { %4760 = vlog2.f32 %v3723_v23 }
0x2bc6   :  { %4762 = vlog2.f32 %v3724_v37 }
0x2bc7   :  { %4764 = vlog2.f32 %v4751_v10 }
0x2bc8   :  { %v4753_v32 = vpop.eup %4752  ;;  %4766 = vlog2.f32 %v3726_v44 }
0x2bc9   :  { %v3712_v49 = vmul.f32 0.6931472, %v4753_v32 }
0x2bcb   :  { %v3719_v9 = vmax.f32 %v3712_v49, -100.0 }
0x2bcc   :  { %v4755_v39 = vpop.eup %4754 }
0x2bcd   :  { %v4757_v45 = vpop.eup %4756  ;;  %v3716_v50 = vmul.f32 0.6931472, %v4755_v39 }
0x2bce   :  { %v4759_v41 = vpop.eup %4758  ;;  %v3714_v8 = vmul.f32 0.6931472, %v4757_v45 }
0x2bcf   :  { %v3721_v55 = vmax.f32 %v3716_v50, -100.0  ;;  %v3732_v42 = vmul.f32 0.6931472, %v4759_v41  ;;  %v4761_v18 = vpop.eup %4760 }
0x2bd0   :  { %v4763_v27 = vpop.eup %4762  ;;  %v3728_v38 = vmul.f32 0.6931472, %v4761_v18  ;;  %v3720_v58 = vmax.f32 %v3714_v8, -100.0 }
0x2bd1   :  { %3747 = vrot.lane.b32.xlu0 %v3721_v55, %s4822_s7  ;;  %v3737_v6 = vmax.f32 %v3732_v42, -100.0  ;;  %v4765_v52 = vpop.eup %4764  ;;  %v3730_v12 = vmul.f32 0.6931472, %v4763_v27 }
0x2bd2   :  { %v4767_v29 = vpop.eup %4766  ;;  %v3735_v46 = vmax.f32 %v3728_v38, -100.0  ;;  %v3718_v30 = vmul.f32 0.6931472, %v4765_v52 }
0x2bd3   :  { %3771 = vrot.lane.b32.xlu1 %v3737_v6, %s4822_s7  ;;  %v3736_v33 = vmax.f32 %v3730_v12, -100.0  ;;  %v3734_v59 = vmul.f32 0.6931472, %v4767_v29 }
0x2bd4   :  { %v3722_v36 = vmax.f32 %v3718_v30, -100.0 }
0x2bd5   :  { %3743 = vrot.lane.b32.xlu0 %v3719_v9, %s4822_s7  ;;  %v3738_v11 = vmax.f32 %v3734_v59, -100.0 }
0x2bd7   :  { %3745 = vrot.lane.b32.xlu1 %v3720_v58, %s4822_s7 }
0x2bd9   :  { %3767 = vrot.lane.b32.xlu0 %v3735_v46, %s4822_s7 }
0x2bdb   :  { %3769 = vrot.lane.b32.xlu1 %v3736_v33, %s4822_s7 }
0x2bdd   :  { %3749 = vrot.lane.b32.xlu0 %v3722_v36, %s4822_s7 }
0x2bdf   :  { %3773 = vrot.lane.b32.xlu1 %v3738_v11, %s4822_s7 }
0x2be3   :  { %3686 = vrot.lane.b32.xlu1 %v4745_v43, %s4822_s7 }
0x2be7   :  { %3688 = vrot.lane.b32.xlu1 %v4747_v40, %s4822_s7 }
0x2beb   :  { %3690 = vrot.lane.b32.xlu1 %v4749_v16, %s4822_s7 }
0x2bef   :  { %3692 = vrot.lane.b32.xlu1 %v4751_v10, %s4822_s7 }
0x2c43   :  { %v3748_v5 = vpop.permute.xlu0 %3747 }
0x2c44   :  { %v3757_v35 = vmul.f32 %v3748_v5, %v3709_v60 }
0x2c45   :  { %v3772_v47 = vpop.permute.xlu1 %3771 }
0x2c46   :  { %v3781_v48 = vmul.f32 %v3772_v47, %v3761_v19 }
0x2c47   :  { %v3744_v25 = vpop.permute.xlu0 %3743 }
0x2c48   :  { %v3755_v61 = vmul.f32 %v3744_v25, %v3707_v26  ;;  %v3785_v22 = vadd.f32 %v3781_v48, %v3757_v35 }
0x2c49   :  { %v3746_v51 = vpop.permute.xlu1 %3745 }
0x2c4a   :  { %v3756_v57 = vmul.f32 %v3746_v51, %v3708_v56  ;;  %v3789_v21 = vsub.f32 0.0, %v3785_v22 }
0x2c4b   :  { %v3768_v54 = vpop.permute.xlu0 %3767 }
0x2c4c   :  { %v3779_v2 = vmul.f32 %v3768_v54, %v3759_v62  ;;  %v3794_v44 = vsel %vm3698_vm1, %v3789_v21, 0.0 }
0x2c4d   :  { %v3770_v15 = vpop.permute.xlu1 %3769 }
0x2c4e   :  { %v3783_v0 = vadd.f32 %v3779_v2, %v3755_v61  ;;  %v3780_v1 = vmul.f32 %v3770_v15, %v3760_v24 }
0x2c4f   :  { %v3750_v53 = vpop.permute.xlu0 %3749 }
0x2c50   :  { %v3787_v28 = vsub.f32 0.0, %v3783_v0  ;;  %v3784_v7 = vadd.f32 %v3780_v1, %v3756_v57  ;;  %v3758_v43 = vmul.f32 %v3750_v53, %v3710_v4 }
0x2c51   :  { %v3774_v20 = vpop.permute.xlu1 %3773 }
0x2c52   :  { %v3788_v3 = vsub.f32 0.0, %v3784_v7  ;;  %v3782_v40 = vmul.f32 %v3774_v20, %v3762_v17  ;;  %v3791_v16 = vsel %vm3698_vm1, %v3787_v28, 0.0 }
0x2c54   :  { %v3792_v34 = vsel %vm3698_vm1, %v3788_v3, 0.0  ;;  %v3786_v23 = vadd.f32 %v3782_v40, %v3758_v43 }
0x2c55   :  { %v3793_v37 = vadd.f32 %v3792_v34, %v3791_v16  ;;  %v3687_v10 = vpop.permute.xlu1 %3686 }
0x2c56   :  { %v3790_v32 = vsub.f32 0.0, %v3786_v23  ;;  %3699 = vst.msk [vmem:[%s6119_s9] sm:$0xff] %vm3698_vm1, %v3687_v10 }
0x2c57   :  { %v3795_v39 = vadd.f32 %v3794_v44, %v3793_v37 }
0x2c58   :  { %v3796_v45 = vsel %vm3698_vm1, %v3790_v32, 0.0 }
0x2c59   :  { %v3689_v50 = vpop.permute.xlu1 %3688  ;;  %v3797_v41 = vadd.f32 %v3796_v45, %v3795_v39 }
0x2c5a   :  { %3700 = vst.msk [vmem:[%s6119_s9 + $0x8] sm:$0xff] %vm3698_vm1, %v3689_v50 }
0x2c5b   :  { %3798 = vadd.xlane.f32.xlu0 %v3797_v41 }
0x2c5d   :  { %v3691_v55 = vpop.permute.xlu1 %3690 }
0x2c5e   :  { %3701 = vst.msk [vmem:[%s6119_s9 + $0x10] sm:$0xff] %vm3698_vm1, %v3691_v55 }
0x2c61   :  { %v3693_v42 = vpop.permute.xlu1 %3692 }
0x2c62   :  { %3702 = vst.msk [vmem:[%s6119_s9 + $0x18] sm:$0xff] %vm3698_vm1, %v3693_v42 }
0x2ce8   :  { %v3799_v49 = vpop.xlane.xlu0 %3798 }
0x2ce9   :  { %v3800_v18 = vrot.slane %v3799_v49, 4 }
0x2ceb   :  { %v3801_v6 = vadd.f32 %v3800_v18, %v3799_v49 }
0x2ced   :  { %v3802_v8 = vrot.slane %v3801_v6, 2 }
0x2cef   :  { %v3803_v27 = vadd.f32 %v3802_v8, %v3801_v6 }
0x2cf1   :  { %v3804_v9 = vrot.slane %v3803_v27, 1 }
0x2cf3   :  { %v3805_v38 = vadd.f32 %v3804_v9, %v3803_v27 }
0x2cf5   :  { %4308 = vpush %v3805_v38 }
0x2d26   :  { %s4309_s25 = spop %4308 }
0x2d27   :  { %v3807_v52 = vstv %s4309_s25 }
0x2d28   :  { %v3809_v58 = vmul.f32 0.03125, %v3807_v52 }
0x2d2a   :  { %3811 = vst.msk [vmem:[#allocation7] sm:$0x1] %vm3810_vm2, %v3809_v58 }
0x2d2b   :  { %4803 = shalt.err (!%p4800_p9)
}
0x2d2c   :  { %s4804_s29 = scalar_lea.hbm %s6118_s8, 16 }
0x2d2d   :  { %p4805_p10 = scmp.ne.s32.totalorder %s6118_s8, %s4804_s29  ;;  %p4808_p11 = scmp.lt.u32.totalorder %s4804_s29, %s6118_s8 }
0x2d2f   :  { %p4810_p12 = pnand %p4808_p11, %p4805_p10 }
0x2d31   :  { %4813 = shalt.err (!%p4810_p12)
}
0x2d32   :  { %3821 = dma.vmem_to_hbm [thread:$0]  %s3819_s24, 16, %s6118_s8, [#allocation5]  }
0x2d33   :  { %4816 = dma.done.wait [#allocation5], 16  }
0x2d34   :  { %4817 = vsyncadd [#allocation5], 4294967280 }
0x2d35   :  { %3829 = vsyncpa [#allocation5], 1 }
0x2d36   :  { %3830 = vsyncpa [#allocation6], 1 }

</bundles_post_ra>
